<compile_context>
chip_gen: v7x
topology: tpu7x:2x2x1
jax: 0.10.0
libtpu: 0.0.40
codegen_flags: <defaults>
</compile_context>

<pallas_src>
import functools
import math

import jax
import jax.numpy as jnp
import numpy as np
from jax import lax
from jax.experimental import pallas as pl
from jax.experimental.pallas import tpu as pltpu


# ----------------------------------------------------------------------------
# Fused kernel
# ----------------------------------------------------------------------------
def _ff_layer(h, w, b, gamma, beta, use_layernorm, eps, matmul_dtype):
    """feed_forward block: Linear -> ReLU -> [LayerNorm].
    Elementwise math in f32; `w` arrives pre-cast to matmul_dtype (cast hoisted to wrapper)."""
    y = jnp.dot(h.astype(matmul_dtype), w, preferred_element_type=jnp.float32)
    y = y + b
    y = jnp.maximum(y, 0.0)                                    # ReLU
    if use_layernorm:
        mean = jnp.mean(y, axis=-1, keepdims=True)
        yc = y - mean
        var = jnp.mean(yc * yc, axis=-1, keepdims=True)        # two-pass (centered) variance
        y = yc * lax.rsqrt(var + eps) * gamma + beta
    return y


def _vqlayer_kernel(x_ref, ew_ref, eb_ref, eg_ref, ebt_ref,
                    ebd_ref, ebdt_ref, esq_ref,
                    *rest,
                    enc_ln, dec_ln, emb_dim, num_codes, vq_encode,
                    matmul_dtype, eps, total_rows):
    if vq_encode:
        out_ref, enc_ref, stats_ref = rest
    else:
        dw_ref, db_ref, dg_ref, dbt_ref, out_ref, enc_ref, stats_ref = rest

    h = x_ref[...].astype(jnp.float32)                         # (T, D)
    T, D = h.shape
    K = num_codes
    G = D // emb_dim
    GK = G * K

    # ---------------- encoder MLP (weights fully resident) ----------------
    for l, use_ln in enumerate(enc_ln):
        h = _ff_layer(h, ew_ref[l], eb_ref[l], eg_ref[l], ebt_ref[l],
                      use_ln, eps, matmul_dtype)

    # ---------------- vector quantizer, fully lane-dense -------------------
    # Distances for all groups at once via the block-diagonal codebook:
    #   dist[:, g*K + k] = ||e_k||^2 - 2 * x_g . e_k     (||x_g||^2 dropped: argmin-invariant)
    # Distance matmul kept in f32: argmin is precision-sensitive.
    xe = jnp.dot(h, ebd_ref[...], preferred_element_type=jnp.float32)        # (T, GK)
    dist = esq_ref[...] - 2.0 * xe                                           # (T, GK)

    lane = lax.broadcasted_iota(jnp.int32, (T, GK), 1)

    # Per-group first-occurrence argmin; winner stored as a GLOBAL lane index (g*K + k),
    # broadcast back across that group's lanes (no % / reshape / relayout needed).
    target = jnp.zeros((T, GK), jnp.int32)
    for g in range(G):
        in_g = (lane >= g * K) & (lane < (g + 1) * K)
        dist_g = jnp.where(in_g, dist, jnp.inf)
        min_g = jnp.min(dist_g, axis=1, keepdims=True)                       # (T, 1)
        win_g = jnp.min(jnp.where(dist_g == min_g, lane, GK),
                        axis=1, keepdims=True)                               # (T, 1) global lane
        target = jnp.where(in_g, win_g, target)

    # Rows added by padding must not pollute counts / SSE (and their one-hot is zeroed).
    row = lax.broadcasted_iota(jnp.int32, (T, 1), 0) + pl.program_id(0) * T
    valid = (row < total_rows).astype(jnp.float32)                           # (T, 1)

    onehot = jnp.where(lane == target, 1.0, 0.0) * valid                     # (T, GK) f32
    onehot_mm = onehot.astype(matmul_dtype)

    # Quantized rows: ONE (T, GK) @ (GK, D) matmul — no VMEM scratch round-trip.
    q = jnp.dot(onehot_mm, ebdt_ref[...], preferred_element_type=jnp.float32)  # (T, D)

    # Per-tile stats packed into one lane-dense (1, 2, GK) slab:
    #   sublane 0 = codebook usage counts per (group, code)  (MXU; exact with f32 accumulation)
    #   sublane 1 = SSE broadcast across lanes (epilogue reads lane 0)
    counts = jnp.dot(jnp.ones((1, T), matmul_dtype), onehot_mm,
                     preferred_element_type=jnp.float32)                     # (1, GK)
    diff = (q - h) * valid
    sse = jnp.sum(jnp.sum(diff * diff, axis=0, keepdims=True),
                  axis=1, keepdims=True)                                     # (1, 1)
    stats = jnp.concatenate([counts, jnp.broadcast_to(sse, (1, GK))], axis=0)
    stats_ref[...] = stats.reshape(1, 2, GK)

    # Single full-width lane-dense store of the one-hot slab (bf16: 0/1 is exact).
    enc_ref[...] = onehot.astype(enc_ref.dtype)

    if vq_encode:
        out_ref[...] = q.astype(out_ref.dtype)
    else:
        hq = q
        for l, use_ln in enumerate(dec_ln):
            hq = _ff_layer(hq, dw_ref[l], db_ref[l], dg_ref[l], dbt_ref[l],
                           use_ln, eps, matmul_dtype)
        out_ref[...] = hq.astype(out_ref.dtype)


# ----------------------------------------------------------------------------
# Wrapper
# ----------------------------------------------------------------------------
def _choose_tile(rows, target):
    """Row-tile size (multiple of 8) and padded row count.
    Keeps >= 2 tiles when rows allow so the parallel grid axis can use v7x's 2 TensorCores."""
    target = max(8, (int(target) // 8) * 8)
    if rows <= 8:
        return 8, 8
    half = (((rows + 1) // 2) + 7) // 8 * 8      # ~ceil(rows/2), rounded up to a multiple of 8
    t = min(target, half)
    rows_pad = ((rows + t - 1) // t) * t
    return t, rows_pad


def vqlayer_forward(x, params, cfg, vq_encode=False, tile_rows=512,
                    matmul_dtype=jnp.bfloat16):
    # matmul_dtype applies to the MLP weight matmuls, the quantize matmul and the MXU count
    # reduction; the codebook-distance matmul stays f32 (argmin fidelity). Elementwise math f32.
    bs, seq_len, D = x.shape
    rows = bs * seq_len
    emb = cfg["emb_dim"]
    K = cfg["codebook"]
    assert D % emb == 0
    G = D // emb
    GK = G * K

    enc_w, enc_b, enc_g, enc_bt = params["encoder"]
    dec_w, dec_b, dec_g, dec_bt = params["decoder"]
    codebook = params["codebook"].astype(jnp.float32)

    # ---- resident operands pre-cast ONCE here (never per grid step inside the kernel) ----
    f32 = jnp.float32
    enc_w_c = enc_w.astype(matmul_dtype)
    dec_w_c = dec_w.astype(matmul_dtype)
    enc_b_c, enc_g_c, enc_bt_c = enc_b.astype(f32), enc_g.astype(f32), enc_bt.astype(f32)
    dec_b_c, dec_g_c, dec_bt_c = dec_b.astype(f32), dec_g.astype(f32), dec_bt.astype(f32)

    # Block-diagonal codebook: all-group distances in one lane-dense matmul, and quantization
    # in one matmul (removes per-group lane slices and the q scratch round trip).
    e_bd = jnp.kron(jnp.eye(G, dtype=f32), codebook.T)         # (D, GK), f32 (distance matmul)
    e_bdt = e_bd.T.astype(matmul_dtype)                        # (GK, D), q = onehot @ e_bdt
    e_sq = jnp.sum(codebook * codebook, axis=1)                # (K,)
    esq_bd = jnp.tile(e_sq, G).reshape(1, GK)                  # (1, GK)

    T, rows_pad = _choose_tile(rows, tile_rows)
    num_tiles = rows_pad // T

    h = x.reshape(rows, D)
    if rows_pad != rows:
        h = jnp.pad(h, ((0, rows_pad - rows), (0, 0)))

    kernel = functools.partial(
        _vqlayer_kernel,
        enc_ln=tuple(cfg["enc_layernorm"]), dec_ln=tuple(cfg["dec_layernorm"]),
        emb_dim=emb, num_codes=K, vq_encode=vq_encode,
        matmul_dtype=matmul_dtype, eps=1e-5, total_rows=rows)

    row2 = lambda i: (i, 0)
    full2 = lambda i: (0, 0)
    full3 = lambda i: (0, 0, 0)

    in_specs = [
        pl.BlockSpec((T, D), row2),               # activation row tile
        pl.BlockSpec(enc_w_c.shape, full3),       # encoder weights, resident
        pl.BlockSpec(enc_b_c.shape, full3),
        pl.BlockSpec(enc_g_c.shape, full3),
        pl.BlockSpec(enc_bt_c.shape, full3),
        pl.BlockSpec(e_bd.shape, full2),          # block-diag codebook (f32)
        pl.BlockSpec(e_bdt.shape, full2),         # transposed block-diag codebook (matmul dtype)
        pl.BlockSpec(esq_bd.shape, full2),        # precomputed ||e||^2 (tiled per group)
    ]
    operands = [h, enc_w_c, enc_b_c, enc_g_c, enc_bt_c, e_bd, e_bdt, esq_bd]
    if not vq_encode:
        in_specs += [pl.BlockSpec(dec_w_c.shape, full3),
                     pl.BlockSpec(dec_b_c.shape, full3),
                     pl.BlockSpec(dec_g_c.shape, full3),
                     pl.BlockSpec(dec_bt_c.shape, full3)]
        operands += [dec_w_c, dec_b_c, dec_g_c, dec_bt_c]

    out_shapes = (
        jax.ShapeDtypeStruct((rows_pad, D), x.dtype),          # decoded (or quantized)
        jax.ShapeDtypeStruct((rows_pad, GK), jnp.bfloat16),    # one-hot slab (lane-dense, bf16)
        jax.ShapeDtypeStruct((num_tiles, 2, GK), jnp.float32), # per-tile [counts; SSE] slab
    )
    out_specs = (
        pl.BlockSpec((T, D), row2),
        pl.BlockSpec((T, GK), row2),
        pl.BlockSpec((1, 2, GK), lambda i: (i, 0, 0)),
    )

    out_pad, enc_pad, stats = pl.pallas_call(
        kernel,
        out_shape=out_shapes,
        grid=(num_tiles,),
        in_specs=in_specs,
        out_specs=out_specs,
        compiler_params=pltpu.CompilerParams(
            dimension_semantics=("parallel",)),
    )(*operands)

    # ---- tiny JAX epilogue: cross-tile reduction + index derivation ----
    M = rows * G
    counts = jnp.sum(stats[:, 0, :], axis=0).reshape(G, K).sum(axis=0)    # (K,)
    sse = jnp.sum(stats[:, 1, 0])
    loss = (1.0 + cfg["comit_cost"]) * sse / (rows * D)
    avg_probs = counts / M
    perplexity = jnp.exp(-jnp.sum(avg_probs * jnp.log(avg_probs + 1e-10)))

    encodings = enc_pad[:rows].reshape(M, K)                              # bf16 one-hot (exact)
    indices = jnp.argmax(encodings, axis=1).astype(jnp.int32).reshape(M, 1)
    out = out_pad[:rows].reshape(bs, seq_len, D)
    info = (perplexity, encodings, indices)
    return out, loss, info


# ----------------------------------------------------------------------------
# Parameters (deterministic, synthetic) and pure-JAX reference
# ----------------------------------------------------------------------------
def init_vqlayer_params(key, cfg, dtype=jnp.float32):
    n = cfg["MLPLayers"]
    dim = cfg["enc_dim"]

    def init_mlp(k):
        k, kw, kb = jax.random.split(k, 3)
        bound = 1.0 / math.sqrt(dim)
        w = jax.random.uniform(kw, (n, dim, dim), dtype, -bound, bound)   # (in,out) == torch W.T
        b = jax.random.uniform(kb, (n, 1, dim), dtype, -bound, bound)
        gamma = jnp.ones((n, 1, dim), dtype)
        beta = jnp.zeros((n, 1, dim), dtype)
        return k, (w, b, gamma, beta)

    key, encoder = init_mlp(key)
    key, decoder = init_mlp(key)
    key, kc = jax.random.split(key)
    codebook = jax.random.uniform(kc, (cfg["codebook"], cfg["emb_dim"]), dtype,
                                  -1.0 / cfg["codebook"], 1.0 / cfg["codebook"])
    return {"encoder": encoder, "decoder": decoder, "codebook": codebook}


def vqlayer_reference(x, params, cfg):
    P = lax.Precision.HIGHEST
    bs, seq_len, D = x.shape
    rows = bs * seq_len
    emb, K = cfg["emb_dim"], cfg["codebook"]
    enc_w, enc_b, enc_g, enc_bt = params["encoder"]
    dec_w, dec_b, dec_g, dec_bt = params["decoder"]
    e = params["codebook"]

    def mlp(h, w, b, g, bt, flags):
        for l, use_ln in enumerate(flags):
            y = jnp.maximum(jnp.dot(h, w[l], precision=P) + b[l], 0.0)
            if use_ln:
                mean = y.mean(-1, keepdims=True)
                var = ((y - mean) ** 2).mean(-1, keepdims=True)
                y = (y - mean) / jnp.sqrt(var + 1e-5) * g[l] + bt[l]
            h = y
        return h

    h = mlp(x.reshape(rows, D), enc_w, enc_b, enc_g, enc_bt, cfg["enc_layernorm"])
    flat = h.reshape(-1, emb)
    d = (jnp.sum(flat ** 2, axis=1, keepdims=True) + jnp.sum(e ** 2, axis=1)
         - 2.0 * jnp.dot(flat, e.T, precision=P))
    idx = jnp.argmin(d, axis=1)
    onehot = jax.nn.one_hot(idx, K, dtype=x.dtype)
    q = jnp.dot(onehot, e, precision=P)
    loss = (1.0 + cfg["comit_cost"]) * jnp.mean((q - flat) ** 2)
    avg = jnp.mean(onehot, axis=0)
    ppl = jnp.exp(-jnp.sum(avg * jnp.log(avg + 1e-10)))
    out = mlp(q.reshape(rows, D), dec_w, dec_b, dec_g, dec_bt, cfg["dec_layernorm"])
    return out.reshape(bs, seq_len, D), loss, ppl, idx.reshape(-1, 1)


# ----------------------------------------------------------------------------
if __name__ == "__main__":
    cfg = {
        "enc_dim": 32,          # config.encoder.embed_dim
        "emb_dim": 16,          # config.emb_dim (codebook vector dim; enc_dim % emb_dim == 0)
        "codebook": 64,         # config.codebook (num embeddings)
        "comit_cost": 0.25,     # config.comit_cost
        "MLPLayers": 2,         # config.MLPLayers
        "vqlayernorm": True,
        "no_final_layernorm": False,
        "vqfp16": False,
    }
    n = cfg["MLPLayers"]
    cfg["enc_layernorm"] = [cfg["vqlayernorm"]] * (n - 1) + \
        [(not cfg["no_final_layernorm"]) and cfg["vqlayernorm"]]
    cfg["dec_layernorm"] = [cfg["vqlayernorm"]] * n

    key = jax.random.PRNGKey(0)
    key, kx = jax.random.split(key)
    params = init_vqlayer_params(key, cfg)

    bs, seq_len = 2, 128        # 256 rows -> two 128-row tiles (parallel grid / megacore)
    x = jax.random.normal(kx, (bs, seq_len, cfg["enc_dim"]), jnp.float32)
    G = cfg["enc_dim"] // cfg["emb_dim"]
    M = bs * seq_len * G

    # ---- f32 matmuls: strict check against the pure-JAX reference ----
    fwd_f32 = jax.jit(functools.partial(vqlayer_forward, cfg=cfg, tile_rows=128,
                                        matmul_dtype=jnp.float32))
    out, loss, (ppl, encodings, indices) = fwd_f32(x, params)
    jax.block_until_ready((out, loss, ppl, encodings, indices))

    assert out.shape == (bs, seq_len, cfg["enc_dim"])
    assert encodings.shape == (M, cfg["codebook"])
    assert indices.shape == (M, 1)

    r_out, r_loss, r_ppl, r_idx = jax.jit(
        functools.partial(vqlayer_reference, cfg=cfg))(x, params)
    jax.block_until_ready((r_out, r_loss, r_ppl, r_idx))

    k_idx = np.asarray(indices)[:, 0]
    rr_idx = np.asarray(r_idx)[:, 0]
    match = (k_idx == rr_idx)
    assert match.mean() > 0.99, f"index agreement {match.mean():.4f}"

    enc_np = np.asarray(encodings, dtype=np.float32)
    assert np.array_equal(np.argmax(enc_np, axis=1), k_idx)
    assert np.allclose(enc_np.sum(axis=1), 1.0)

    row_ok = match.reshape(bs * seq_len, G).all(axis=1)   # rows with no (rare) argmin tie flip
    k_rows = np.asarray(out).reshape(bs * seq_len, -1)[row_ok]
    r_rows = np.asarray(r_out).reshape(bs * seq_len, -1)[row_ok]
    np.testing.assert_allclose(k_rows, r_rows, rtol=5e-3, atol=5e-3)
    np.testing.assert_allclose(float(loss), float(r_loss), rtol=1e-3)
    np.testing.assert_allclose(float(ppl), float(r_ppl), rtol=2e-2)

    # ---- default bf16 MXU operands: looser agreement / loss check ----
    fwd_bf16 = jax.jit(functools.partial(vqlayer_forward, cfg=cfg, tile_rows=512))
    b_out, b_loss, (b_ppl, b_enc, b_idx) = fwd_bf16(x, params)
    jax.block_until_ready((b_out, b_loss, b_ppl))
    assert b_out.shape == (bs, seq_len, cfg["enc_dim"])
    assert np.isfinite(float(b_loss)) and np.isfinite(float(b_ppl))
    b_match = float((np.asarray(b_idx)[:, 0] == rr_idx).mean())
    assert b_match > 0.95, f"bf16 index agreement {b_match:.4f}"
    np.testing.assert_allclose(float(b_loss), float(r_loss), rtol=5e-2)

    # ---- vq_encode path (no decoder weights passed / resident) ----
    q_out, q_loss, _ = jax.jit(functools.partial(
        vqlayer_forward, cfg=cfg, vq_encode=True, tile_rows=128,
        matmul_dtype=jnp.float32))(x, params)
    jax.block_until_ready((q_out, q_loss))
    assert q_out.shape == (bs, seq_len, cfg["enc_dim"])

    # ---- odd row count: exercises row padding + stat masking (>= 2 tiles kept) ----
    x_odd = jax.random.normal(jax.random.PRNGKey(2), (3, 37, cfg["enc_dim"]), jnp.float32)
    o_out, o_loss, (o_ppl, o_enc, o_idx) = jax.jit(functools.partial(
        vqlayer_forward, cfg=cfg, matmul_dtype=jnp.float32))(x_odd, params)
    jax.block_until_ready((o_out, o_loss, o_ppl))
    r2_out, r2_loss, r2_ppl, _ = jax.jit(
        functools.partial(vqlayer_reference, cfg=cfg))(x_odd, params)
    jax.block_until_ready((r2_out, r2_loss))
    assert o_out.shape == (3, 37, cfg["enc_dim"])
    assert o_enc.shape == (3 * 37 * G, cfg["codebook"])
    np.testing.assert_allclose(float(o_loss), float(r2_loss), rtol=2e-3)
    np.testing.assert_allclose(float(o_ppl), float(r2_ppl), rtol=2e-2)

    print("KERNEL_OK")
</pallas_src>

<mosaic_0001>
module attributes {stable_mosaic.version = 11 : i64} {
  func.func @_vqlayer_kernel(%arg0: i32, %arg1: memref<128x32xf32, #tpu.memory_space<vmem>>, %arg2: memref<2x32x32xf32, #tpu.memory_space<vmem>>, %arg3: memref<2x1x32xf32, #tpu.memory_space<vmem>>, %arg4: memref<2x1x32xf32, #tpu.memory_space<vmem>>, %arg5: memref<2x1x32xf32, #tpu.memory_space<vmem>>, %arg6: memref<32x128xf32, #tpu.memory_space<vmem>>, %arg7: memref<128x32xf32, #tpu.memory_space<vmem>>, %arg8: memref<1x128xf32, #tpu.memory_space<vmem>>, %arg9: memref<2x32x32xf32, #tpu.memory_space<vmem>>, %arg10: memref<2x1x32xf32, #tpu.memory_space<vmem>>, %arg11: memref<2x1x32xf32, #tpu.memory_space<vmem>>, %arg12: memref<2x1x32xf32, #tpu.memory_space<vmem>>, %arg13: memref<128x32xf32, #tpu.memory_space<vmem>>, %arg14: memref<128x128xbf16, #tpu.memory_space<vmem>>, %arg15: memref<1x2x128xf32, #tpu.memory_space<vmem>>) attributes {dimension_semantics = [#tpu.dimension_semantics<parallel>], iteration_bounds = array<i64: 2>, scalar_prefetch = 0 : i64, scratch_operands = 0 : i64, tpu.core_type = #tpu.core_type<tc>, window_params = [{transform_indices = @transform_0, window_bounds = array<i64: 128, 32>}, {pipeline_mode = #tpu.pipeline_mode<synchronous>, transform_indices = @transform_1, window_bounds = array<i64: 2, 32, 32>}, {pipeline_mode = #tpu.pipeline_mode<synchronous>, transform_indices = @transform_2, window_bounds = array<i64: 2, 1, 32>}, {pipeline_mode = #tpu.pipeline_mode<synchronous>, transform_indices = @transform_3, window_bounds = array<i64: 2, 1, 32>}, {pipeline_mode = #tpu.pipeline_mode<synchronous>, transform_indices = @transform_4, window_bounds = array<i64: 2, 1, 32>}, {pipeline_mode = #tpu.pipeline_mode<synchronous>, transform_indices = @transform_5, window_bounds = array<i64: 32, 128>}, {pipeline_mode = #tpu.pipeline_mode<synchronous>, transform_indices = @transform_6, window_bounds = array<i64: 128, 32>}, {pipeline_mode = #tpu.pipeline_mode<synchronous>, transform_indices = @transform_7, window_bounds = array<i64: 1, 128>}, {pipeline_mode = #tpu.pipeline_mode<synchronous>, transform_indices = @transform_8, window_bounds = array<i64: 2, 32, 32>}, {pipeline_mode = #tpu.pipeline_mode<synchronous>, transform_indices = @transform_9, window_bounds = array<i64: 2, 1, 32>}, {pipeline_mode = #tpu.pipeline_mode<synchronous>, transform_indices = @transform_10, window_bounds = array<i64: 2, 1, 32>}, {pipeline_mode = #tpu.pipeline_mode<synchronous>, transform_indices = @transform_11, window_bounds = array<i64: 2, 1, 32>}, {transform_indices = @transform_12, window_bounds = array<i64: 128, 32>}, {transform_indices = @transform_13, window_bounds = array<i64: 128, 128>}, {transform_indices = @transform_14, window_bounds = array<i64: 1, 2, 128>}]} {
    %c0 = arith.constant 0 : index
    %c0_0 = arith.constant 0 : index
    %0 = vector.load %arg1[%c0, %c0_0] : memref<128x32xf32, #tpu.memory_space<vmem>>, vector<128x32xf32>
    %c0_1 = arith.constant 0 : index
    %c0_2 = arith.constant 0 : index
    %c0_3 = arith.constant 0 : index
    %1 = vector.load %arg2[%c0_1, %c0_2, %c0_3] : memref<2x32x32xf32, #tpu.memory_space<vmem>>, vector<1x32x32xf32>
    %2 = vector.shape_cast %1 : vector<1x32x32xf32> to vector<32x32xf32>
    %c0_4 = arith.constant 0 : index
    %c0_5 = arith.constant 0 : index
    %c0_6 = arith.constant 0 : index
    %3 = vector.load %arg3[%c0_4, %c0_5, %c0_6] : memref<2x1x32xf32, #tpu.memory_space<vmem>>, vector<1x1x32xf32>
    %4 = vector.shape_cast %3 : vector<1x1x32xf32> to vector<1x32xf32>
    %c0_7 = arith.constant 0 : index
    %c0_8 = arith.constant 0 : index
    %c0_9 = arith.constant 0 : index
    %5 = vector.load %arg4[%c0_7, %c0_8, %c0_9] : memref<2x1x32xf32, #tpu.memory_space<vmem>>, vector<1x1x32xf32>
    %6 = vector.shape_cast %5 : vector<1x1x32xf32> to vector<1x32xf32>
    %c0_10 = arith.constant 0 : index
    %c0_11 = arith.constant 0 : index
    %c0_12 = arith.constant 0 : index
    %7 = vector.load %arg5[%c0_10, %c0_11, %c0_12] : memref<2x1x32xf32, #tpu.memory_space<vmem>>, vector<1x1x32xf32>
    %8 = vector.shape_cast %7 : vector<1x1x32xf32> to vector<1x32xf32>
    %cst = arith.constant dense<0.000000e+00> : vector<128x32xf32>
    %9 = tpu.matmul %0, %2, %cst {dimension_numbers = #tpu.dot_dimension_numbers<[1], [0], [0], [1], [0, 0, 1, 1], [], []>} : vector<128x32xf32>, vector<32x32xf32>, vector<128x32xf32> -> vector<128x32xf32>
    %10 = vector.broadcast %4 : vector<1x32xf32> to vector<128x32xf32>
    %11 = arith.addf %9, %10 : vector<128x32xf32>
    %cst_13 = arith.constant 0.000000e+00 : f32
    %12 = vector.broadcast %cst_13 : f32 to vector<128x32xf32>
    %13 = arith.maximumf %11, %12 : vector<128x32xf32>
    %cst_14 = arith.constant dense<0.000000e+00> : vector<128xf32>
    %14 = vector.multi_reduction <add>, %13, %cst_14 [1] : vector<128x32xf32> to vector<128xf32>
    %15 = vector.shape_cast %14 : vector<128xf32> to vector<128x1xf32>
    %cst_15 = arith.constant 3.200000e+01 : f32
    %16 = vector.broadcast %cst_15 : f32 to vector<128x1xf32>
    %17 = arith.divf %15, %16 : vector<128x1xf32>
    %18 = vector.broadcast %17 : vector<128x1xf32> to vector<128x32xf32>
    %19 = arith.subf %13, %18 : vector<128x32xf32>
    %20 = arith.mulf %19, %19 : vector<128x32xf32>
    %cst_16 = arith.constant dense<0.000000e+00> : vector<128xf32>
    %21 = vector.multi_reduction <add>, %20, %cst_16 [1] : vector<128x32xf32> to vector<128xf32>
    %22 = vector.shape_cast %21 : vector<128xf32> to vector<128x1xf32>
    %cst_17 = arith.constant 3.200000e+01 : f32
    %23 = vector.broadcast %cst_17 : f32 to vector<128x1xf32>
    %24 = arith.divf %22, %23 : vector<128x1xf32>
    %cst_18 = arith.constant 9.99999974E-6 : f32
    %25 = vector.broadcast %cst_18 : f32 to vector<128x1xf32>
    %26 = arith.addf %24, %25 : vector<128x1xf32>
    %27 = math.rsqrt %26 : vector<128x1xf32>
    %28 = vector.broadcast %27 : vector<128x1xf32> to vector<128x32xf32>
    %29 = arith.mulf %19, %28 : vector<128x32xf32>
    %30 = vector.broadcast %6 : vector<1x32xf32> to vector<128x32xf32>
    %31 = arith.mulf %29, %30 : vector<128x32xf32>
    %32 = vector.broadcast %8 : vector<1x32xf32> to vector<128x32xf32>
    %33 = arith.addf %31, %32 : vector<128x32xf32>
    %c1 = arith.constant 1 : index
    %c0_19 = arith.constant 0 : index
    %c0_20 = arith.constant 0 : index
    %34 = vector.load %arg2[%c1, %c0_19, %c0_20] : memref<2x32x32xf32, #tpu.memory_space<vmem>>, vector<1x32x32xf32>
    %35 = vector.shape_cast %34 : vector<1x32x32xf32> to vector<32x32xf32>
    %c1_21 = arith.constant 1 : index
    %c0_22 = arith.constant 0 : index
    %c0_23 = arith.constant 0 : index
    %36 = vector.load %arg3[%c1_21, %c0_22, %c0_23] : memref<2x1x32xf32, #tpu.memory_space<vmem>>, vector<1x1x32xf32>
    %37 = vector.shape_cast %36 : vector<1x1x32xf32> to vector<1x32xf32>
    %c1_24 = arith.constant 1 : index
    %c0_25 = arith.constant 0 : index
    %c0_26 = arith.constant 0 : index
    %38 = vector.load %arg4[%c1_24, %c0_25, %c0_26] : memref<2x1x32xf32, #tpu.memory_space<vmem>>, vector<1x1x32xf32>
    %39 = vector.shape_cast %38 : vector<1x1x32xf32> to vector<1x32xf32>
    %c1_27 = arith.constant 1 : index
    %c0_28 = arith.constant 0 : index
    %c0_29 = arith.constant 0 : index
    %40 = vector.load %arg5[%c1_27, %c0_28, %c0_29] : memref<2x1x32xf32, #tpu.memory_space<vmem>>, vector<1x1x32xf32>
    %41 = vector.shape_cast %40 : vector<1x1x32xf32> to vector<1x32xf32>
    %cst_30 = arith.constant dense<0.000000e+00> : vector<128x32xf32>
    %42 = tpu.matmul %33, %35, %cst_30 {dimension_numbers = #tpu.dot_dimension_numbers<[1], [0], [0], [1], [0, 0, 1, 1], [], []>} : vector<128x32xf32>, vector<32x32xf32>, vector<128x32xf32> -> vector<128x32xf32>
    %43 = vector.broadcast %37 : vector<1x32xf32> to vector<128x32xf32>
    %44 = arith.addf %42, %43 : vector<128x32xf32>
    %cst_31 = arith.constant 0.000000e+00 : f32
    %45 = vector.broadcast %cst_31 : f32 to vector<128x32xf32>
    %46 = arith.maximumf %44, %45 : vector<128x32xf32>
    %cst_32 = arith.constant dense<0.000000e+00> : vector<128xf32>
    %47 = vector.multi_reduction <add>, %46, %cst_32 [1] : vector<128x32xf32> to vector<128xf32>
    %48 = vector.shape_cast %47 : vector<128xf32> to vector<128x1xf32>
    %cst_33 = arith.constant 3.200000e+01 : f32
    %49 = vector.broadcast %cst_33 : f32 to vector<128x1xf32>
    %50 = arith.divf %48, %49 : vector<128x1xf32>
    %51 = vector.broadcast %50 : vector<128x1xf32> to vector<128x32xf32>
    %52 = arith.subf %46, %51 : vector<128x32xf32>
    %53 = arith.mulf %52, %52 : vector<128x32xf32>
    %cst_34 = arith.constant dense<0.000000e+00> : vector<128xf32>
    %54 = vector.multi_reduction <add>, %53, %cst_34 [1] : vector<128x32xf32> to vector<128xf32>
    %55 = vector.shape_cast %54 : vector<128xf32> to vector<128x1xf32>
    %cst_35 = arith.constant 3.200000e+01 : f32
    %56 = vector.broadcast %cst_35 : f32 to vector<128x1xf32>
    %57 = arith.divf %55, %56 : vector<128x1xf32>
    %cst_36 = arith.constant 9.99999974E-6 : f32
    %58 = vector.broadcast %cst_36 : f32 to vector<128x1xf32>
    %59 = arith.addf %57, %58 : vector<128x1xf32>
    %60 = math.rsqrt %59 : vector<128x1xf32>
    %61 = vector.broadcast %60 : vector<128x1xf32> to vector<128x32xf32>
    %62 = arith.mulf %52, %61 : vector<128x32xf32>
    %63 = vector.broadcast %39 : vector<1x32xf32> to vector<128x32xf32>
    %64 = arith.mulf %62, %63 : vector<128x32xf32>
    %65 = vector.broadcast %41 : vector<1x32xf32> to vector<128x32xf32>
    %66 = arith.addf %64, %65 : vector<128x32xf32>
    %c0_37 = arith.constant 0 : index
    %c0_38 = arith.constant 0 : index
    %67 = vector.load %arg6[%c0_37, %c0_38] : memref<32x128xf32, #tpu.memory_space<vmem>>, vector<32x128xf32>
    %cst_39 = arith.constant dense<0.000000e+00> : vector<128x128xf32>
    %68 = tpu.matmul %66, %67, %cst_39 {dimension_numbers = #tpu.dot_dimension_numbers<[1], [0], [0], [1], [0, 0, 1, 1], [], []>} : vector<128x32xf32>, vector<32x128xf32>, vector<128x128xf32> -> vector<128x128xf32>
    %c0_40 = arith.constant 0 : index
    %c0_41 = arith.constant 0 : index
    %69 = vector.load %arg8[%c0_40, %c0_41] : memref<1x128xf32, #tpu.memory_space<vmem>>, vector<1x128xf32>
    %cst_42 = arith.constant 2.000000e+00 : f32
    %70 = vector.broadcast %cst_42 : f32 to vector<128x128xf32>
    %71 = arith.mulf %70, %68 : vector<128x128xf32>
    %72 = vector.broadcast %69 : vector<1x128xf32> to vector<128x128xf32>
    %73 = arith.subf %72, %71 : vector<128x128xf32>
    %74 = tpu.iota {dimensions = array<i32: 1>} : vector<128x128xi32>
    %c0_i32 = arith.constant 0 : i32
    %75 = vector.broadcast %c0_i32 : i32 to vector<128x128xi32>
    %c0_i32_43 = arith.constant 0 : i32
    %76 = vector.broadcast %c0_i32_43 : i32 to vector<128x128xi32>
    %77 = arith.cmpi sge, %74, %76 : vector<128x128xi32>
    %c64_i32 = arith.constant 64 : i32
    %78 = vector.broadcast %c64_i32 : i32 to vector<128x128xi32>
    %79 = arith.cmpi slt, %74, %78 : vector<128x128xi32>
    %80 = arith.andi %77, %79 : vector<128x128xi1>
    %cst_44 = arith.constant 0x7F800000 : f32
    %81 = vector.broadcast %cst_44 : f32 to vector<128x128xf32>
    %82 = arith.select %80, %73, %81 : vector<128x128xi1>, vector<128x128xf32>
    %cst_45 = arith.constant dense<0x7F800000> : vector<128xf32>
    %83 = vector.multi_reduction <minimumf>, %82, %cst_45 [1] : vector<128x128xf32> to vector<128xf32>
    %84 = vector.shape_cast %83 : vector<128xf32> to vector<128x1xf32>
    %85 = vector.broadcast %84 : vector<128x1xf32> to vector<128x128xf32>
    %86 = arith.cmpf oeq, %82, %85 : vector<128x128xf32>
    %c128_i32 = arith.constant 128 : i32
    %87 = vector.broadcast %c128_i32 : i32 to vector<128x128xi32>
    %88 = arith.select %86, %74, %87 : vector<128x128xi1>, vector<128x128xi32>
    %cst_46 = arith.constant dense<2147483647> : vector<128xi32>
    %89 = vector.multi_reduction <minsi>, %88, %cst_46 [1] : vector<128x128xi32> to vector<128xi32>
    %90 = vector.shape_cast %89 : vector<128xi32> to vector<128x1xi32>
    %91 = vector.shape_cast %90 : vector<128x1xi32> to vector<128x1xi32>
    %92 = vector.broadcast %91 : vector<128x1xi32> to vector<128x128xi32>
    %93 = arith.select %80, %92, %75 : vector<128x128xi1>, vector<128x128xi32>
    %c64_i32_47 = arith.constant 64 : i32
    %94 = vector.broadcast %c64_i32_47 : i32 to vector<128x128xi32>
    %95 = arith.cmpi sge, %74, %94 : vector<128x128xi32>
    %c128_i32_48 = arith.constant 128 : i32
    %96 = vector.broadcast %c128_i32_48 : i32 to vector<128x128xi32>
    %97 = arith.cmpi slt, %74, %96 : vector<128x128xi32>
    %98 = arith.andi %95, %97 : vector<128x128xi1>
    %cst_49 = arith.constant 0x7F800000 : f32
    %99 = vector.broadcast %cst_49 : f32 to vector<128x128xf32>
    %100 = arith.select %98, %73, %99 : vector<128x128xi1>, vector<128x128xf32>
    %cst_50 = arith.constant dense<0x7F800000> : vector<128xf32>
    %101 = vector.multi_reduction <minimumf>, %100, %cst_50 [1] : vector<128x128xf32> to vector<128xf32>
    %102 = vector.shape_cast %101 : vector<128xf32> to vector<128x1xf32>
    %103 = vector.broadcast %102 : vector<128x1xf32> to vector<128x128xf32>
    %104 = arith.cmpf oeq, %100, %103 : vector<128x128xf32>
    %c128_i32_51 = arith.constant 128 : i32
    %105 = vector.broadcast %c128_i32_51 : i32 to vector<128x128xi32>
    %106 = arith.select %104, %74, %105 : vector<128x128xi1>, vector<128x128xi32>
    %cst_52 = arith.constant dense<2147483647> : vector<128xi32>
    %107 = vector.multi_reduction <minsi>, %106, %cst_52 [1] : vector<128x128xi32> to vector<128xi32>
    %108 = vector.shape_cast %107 : vector<128xi32> to vector<128x1xi32>
    %109 = vector.shape_cast %108 : vector<128x1xi32> to vector<128x1xi32>
    %110 = vector.broadcast %109 : vector<128x1xi32> to vector<128x128xi32>
    %111 = arith.select %98, %110, %93 : vector<128x128xi1>, vector<128x128xi32>
    %112 = tpu.iota {dimensions = array<i32: 0>} : vector<128x1xi32>
    %c128_i32_53 = arith.constant 128 : i32
    %113 = arith.muli %arg0, %c128_i32_53 : i32
    %114 = vector.broadcast %113 : i32 to vector<128x1xi32>
    %115 = arith.addi %112, %114 : vector<128x1xi32>
    %c256_i32 = arith.constant 256 : i32
    %116 = vector.broadcast %c256_i32 : i32 to vector<128x1xi32>
    %117 = arith.cmpi slt, %115, %116 : vector<128x1xi32>
    %118 = arith.extui %117 : vector<128x1xi1> to vector<128x1xi32>
    %119 = arith.sitofp %118 : vector<128x1xi32> to vector<128x1xf32>
    %120 = arith.cmpi eq, %74, %111 : vector<128x128xi32>
    %cst_54 = arith.constant 1.000000e+00 : f32
    %cst_55 = arith.constant 0.000000e+00 : f32
    %121 = vector.broadcast %cst_54 : f32 to vector<128x128xf32>
    %122 = vector.broadcast %cst_55 : f32 to vector<128x128xf32>
    %123 = arith.select %120, %121, %122 : vector<128x128xi1>, vector<128x128xf32>
    %124 = vector.broadcast %119 : vector<128x1xf32> to vector<128x128xf32>
    %125 = arith.mulf %123, %124 : vector<128x128xf32>
    %c0_56 = arith.constant 0 : index
    %c0_57 = arith.constant 0 : index
    %126 = vector.load %arg7[%c0_56, %c0_57] : memref<128x32xf32, #tpu.memory_space<vmem>>, vector<128x32xf32>
    %cst_58 = arith.constant dense<0.000000e+00> : vector<128x32xf32>
    %127 = tpu.matmul %125, %126, %cst_58 {dimension_numbers = #tpu.dot_dimension_numbers<[1], [0], [0], [1], [0, 0, 1, 1], [], []>} : vector<128x128xf32>, vector<128x32xf32>, vector<128x32xf32> -> vector<128x32xf32>
    %cst_59 = arith.constant 1.000000e+00 : f32
    %128 = vector.broadcast %cst_59 : f32 to vector<1x128xf32>
    %cst_60 = arith.constant dense<0.000000e+00> : vector<1x128xf32>
    %129 = tpu.matmul %128, %125, %cst_60 {dimension_numbers = #tpu.dot_dimension_numbers<[1], [0], [0], [1], [0, 0, 1, 1], [], []>} : vector<1x128xf32>, vector<128x128xf32>, vector<1x128xf32> -> vector<1x128xf32>
    %130 = arith.subf %127, %66 : vector<128x32xf32>
    %131 = vector.broadcast %119 : vector<128x1xf32> to vector<128x32xf32>
    %132 = arith.mulf %130, %131 : vector<128x32xf32>
    %133 = arith.mulf %132, %132 : vector<128x32xf32>
    %cst_61 = arith.constant dense<0.000000e+00> : vector<32xf32>
    %134 = vector.multi_reduction <add>, %133, %cst_61 [0] : vector<128x32xf32> to vector<32xf32>
    %135 = vector.shape_cast %134 : vector<32xf32> to vector<1x32xf32>
    %cst_62 = arith.constant dense<0.000000e+00> : vector<1xf32>
    %136 = vector.multi_reduction <add>, %135, %cst_62 [1] : vector<1x32xf32> to vector<1xf32>
    %137 = vector.shape_cast %136 : vector<1xf32> to vector<1x1xf32>
    %138 = vector.shape_cast %137 : vector<1x1xf32> to vector<1x1xf32>
    %139 = vector.broadcast %138 : vector<1x1xf32> to vector<1x128xf32>
    %140 = tpu.concatenate %129, %139 in 0 : vector<1x128xf32>, vector<1x128xf32> -> vector<2x128xf32>
    %141 = vector.shape_cast %140 : vector<2x128xf32> to vector<1x2x128xf32>
    %c0_63 = arith.constant 0 : index
    %c0_64 = arith.constant 0 : index
    %c0_65 = arith.constant 0 : index
    %142 = vector.load %arg15[%c0_63, %c0_64, %c0_65] : memref<1x2x128xf32, #tpu.memory_space<vmem>>, vector<1x2x128xf32>
    tpu.vector_store %arg15[%c0_63, %c0_64, %c0_65], %141 {strides = array<i32>} : memref<1x2x128xf32, #tpu.memory_space<vmem>>, vector<1x2x128xf32>,
    %143 = arith.truncf %125 : vector<128x128xf32> to vector<128x128xbf16>
    %c0_66 = arith.constant 0 : index
    %c0_67 = arith.constant 0 : index
    %144 = vector.load %arg14[%c0_66, %c0_67] : memref<128x128xbf16, #tpu.memory_space<vmem>>, vector<128x128xbf16>
    tpu.vector_store %arg14[%c0_66, %c0_67], %143 {strides = array<i32>} : memref<128x128xbf16, #tpu.memory_space<vmem>>, vector<128x128xbf16>,
    %c0_68 = arith.constant 0 : index
    %c0_69 = arith.constant 0 : index
    %c0_70 = arith.constant 0 : index
    %145 = vector.load %arg9[%c0_68, %c0_69, %c0_70] : memref<2x32x32xf32, #tpu.memory_space<vmem>>, vector<1x32x32xf32>
    %146 = vector.shape_cast %145 : vector<1x32x32xf32> to vector<32x32xf32>
    %c0_71 = arith.constant 0 : index
    %c0_72 = arith.constant 0 : index
    %c0_73 = arith.constant 0 : index
    %147 = vector.load %arg10[%c0_71, %c0_72, %c0_73] : memref<2x1x32xf32, #tpu.memory_space<vmem>>, vector<1x1x32xf32>
    %148 = vector.shape_cast %147 : vector<1x1x32xf32> to vector<1x32xf32>
    %c0_74 = arith.constant 0 : index
    %c0_75 = arith.constant 0 : index
    %c0_76 = arith.constant 0 : index
    %149 = vector.load %arg11[%c0_74, %c0_75, %c0_76] : memref<2x1x32xf32, #tpu.memory_space<vmem>>, vector<1x1x32xf32>
    %150 = vector.shape_cast %149 : vector<1x1x32xf32> to vector<1x32xf32>
    %c0_77 = arith.constant 0 : index
    %c0_78 = arith.constant 0 : index
    %c0_79 = arith.constant 0 : index
    %151 = vector.load %arg12[%c0_77, %c0_78, %c0_79] : memref<2x1x32xf32, #tpu.memory_space<vmem>>, vector<1x1x32xf32>
    %152 = vector.shape_cast %151 : vector<1x1x32xf32> to vector<1x32xf32>
    %cst_80 = arith.constant dense<0.000000e+00> : vector<128x32xf32>
    %153 = tpu.matmul %127, %146, %cst_80 {dimension_numbers = #tpu.dot_dimension_numbers<[1], [0], [0], [1], [0, 0, 1, 1], [], []>} : vector<128x32xf32>, vector<32x32xf32>, vector<128x32xf32> -> vector<128x32xf32>
    %154 = vector.broadcast %148 : vector<1x32xf32> to vector<128x32xf32>
    %155 = arith.addf %153, %154 : vector<128x32xf32>
    %cst_81 = arith.constant 0.000000e+00 : f32
    %156 = vector.broadcast %cst_81 : f32 to vector<128x32xf32>
    %157 = arith.maximumf %155, %156 : vector<128x32xf32>
    %cst_82 = arith.constant dense<0.000000e+00> : vector<128xf32>
    %158 = vector.multi_reduction <add>, %157, %cst_82 [1] : vector<128x32xf32> to vector<128xf32>
    %159 = vector.shape_cast %158 : vector<128xf32> to vector<128x1xf32>
    %cst_83 = arith.constant 3.200000e+01 : f32
    %160 = vector.broadcast %cst_83 : f32 to vector<128x1xf32>
    %161 = arith.divf %159, %160 : vector<128x1xf32>
    %162 = vector.broadcast %161 : vector<128x1xf32> to vector<128x32xf32>
    %163 = arith.subf %157, %162 : vector<128x32xf32>
    %164 = arith.mulf %163, %163 : vector<128x32xf32>
    %cst_84 = arith.constant dense<0.000000e+00> : vector<128xf32>
    %165 = vector.multi_reduction <add>, %164, %cst_84 [1] : vector<128x32xf32> to vector<128xf32>
    %166 = vector.shape_cast %165 : vector<128xf32> to vector<128x1xf32>
    %cst_85 = arith.constant 3.200000e+01 : f32
    %167 = vector.broadcast %cst_85 : f32 to vector<128x1xf32>
    %168 = arith.divf %166, %167 : vector<128x1xf32>
    %cst_86 = arith.constant 9.99999974E-6 : f32
    %169 = vector.broadcast %cst_86 : f32 to vector<128x1xf32>
    %170 = arith.addf %168, %169 : vector<128x1xf32>
    %171 = math.rsqrt %170 : vector<128x1xf32>
    %172 = vector.broadcast %171 : vector<128x1xf32> to vector<128x32xf32>
    %173 = arith.mulf %163, %172 : vector<128x32xf32>
    %174 = vector.broadcast %150 : vector<1x32xf32> to vector<128x32xf32>
    %175 = arith.mulf %173, %174 : vector<128x32xf32>
    %176 = vector.broadcast %152 : vector<1x32xf32> to vector<128x32xf32>
    %177 = arith.addf %175, %176 : vector<128x32xf32>
    %c1_87 = arith.constant 1 : index
    %c0_88 = arith.constant 0 : index
    %c0_89 = arith.constant 0 : index
    %178 = vector.load %arg9[%c1_87, %c0_88, %c0_89] : memref<2x32x32xf32, #tpu.memory_space<vmem>>, vector<1x32x32xf32>
    %179 = vector.shape_cast %178 : vector<1x32x32xf32> to vector<32x32xf32>
    %c1_90 = arith.constant 1 : index
    %c0_91 = arith.constant 0 : index
    %c0_92 = arith.constant 0 : index
    %180 = vector.load %arg10[%c1_90, %c0_91, %c0_92] : memref<2x1x32xf32, #tpu.memory_space<vmem>>, vector<1x1x32xf32>
    %181 = vector.shape_cast %180 : vector<1x1x32xf32> to vector<1x32xf32>
    %c1_93 = arith.constant 1 : index
    %c0_94 = arith.constant 0 : index
    %c0_95 = arith.constant 0 : index
    %182 = vector.load %arg11[%c1_93, %c0_94, %c0_95] : memref<2x1x32xf32, #tpu.memory_space<vmem>>, vector<1x1x32xf32>
    %183 = vector.shape_cast %182 : vector<1x1x32xf32> to vector<1x32xf32>
    %c1_96 = arith.constant 1 : index
    %c0_97 = arith.constant 0 : index
    %c0_98 = arith.constant 0 : index
    %184 = vector.load %arg12[%c1_96, %c0_97, %c0_98] : memref<2x1x32xf32, #tpu.memory_space<vmem>>, vector<1x1x32xf32>
    %185 = vector.shape_cast %184 : vector<1x1x32xf32> to vector<1x32xf32>
    %cst_99 = arith.constant dense<0.000000e+00> : vector<128x32xf32>
    %186 = tpu.matmul %177, %179, %cst_99 {dimension_numbers = #tpu.dot_dimension_numbers<[1], [0], [0], [1], [0, 0, 1, 1], [], []>} : vector<128x32xf32>, vector<32x32xf32>, vector<128x32xf32> -> vector<128x32xf32>
    %187 = vector.broadcast %181 : vector<1x32xf32> to vector<128x32xf32>
    %188 = arith.addf %186, %187 : vector<128x32xf32>
    %cst_100 = arith.constant 0.000000e+00 : f32
    %189 = vector.broadcast %cst_100 : f32 to vector<128x32xf32>
    %190 = arith.maximumf %188, %189 : vector<128x32xf32>
    %cst_101 = arith.constant dense<0.000000e+00> : vector<128xf32>
    %191 = vector.multi_reduction <add>, %190, %cst_101 [1] : vector<128x32xf32> to vector<128xf32>
    %192 = vector.shape_cast %191 : vector<128xf32> to vector<128x1xf32>
    %cst_102 = arith.constant 3.200000e+01 : f32
    %193 = vector.broadcast %cst_102 : f32 to vector<128x1xf32>
    %194 = arith.divf %192, %193 : vector<128x1xf32>
    %195 = vector.broadcast %194 : vector<128x1xf32> to vector<128x32xf32>
    %196 = arith.subf %190, %195 : vector<128x32xf32>
    %197 = arith.mulf %196, %196 : vector<128x32xf32>
    %cst_103 = arith.constant dense<0.000000e+00> : vector<128xf32>
    %198 = vector.multi_reduction <add>, %197, %cst_103 [1] : vector<128x32xf32> to vector<128xf32>
    %199 = vector.shape_cast %198 : vector<128xf32> to vector<128x1xf32>
    %cst_104 = arith.constant 3.200000e+01 : f32
    %200 = vector.broadcast %cst_104 : f32 to vector<128x1xf32>
    %201 = arith.divf %199, %200 : vector<128x1xf32>
    %cst_105 = arith.constant 9.99999974E-6 : f32
    %202 = vector.broadcast %cst_105 : f32 to vector<128x1xf32>
    %203 = arith.addf %201, %202 : vector<128x1xf32>
    %204 = math.rsqrt %203 : vector<128x1xf32>
    %205 = vector.broadcast %204 : vector<128x1xf32> to vector<128x32xf32>
    %206 = arith.mulf %196, %205 : vector<128x32xf32>
    %207 = vector.broadcast %183 : vector<1x32xf32> to vector<128x32xf32>
    %208 = arith.mulf %206, %207 : vector<128x32xf32>
    %209 = vector.broadcast %185 : vector<1x32xf32> to vector<128x32xf32>
    %210 = arith.addf %208, %209 : vector<128x32xf32>
    %c0_106 = arith.constant 0 : index
    %c0_107 = arith.constant 0 : index
    %211 = vector.load %arg13[%c0_106, %c0_107] : memref<128x32xf32, #tpu.memory_space<vmem>>, vector<128x32xf32>
    tpu.vector_store %arg13[%c0_106, %c0_107], %210 {strides = array<i32>} : memref<128x32xf32, #tpu.memory_space<vmem>>, vector<128x32xf32>,
    return
  }
  func.func @transform_0(%arg0: i32) -> (i32, i32) {
    %c0_i32 = arith.constant 0 : i32
    %c0_i32_0 = arith.constant 0 : i32
    return %arg0, %c0_i32 : i32, i32
  }
  func.func @transform_1(%arg0: i32) -> (i32, i32, i32) {
    %c0_i32 = arith.constant 0 : i32
    %c0_i32_0 = arith.constant 0 : i32
    %c0_i32_1 = arith.constant 0 : i32
    %c0_i32_2 = arith.constant 0 : i32
    return %c0_i32, %c0_i32_0, %c0_i32_1 : i32, i32, i32
  }
  func.func @transform_2(%arg0: i32) -> (i32, i32, i32) {
    %c0_i32 = arith.constant 0 : i32
    %c0_i32_0 = arith.constant 0 : i32
    %c0_i32_1 = arith.constant 0 : i32
    %c0_i32_2 = arith.constant 0 : i32
    return %c0_i32, %c0_i32_0, %c0_i32_1 : i32, i32, i32
  }
  func.func @transform_3(%arg0: i32) -> (i32, i32, i32) {
    %c0_i32 = arith.constant 0 : i32
    %c0_i32_0 = arith.constant 0 : i32
    %c0_i32_1 = arith.constant 0 : i32
    %c0_i32_2 = arith.constant 0 : i32
    return %c0_i32, %c0_i32_0, %c0_i32_1 : i32, i32, i32
  }
  func.func @transform_4(%arg0: i32) -> (i32, i32, i32) {
    %c0_i32 = arith.constant 0 : i32
    %c0_i32_0 = arith.constant 0 : i32
    %c0_i32_1 = arith.constant 0 : i32
    %c0_i32_2 = arith.constant 0 : i32
    return %c0_i32, %c0_i32_0, %c0_i32_1 : i32, i32, i32
  }
  func.func @transform_5(%arg0: i32) -> (i32, i32) {
    %c0_i32 = arith.constant 0 : i32
    %c0_i32_0 = arith.constant 0 : i32
    %c0_i32_1 = arith.constant 0 : i32
    return %c0_i32, %c0_i32_0 : i32, i32
  }
  func.func @transform_6(%arg0: i32) -> (i32, i32) {
    %c0_i32 = arith.constant 0 : i32
    %c0_i32_0 = arith.constant 0 : i32
    %c0_i32_1 = arith.constant 0 : i32
    return %c0_i32, %c0_i32_0 : i32, i32
  }
  func.func @transform_7(%arg0: i32) -> (i32, i32) {
    %c0_i32 = arith.constant 0 : i32
    %c0_i32_0 = arith.constant 0 : i32
    %c0_i32_1 = arith.constant 0 : i32
    return %c0_i32, %c0_i32_0 : i32, i32
  }
  func.func @transform_8(%arg0: i32) -> (i32, i32, i32) {
    %c0_i32 = arith.constant 0 : i32
    %c0_i32_0 = arith.constant 0 : i32
    %c0_i32_1 = arith.constant 0 : i32
    %c0_i32_2 = arith.constant 0 : i32
    return %c0_i32, %c0_i32_0, %c0_i32_1 : i32, i32, i32
  }
  func.func @transform_9(%arg0: i32) -> (i32, i32, i32) {
    %c0_i32 = arith.constant 0 : i32
    %c0_i32_0 = arith.constant 0 : i32
    %c0_i32_1 = arith.constant 0 : i32
    %c0_i32_2 = arith.constant 0 : i32
    return %c0_i32, %c0_i32_0, %c0_i32_1 : i32, i32, i32
  }
  func.func @transform_10(%arg0: i32) -> (i32, i32, i32) {
    %c0_i32 = arith.constant 0 : i32
    %c0_i32_0 = arith.constant 0 : i32
    %c0_i32_1 = arith.constant 0 : i32
    %c0_i32_2 = arith.constant 0 : i32
    return %c0_i32, %c0_i32_0, %c0_i32_1 : i32, i32, i32
  }
  func.func @transform_11(%arg0: i32) -> (i32, i32, i32) {
    %c0_i32 = arith.constant 0 : i32
    %c0_i32_0 = arith.constant 0 : i32
    %c0_i32_1 = arith.constant 0 : i32
    %c0_i32_2 = arith.constant 0 : i32
    return %c0_i32, %c0_i32_0, %c0_i32_1 : i32, i32, i32
  }
  func.func @transform_12(%arg0: i32) -> (i32, i32) {
    %c0_i32 = arith.constant 0 : i32
    %c0_i32_0 = arith.constant 0 : i32
    return %arg0, %c0_i32 : i32, i32
  }
  func.func @transform_13(%arg0: i32) -> (i32, i32) {
    %c0_i32 = arith.constant 0 : i32
    %c0_i32_0 = arith.constant 0 : i32
    return %arg0, %c0_i32 : i32, i32
  }
  func.func @transform_14(%arg0: i32) -> (i32, i32, i32) {
    %c0_i32 = arith.constant 0 : i32
    %c0_i32_0 = arith.constant 0 : i32
    %c0_i32_1 = arith.constant 0 : i32
    return %arg0, %c0_i32, %c0_i32_0 : i32, i32, i32
  }
}

</mosaic_0001>

<bundles_post_ra>
// kernel: tile.8
= control target key start
LH: loop header
LB: loop body
LE: loop exit
PB: predicated region body
PF: predicated region fallthrough
CT: control target
= control target key end

     0   :  { %s22_s0 = inlined_call_operand.vmem [shape: f32[64], index: 0, kind: input, shape index: {}]   ;;  %s23_s1 = inlined_call_operand.vmem [shape: f32[2,64], index: 1, kind: output, shape index: {}]  }
   0x1   :  { %v4_v0 = vld [vmem:[%s22_s0] ss:$0 sm:$0xff] }
   0x2   :  { %5 = vst [vmem:[%s23_s1] sm:$0x3] %v4_v0 }

// kernel: tile.9
= control target key start
LH: loop header
LB: loop body
LE: loop exit
PB: predicated region body
PF: predicated region fallthrough
CT: control target
= control target key end

     0   :  { %vm7_vm0 = vcmask 523264   ;;  %vm13_vm1 = vcmask 1048064   ;;  %s39_s0 = inlined_call_operand.vmem [shape: f32[2,64], index: 0, kind: input, shape index: {}]   ;;  %s40_s1 = inlined_call_operand.vmem [shape: f32[1,128], index: 1, kind: output, shape index: {}]  }
   0x1   :  { %v4_v0 = vld [vmem:[%s39_s0] sm:$0x3]  ;;  %s22_s0 = smov 64  }
   0x2   :  { %5 = vst [vmem:[#allocation1] sm:$0x3] %v4_v0 }
   0x9   :  { %v10_v1 = vld [vmem:[#allocation1 + $0x1] sm:$0x1]   ;;  %v6_v2 = vld [vmem:[#allocation1] sm:$0x1]  }
   0xa   :  { %11 = vrot.lane.b32.xlu0 %v10_v1, %s22_s0  ;;  %8 = vst.msk [vmem:[#allocation0] sm:$0x1] %vm7_vm0, %v6_v2  }
  0x7c   :  { %v12_v3 = vpop.permute.xlu0 %11  }
  0x7d   :  { %14 = vst.msk [vmem:[#allocation0] sm:$0x1] %vm13_vm1, %v12_v3  }
  0x84   :  { %v18_v4 = vld [vmem:[#allocation0] sm:$0x1] }
  0x85   :  { %20 = vst [vmem:[%s40_s1] sm:$0x1] %v18_v4 }

// kernel: vqlayer_forward.1
= control target key start
LH: loop header
LB: loop body
LE: loop exit
PB: predicated region body
PF: predicated region fallthrough
CT: control target
= control target key end

     0   :  { %s4915_s29 = smov 0   ;;  %s7350_s0 = inlined_call_operand.vmem [shape: f32[256,32], index: 0, kind: input, shape index: {}]   ;;  %s7351_s1 = inlined_call_operand.vmem [shape: f32[2,32,32], index: 1, kind: input, shape index: {}]   ;;  %s7352_s2 = inlined_call_operand.vmem [shape: f32[2,1,32], index: 2, kind: input, shape index: {}]   ;;  %s7353_s3 = inlined_call_operand.vmem [shape: f32[2,1,32], index: 3, kind: input, shape index: {}]   ;;  %s7354_s4 = inlined_call_operand.vmem [shape: f32[2,1,32], index: 4, kind: input, shape index: {}]   ;;  %s7355_s5 = inlined_call_operand.vmem [shape: f32[32,128], index: 5, kind: input, shape index: {}]   ;;  %s7356_s6 = inlined_call_operand.vmem [shape: f32[128,32], index: 6, kind: input, shape index: {}]   ;;  %s7357_s7 = inlined_call_operand.vmem [shape: f32[1,128], index: 7, kind: input, shape index: {}]   ;;  %s7358_s8 = inlined_call_operand.vmem [shape: f32[2,32,32], index: 8, kind: input, shape index: {}]   ;;  %s7359_s9 = inlined_call_operand.vmem [shape: f32[2,1,32], index: 9, kind: input, shape index: {}]   ;;  %s7360_s10 = inlined_call_operand.vmem [shape: f32[2,1,32], index: 10, kind: input, shape index: {}]   ;;  %s7361_s11 = inlined_call_operand.vmem [shape: f32[2,1,32], index: 11, kind: input, shape index: {}]   ;;  %s7362_s12 = inlined_call_operand.vmem [shape: f32[256,32], index: 12, kind: output, shape index: {0}]   ;;  %s7363_s13 = inlined_call_operand.vmem [shape: bf16[256,128], index: 13, kind: output, shape index: {1}]   ;;  %s7364_s14 = inlined_call_operand.vmem [shape: f32[2,2,128], index: 14, kind: output, shape index: {2}]  }
   0x1 LB: > { %s4921_s30 = sadd.s32 4294967295, %s4834_s29   ;;  %p3975_p0 = scmp.ge.s32.totalorder %s4834_s29, 1  ;;  %s4834_s29 = sphi %s4915_s29, %s25_s29  }
   0x2   : > { %p418_p1 = scmp.lt.s32.totalorder %s4834_s29, 3 }
   0x4   : > { %p419_p2 = pnand %p3975_p0, %p418_p1 }
   0x6   : > { %422 = sbr.rel (%p419_p2) target bundleno = 3090 (0xc12), region = 68 }
   0xd   : > { %v511_v0 = vld [vmem:[%s7351_s1] sm:$0xff]  ;;  %v512_v1 = vld [vmem:[%s7351_s1 + $0x8] sm:$0xff]  ;;  %v513_v2 = vld [vmem:[%s7351_s1 + $0x10] sm:$0xff]  ;;  %s3976_s21 = sshll.u32 %s4921_s30, 4  ;;  %vm524_vm0 = vcmask 261120   ;;  %s4045_s20 = sshll.u32 %s4921_s30, 7 }
   0xe   : > { %v4588_v3 = vpack.c.bf16 %v512_v1, %v511_v0  ;;  %v514_v4 = vld [vmem:[%s7351_s1 + $0x18] sm:$0xff]  ;;  %p474_p3 = scmp.lt.s32.totalorder %s3976_s21, 31  ;;  %v4983_v22 = vld [vmem:[%s7352_s2] ss:$0 sm:$0xff]  ;;  %p491_p4 = scmp.lt.s32.totalorder %s4921_s30, 1 }
   0xf   : > { %v4592_v5 = vpack.c.bf16 %v514_v4, %v513_v2 }
  0x10   : > { %4589 = vmatprep.subr.bf16.mxu0 %v4588_v3  ;;  %s7456_s21 = smov (!%p474_p3, %s3976_s21), 31  ;;  %s7458_s30 = smov (!%p491_p4, %s4921_s30), 1 }
  0x11   : > { %4591 = vmatpush3.bf16.msra.mxu0 %v4588_v3  ;;  %s3977_s24 = sshll.u32 %s7456_s21, 3  ;;  %s3981_s22 = sshll.u32 %s7456_s21, 2 }
  0x12   : > { %4593 = vmatprep.subr.bf16.mxu0 %v4592_v5  ;;  %s4946_s27 = scalar_lea.vmem %s7350_s0, %s3977_s24  ;;  %s6400_s16 = scalar_lea.vmem %s7363_s13, %s3981_s22 }
  0x13   : > { %v495_v6 = vld [vmem:[%s4946_s27] sm:$0xff]  ;;  %v496_v7 = vld [vmem:[%s4946_s27 + $0x8] sm:$0xff]  ;;  %v497_v8 = vld [vmem:[%s4946_s27 + $0x10] sm:$0xff]  ;;  %s7262_s15 = scalar_lea.vmem %s7362_s12, %s3977_s24  ;;  %s3982_s21 = sshll.u32 %s7458_s30, 1 }
  0x14   : > { %4345 = vmatprep.mubr.msk.f32.mxu0 %vm524_vm0, %v495_v6  ;;  %v498_v9 = vld [vmem:[%s4946_s27 + $0x18] sm:$0xff]  ;;  %v499_v10 = vld [vmem:[%s4946_s27 + $0x20] sm:$0xff]  ;;  %v500_v11 = vld [vmem:[%s4946_s27 + $0x28] sm:$0xff]  ;;  %s494_s17 = scalar_lea.vmem %s7364_s14, %s3982_s21 }
  0x15   : > { %4595 = vmatpush3.bf16.msra.mxu0 %v4592_v5  ;;  %v501_v12 = vld [vmem:[%s4946_s27 + $0x30] sm:$0xff]  ;;  %v502_v13 = vld [vmem:[%s4946_s27 + $0x38] sm:$0xff]  ;;  %v503_v14 = vld [vmem:[%s4946_s27 + $0x40] sm:$0xff] }
  0x16   : > { %v504_v15 = vld [vmem:[%s4946_s27 + $0x48] sm:$0xff]  ;;  %v505_v16 = vld [vmem:[%s4946_s27 + $0x50] sm:$0xff]  ;;  %v506_v17 = vld [vmem:[%s4946_s27 + $0x58] sm:$0xff] }
  0x17   : > { %v507_v18 = vld [vmem:[%s4946_s27 + $0x60] sm:$0xff]  ;;  %v508_v19 = vld [vmem:[%s4946_s27 + $0x68] sm:$0xff]  ;;  %v509_v20 = vld [vmem:[%s4946_s27 + $0x70] sm:$0xff] }
  0x18   : > { %4346 = vmatmul.mubr.msk.f32.vlgmr.msra.gmra.mrb[0].mxu0 %vm524_vm0, %v496_v7  ;;  %v510_v21 = vld [vmem:[%s4946_s27 + $0x78] sm:$0xff] }
  0x19   : > { %4348 = vmatprep.mubr.msk.f32.mxu0 %vm524_vm0, %v497_v8 }
  0x1c   : > { %4349 = vmatmul.mubr.msk.f32.gmra.mrb[2].mxu0 %vm524_vm0, %v498_v9 }
  0x1d   : > { %4351 = vmatprep.mubr.msk.f32.mxu0 %vm524_vm0, %v499_v10 }
  0x20   : > { %4352 = vmatmul.mubr.msk.f32.gmra.mrb[4].mxu0 %vm524_vm0, %v500_v11 }
  0x21   : > { %4354 = vmatprep.mubr.msk.f32.mxu0 %vm524_vm0, %v501_v12 }
  0x24   : > { %4355 = vmatmul.mubr.msk.f32.gmra.mrb[6].mxu0 %vm524_vm0, %v502_v13 }
  0x25   : > { %4357 = vmatprep.mubr.msk.f32.mxu0 %vm524_vm0, %v503_v14 }
  0x28   : > { %4358 = vmatmul.mubr.msk.f32.gmra.mrb[8].mxu0 %vm524_vm0, %v504_v15 }
  0x29   : > { %4360 = vmatprep.mubr.msk.f32.mxu0 %vm524_vm0, %v505_v16 }
  0x2c   : > { %4361 = vmatmul.mubr.msk.f32.gmra.mrb[10].mxu0 %vm524_vm0, %v506_v17 }
  0x2d   : > { %4363 = vmatprep.mubr.msk.f32.mxu0 %vm524_vm0, %v507_v18 }
  0x30   : > { %4364 = vmatmul.mubr.msk.f32.gmra.mrb[12].mxu0 %vm524_vm0, %v508_v19 }
  0x31   : > { %4366 = vmatprep.mubr.msk.f32.mxu0 %vm524_vm0, %v509_v20 }
  0x34   : > { %4367 = vmatmul.mubr.msk.f32.gmra.mrb[14].mxu0 %vm524_vm0, %v510_v21 }
  0xeb   : > { %v4347_v23 = vpop.f32.mrb[0].mxu0 }
  0xec   : > { %v639_v24 = vpop.f32.mrb[1].mxu0  ;;  %v4986_v25 = vadd.f32 %v4347_v23, %v4983_v22 }
  0xed   : > { %v4989_v26 = vadd.f32 %v4983_v22, %v639_v24 }
  0xee   : > { %v719_v31 = vmax.f32 %v4986_v25, 0.0 }
  0xef   : > { %v718_v27 = vmax.f32 %v4989_v26, 0.0  ;;  %v4350_v28 = vpop.f32.mrb[2].mxu0 }
  0xf0   : > { %v4993_v29 = vadd.f32 %v4350_v28, %v4983_v22  ;;  %v649_v30 = vpop.f32.mrb[3].mxu0  ;;  %v737_v41 = vsel %vm524_vm0, %v719_v31, 0.0 }
  0xf1   : > { %v4997_v32 = vadd.f32 %v4983_v22, %v649_v30  ;;  %v734_v33 = vsel %vm524_vm0, %v718_v27, 0.0 }
  0xf2   : > { %735 = vadd.xlane.f32.xlu0 %v734_v33  ;;  %v721_v34 = vmax.f32 %v4993_v29, 0.0 }
  0xf3   : > { %v720_v35 = vmax.f32 %v4997_v32, 0.0  ;;  %v4353_v36 = vpop.f32.mrb[4].mxu0 }
  0xf4   : > { %v5005_v37 = vadd.f32 %v4353_v36, %v4983_v22  ;;  %v659_v38 = vpop.f32.mrb[5].mxu0  ;;  %v743_v45 = vsel %vm524_vm0, %v721_v34, 0.0 }
  0xf5   : > { %v5008_v39 = vadd.f32 %v4983_v22, %v659_v38  ;;  %v740_v40 = vsel %vm524_vm0, %v720_v35, 0.0 }
  0xf6   : > { %741 = vadd.xlane.f32.xlu1 %v740_v40  ;;  %738 = vadd.xlane.f32.xlu0 %v737_v41  ;;  %v723_v42 = vmax.f32 %v5005_v37, 0.0 }
  0xf7   : > { %v722_v43 = vmax.f32 %v5008_v39, 0.0  ;;  %v4356_v44 = vpop.f32.mrb[6].mxu0 }
  0xf8   : > { %v5022_v46 = vadd.f32 %v4356_v44, %v4983_v22  ;;  %v669_v47 = vpop.f32.mrb[7].mxu0  ;;  %v749_v53 = vsel %vm524_vm0, %v723_v42, 0.0 }
  0xf9   : > { %v5025_v48 = vadd.f32 %v4983_v22, %v669_v47  ;;  %v746_v49 = vsel %vm524_vm0, %v722_v43, 0.0 }
  0xfa   : > { %744 = vadd.xlane.f32.xlu1 %v743_v45  ;;  %747 = vadd.xlane.f32.xlu0 %v746_v49  ;;  %v725_v50 = vmax.f32 %v5022_v46, 0.0 }
  0xfb   : > { %v724_v51 = vmax.f32 %v5025_v48, 0.0  ;;  %v4359_v52 = vpop.f32.mrb[8].mxu0 }
  0xfc   : > { %v5036_v54 = vadd.f32 %v4359_v52, %v4983_v22  ;;  %v679_v55 = vpop.f32.mrb[9].mxu0  ;;  %v755_v61 = vsel %vm524_vm0, %v725_v50, 0.0 }
  0xfd   : > { %v5039_v56 = vadd.f32 %v4983_v22, %v679_v55  ;;  %v752_v57 = vsel %vm524_vm0, %v724_v51, 0.0 }
  0xfe   : > { %750 = vadd.xlane.f32.xlu1 %v749_v53  ;;  %753 = vadd.xlane.f32.xlu0 %v752_v57  ;;  %v727_v58 = vmax.f32 %v5036_v54, 0.0 }
  0xff   : > { %v726_v59 = vmax.f32 %v5039_v56, 0.0  ;;  %v4362_v60 = vpop.f32.mrb[10].mxu0 }
 0x100   : > { %v5050_v62 = vadd.f32 %v4362_v60, %v4983_v22  ;;  %v689_v63 = vpop.f32.mrb[11].mxu0  ;;  %v761_v5 = vsel %vm524_vm0, %v727_v58, 0.0 }
 0x101   : > { %v5053_v0 = vadd.f32 %v4983_v22, %v689_v63  ;;  %v758_v1 = vsel %vm524_vm0, %v726_v59, 0.0 }
 0x102   : > { %756 = vadd.xlane.f32.xlu1 %v755_v61  ;;  %759 = vadd.xlane.f32.xlu0 %v758_v1  ;;  %v729_v2 = vmax.f32 %v5050_v62, 0.0 }
 0x103   : > { %v728_v3 = vmax.f32 %v5053_v0, 0.0  ;;  %v4365_v4 = vpop.f32.mrb[12].mxu0 }
 0x104   : > { %v5064_v6 = vadd.f32 %v4365_v4, %v4983_v22  ;;  %v699_v7 = vpop.f32.mrb[13].mxu0  ;;  %v767_v13 = vsel %vm524_vm0, %v729_v2, 0.0 }
 0x105   : > { %v5067_v8 = vadd.f32 %v4983_v22, %v699_v7  ;;  %v764_v9 = vsel %vm524_vm0, %v728_v3, 0.0 }
 0x106   : > { %762 = vadd.xlane.f32.xlu1 %v761_v5  ;;  %765 = vadd.xlane.f32.xlu0 %v764_v9  ;;  %v731_v10 = vmax.f32 %v5064_v6, 0.0 }
 0x107   : > { %v730_v11 = vmax.f32 %v5067_v8, 0.0  ;;  %v4368_v12 = vpop.f32.mrb[14].mxu0 }
 0x108   : > { %v5078_v14 = vadd.f32 %v4368_v12, %v4983_v22  ;;  %v709_v15 = vpop.f32.mrb[15].mxu0  ;;  %v773_v20 = vsel %vm524_vm0, %v731_v10, 0.0 }
 0x109   : > { %v5081_v16 = vadd.f32 %v4983_v22, %v709_v15  ;;  %v770_v17 = vsel %vm524_vm0, %v730_v11, 0.0 }
 0x10a   : > { %768 = vadd.xlane.f32.xlu1 %v767_v13  ;;  %771 = vadd.xlane.f32.xlu0 %v770_v17  ;;  %v733_v18 = vmax.f32 %v5078_v14, 0.0 }
 0x10b   : > { %v732_v19 = vmax.f32 %v5081_v16, 0.0 }
 0x10c   : > { %v779_v22 = vsel %vm524_vm0, %v733_v18, 0.0 }
 0x10d   : > { %v776_v21 = vsel %vm524_vm0, %v732_v19, 0.0 }
 0x10e   : > { %774 = vadd.xlane.f32.xlu1 %v773_v20  ;;  %777 = vadd.xlane.f32.xlu0 %v776_v21 }
 0x112   : > { %780 = vadd.xlane.f32.xlu1 %v779_v22 }
 0x17f   : > { %v736_v23 = vpop.xlane.xlu0 %735 }
 0x180   : > { %v783_v24 = vmul.f32 0.03125, %v736_v23 }
 0x182   : > { %v5099_v28 = vsub.f32 %v718_v27, %v783_v24 }
 0x183   : > { %v742_v30 = vpop.xlane.xlu1 %741  ;;  %v739_v33 = vpop.xlane.xlu0 %738 }
 0x184   : > { %v785_v36 = vmul.f32 0.03125, %v742_v30  ;;  %v784_v38 = vmul.f32 0.03125, %v739_v33  ;;  %v815_v40 = vmul.f32 %v5099_v28, %v5099_v28 }
 0x186   : > { %v5105_v41 = vsub.f32 %v720_v35, %v785_v36  ;;  %v5109_v44 = vsub.f32 %v719_v31, %v784_v38  ;;  %v831_v45 = vsel %vm524_vm0, %v815_v40, 0.0 }
 0x187   : > { %v745_v26 = vpop.xlane.xlu1 %744  ;;  %832 = vadd.xlane.f32.xlu0 %v831_v45  ;;  %v748_v27 = vpop.xlane.xlu0 %747 }
 0x188   : > { %v786_v47 = vmul.f32 0.03125, %v745_v26  ;;  %v787_v49 = vmul.f32 0.03125, %v748_v27  ;;  %v817_v52 = vmul.f32 %v5105_v41, %v5105_v41  ;;  %v816_v53 = vmul.f32 %v5109_v44, %v5109_v44 }
 0x18a   : > { %v5118_v32 = vsub.f32 %v721_v34, %v786_v47  ;;  %v5122_v25 = vsub.f32 %v722_v43, %v787_v49  ;;  %v837_v31 = vsel %vm524_vm0, %v817_v52, 0.0  ;;  %v834_v35 = vsel %vm524_vm0, %v816_v53, 0.0 }
 0x18b   : > { %v751_v55 = vpop.xlane.xlu1 %750  ;;  %838 = vadd.xlane.f32.xlu0 %v837_v31  ;;  %835 = vadd.xlane.f32.xlu1 %v834_v35  ;;  %v754_v57 = vpop.xlane.xlu0 %753 }
 0x18c   : > { %v788_v60 = vmul.f32 0.03125, %v751_v55  ;;  %v789_v61 = vmul.f32 0.03125, %v754_v57  ;;  %v818_v63 = vmul.f32 %v5118_v32, %v5118_v32  ;;  %v819_v29 = vmul.f32 %v5122_v25, %v5122_v25  ;;  %v4002_v57 = vld [vmem:[%s7351_s1 + $0x20] sm:$0xff] }
 0x18e   : > { %v5132_v34 = vsub.f32 %v723_v42, %v788_v60  ;;  %v5136_v39 = vsub.f32 %v724_v51, %v789_v61  ;;  %v840_v43 = vsel %vm524_vm0, %v818_v63, 0.0  ;;  %v843_v1 = vsel %vm524_vm0, %v819_v29, 0.0  ;;  %v4003_v60 = vld [vmem:[%s7351_s1 + $0x28] sm:$0xff]  ;;  %v4004_v61 = vld [vmem:[%s7351_s1 + $0x30] sm:$0xff]  ;;  %v4005_v63 = vld [vmem:[%s7351_s1 + $0x38] sm:$0xff] }
 0x18f   : > { %v757_v4 = vpop.xlane.xlu1 %756  ;;  %841 = vadd.xlane.f32.xlu1 %v840_v43  ;;  %844 = vadd.xlane.f32.xlu0 %v843_v1  ;;  %v760_v5 = vpop.xlane.xlu0 %759  ;;  %v4596_v14 = vpack.c.bf16 %v4003_v60, %v4002_v57  ;;  %v4600_v29 = vpack.c.bf16 %v4005_v63, %v4004_v61 }
 0x190   : > { %v790_v7 = vmul.f32 0.03125, %v757_v4  ;;  %v791_v9 = vmul.f32 0.03125, %v760_v5  ;;  %v820_v12 = vmul.f32 %v5132_v34, %v5132_v34  ;;  %v821_v37 = vmul.f32 %v5136_v39, %v5136_v39 }
 0x191   : > { %4597 = vmatprep.subr.bf16.mxu1 %v4596_v14 }
 0x192   : > { %v5146_v42 = vsub.f32 %v725_v50, %v790_v7  ;;  %v5150_v48 = vsub.f32 %v726_v59, %v791_v9  ;;  %v846_v51 = vsel %vm524_vm0, %v820_v12, 0.0  ;;  %v849_v13 = vsel %vm524_vm0, %v821_v37, 0.0  ;;  %4599 = vmatpush3.bf16.msra.mxu1 %v4596_v14 }
 0x193   : > { %v763_v15 = vpop.xlane.xlu1 %762  ;;  %847 = vadd.xlane.f32.xlu1 %v846_v51  ;;  %850 = vadd.xlane.f32.xlu0 %v849_v13  ;;  %v766_v17 = vpop.xlane.xlu0 %765 }
 0x194   : > { %v792_v20 = vmul.f32 0.03125, %v763_v15  ;;  %v793_v21 = vmul.f32 0.03125, %v766_v17  ;;  %v822_v22 = vmul.f32 %v5146_v42, %v5146_v42  ;;  %v823_v46 = vmul.f32 %v5150_v48, %v5150_v48  ;;  %4601 = vmatprep.subr.bf16.mxu1 %v4600_v29 }
 0x196   : > { %v5160_v50 = vsub.f32 %v727_v58, %v792_v20  ;;  %v5164_v56 = vsub.f32 %v728_v3, %v793_v21  ;;  %v852_v59 = vsel %vm524_vm0, %v822_v22, 0.0  ;;  %v855_v23 = vsel %vm524_vm0, %v823_v46, 0.0  ;;  %4603 = vmatpush3.bf16.msra.mxu1 %v4600_v29 }
 0x197   : > { %v769_v24 = vpop.xlane.xlu1 %768  ;;  %853 = vadd.xlane.f32.xlu1 %v852_v59  ;;  %856 = vadd.xlane.f32.xlu0 %v855_v23  ;;  %v772_v30 = vpop.xlane.xlu0 %771 }
 0x198   : > { %v794_v33 = vmul.f32 0.03125, %v769_v24  ;;  %v795_v36 = vmul.f32 0.03125, %v772_v30  ;;  %v824_v38 = vmul.f32 %v5160_v50, %v5160_v50  ;;  %v825_v54 = vmul.f32 %v5164_v56, %v5164_v56 }
 0x19a   : > { %v5174_v58 = vsub.f32 %v729_v2, %v794_v33  ;;  %v5178_v0 = vsub.f32 %v730_v11, %v795_v36  ;;  %v858_v3 = vsel %vm524_vm0, %v824_v38, 0.0  ;;  %v861_v40 = vsel %vm524_vm0, %v825_v54, 0.0  ;;  %v5224_v38 = vld [vmem:[%s7353_s3] ss:$0 sm:$0xff] }
 0x19b   : > { %v775_v45 = vpop.xlane.xlu1 %774  ;;  %859 = vadd.xlane.f32.xlu1 %v858_v3  ;;  %862 = vadd.xlane.f32.xlu0 %v861_v40  ;;  %v778_v26 = vpop.xlane.xlu0 %777 }
 0x19c   : > { %v796_v27 = vmul.f32 0.03125, %v775_v45  ;;  %v797_v47 = vmul.f32 0.03125, %v778_v26  ;;  %v826_v49 = vmul.f32 %v5174_v58, %v5174_v58  ;;  %v827_v62 = vmul.f32 %v5178_v0, %v5178_v0 }
 0x19e   : > { %v5188_v2 = vsub.f32 %v731_v10, %v796_v27  ;;  %v5192_v8 = vsub.f32 %v732_v19, %v797_v47  ;;  %v864_v11 = vsel %vm524_vm0, %v826_v49, 0.0  ;;  %v867_v52 = vsel %vm524_vm0, %v827_v62, 0.0  ;;  %v5230_v27 = vld [vmem:[%s7354_s4] ss:$0 sm:$0xff] }
 0x19f   : > { %v781_v53 = vpop.xlane.xlu1 %780  ;;  %865 = vadd.xlane.f32.xlu1 %v864_v11  ;;  %868 = vadd.xlane.f32.xlu0 %v867_v52 }
 0x1a0   : > { %v798_v31 = vmul.f32 0.03125, %v781_v53  ;;  %v828_v35 = vmul.f32 %v5188_v2, %v5188_v2  ;;  %v829_v6 = vmul.f32 %v5192_v8, %v5192_v8 }
 0x1a2   : > { %v5202_v10 = vsub.f32 %v733_v18, %v798_v31  ;;  %v870_v16 = vsel %vm524_vm0, %v828_v35, 0.0  ;;  %v873_v19 = vsel %vm524_vm0, %v829_v6, 0.0 }
 0x1a3   : > { %871 = vadd.xlane.f32.xlu1 %v870_v16  ;;  %874 = vadd.xlane.f32.xlu0 %v873_v19 }
 0x1a4   : > { %v830_v55 = vmul.f32 %v5202_v10, %v5202_v10 }
 0x1a6   : > { %v876_v18 = vsel %vm524_vm0, %v830_v55, 0.0 }
 0x1a7   : > { %877 = vadd.xlane.f32.xlu1 %v876_v18 }
 0x214   : > { %v833_v43 = vpop.xlane.xlu0 %832 }
 0x215   : > { %v879_v1 = vmul.f32 0.03125, %v833_v43 }
 0x217   : > { %v895_v4 = vadd.f32 1e-05, %v879_v1 }
 0x218   : > { %v836_v5 = vpop.xlane.xlu1 %835  ;;  %v839_v7 = vpop.xlane.xlu0 %838 }
 0x219   : > { %4700 = vrsqrt.f32 %v895_v4  ;;  %v880_v9 = vmul.f32 0.03125, %v836_v5  ;;  %v881_v12 = vmul.f32 0.03125, %v839_v7 }
 0x21b   : > { %v896_v37 = vadd.f32 1e-05, %v880_v9  ;;  %v897_v51 = vadd.f32 1e-05, %v881_v12 }
 0x21c   : > { %v842_v13 = vpop.xlane.xlu1 %841  ;;  %v845_v15 = vpop.xlane.xlu0 %844 }
 0x21d   : > { %4702 = vrsqrt.f32 %v896_v37  ;;  %v882_v17 = vmul.f32 0.03125, %v842_v13  ;;  %v883_v20 = vmul.f32 0.03125, %v845_v15 }
 0x21e   : > { %4704 = vrsqrt.f32 %v897_v51 }
 0x21f   : > { %v898_v21 = vadd.f32 1e-05, %v882_v17  ;;  %v899_v22 = vadd.f32 1e-05, %v883_v20 }
 0x220   : > { %v848_v46 = vpop.xlane.xlu1 %847  ;;  %v851_v59 = vpop.xlane.xlu0 %850 }
 0x221   : > { %4706 = vrsqrt.f32 %v898_v21  ;;  %v884_v23 = vmul.f32 0.03125, %v848_v46  ;;  %v885_v24 = vmul.f32 0.03125, %v851_v59 }
 0x222   : > { %4708 = vrsqrt.f32 %v899_v22 }
 0x223   : > { %v4701_v30 = vpop.eup %4700  ;;  %v900_v33 = vadd.f32 1e-05, %v884_v23  ;;  %v901_v36 = vadd.f32 1e-05, %v885_v24 }
 0x224   : > { %v854_v54 = vpop.xlane.xlu1 %853  ;;  %v857_v3 = vpop.xlane.xlu0 %856  ;;  %v927_v40 = vmul.f32 %v4701_v30, %v5099_v28 }
 0x225   : > { %4710 = vrsqrt.f32 %v900_v33  ;;  %v886_v45 = vmul.f32 0.03125, %v854_v54  ;;  %v887_v26 = vmul.f32 0.03125, %v857_v3 }
 0x226   : > { %4712 = vrsqrt.f32 %v901_v36  ;;  %v949_v47 = vmul.f32 %v5224_v38, %v927_v40 }
 0x227   : > { %v4703_v49 = vpop.eup %4702  ;;  %v902_v62 = vadd.f32 1e-05, %v886_v45  ;;  %v903_v11 = vadd.f32 1e-05, %v887_v26 }
 0x228   : > { %v4705_v52 = vpop.eup %4704  ;;  %v860_v53 = vpop.xlane.xlu1 %859  ;;  %v971_v35 = vadd.f32 %v5230_v27, %v949_v47  ;;  %v928_v28 = vmul.f32 %v4703_v49, %v5109_v44 }
 0x229   : > { %v863_v31 = vpop.xlane.xlu0 %862  ;;  %4714 = vrsqrt.f32 %v902_v62  ;;  %v888_v6 = vmul.f32 0.03125, %v860_v53  ;;  %v929_v19 = vmul.f32 %v4705_v52, %v5105_v41 }
 0x22a   : > { %v889_v16 = vmul.f32 0.03125, %v863_v31  ;;  %4716 = vrsqrt.f32 %v903_v11  ;;  %4377 = vmatprep.mubr.msk.f32.mxu1 %vm524_vm0, %v971_v35  ;;  %v950_v55 = vmul.f32 %v5224_v38, %v928_v28 }
 0x22b   : > { %v4707_v57 = vpop.eup %4706  ;;  %v904_v60 = vadd.f32 1e-05, %v888_v6  ;;  %v951_v18 = vmul.f32 %v5224_v38, %v929_v19 }
 0x22c   : > { %v905_v14 = vadd.f32 1e-05, %v889_v16  ;;  %v4709_v61 = vpop.eup %4708  ;;  %v866_v63 = vpop.xlane.xlu1 %865  ;;  %v972_v44 = vadd.f32 %v5230_v27, %v950_v55  ;;  %v930_v43 = vmul.f32 %v4707_v57, %v5118_v32 }
 0x22d   : > { %v869_v29 = vpop.xlane.xlu0 %868  ;;  %4718 = vrsqrt.f32 %v904_v60  ;;  %v890_v1 = vmul.f32 0.03125, %v866_v63  ;;  %v973_v4 = vadd.f32 %v5230_v27, %v951_v18  ;;  %v931_v7 = vmul.f32 %v4709_v61, %v5122_v25 }
 0x22e   : > { %v891_v41 = vmul.f32 0.03125, %v869_v29  ;;  %4720 = vrsqrt.f32 %v905_v14  ;;  %4378 = vmatmul.mubr.msk.f32.vlgmr.msra.gmra.mrb[0].mxu1 %vm524_vm0, %v972_v44  ;;  %v952_v5 = vmul.f32 %v5224_v38, %v930_v43 }
 0x22f   : > { %v4711_v9 = vpop.eup %4710  ;;  %v906_v12 = vadd.f32 1e-05, %v890_v1  ;;  %4380 = vmatprep.mubr.msk.f32.mxu1 %vm524_vm0, %v973_v4  ;;  %v953_v17 = vmul.f32 %v5224_v38, %v931_v7  ;;  %v5298_v4 = vld [vmem:[%s7352_s2 + $0x1] ss:$0 sm:$0xff] }
 0x230   : > { %v907_v37 = vadd.f32 1e-05, %v891_v41  ;;  %v4713_v51 = vpop.eup %4712  ;;  %v872_v13 = vpop.xlane.xlu1 %871  ;;  %v974_v15 = vadd.f32 %v5230_v27, %v952_v5  ;;  %v932_v20 = vmul.f32 %v4711_v9, %v5132_v34 }
 0x231   : > { %v875_v32 = vpop.xlane.xlu0 %874  ;;  %4722 = vrsqrt.f32 %v906_v12  ;;  %v892_v21 = vmul.f32 0.03125, %v872_v13  ;;  %v933_v46 = vmul.f32 %v4713_v51, %v5136_v39  ;;  %v975_v25 = vadd.f32 %v5230_v27, %v953_v17 }
 0x232   : > { %v893_v22 = vmul.f32 0.03125, %v875_v32  ;;  %4724 = vrsqrt.f32 %v907_v37  ;;  %4381 = vmatmul.mubr.msk.f32.gmra.mrb[2].mxu1 %vm524_vm0, %v974_v15  ;;  %v954_v59 = vmul.f32 %v5224_v38, %v932_v20 }
 0x233   : > { %v4715_v23 = vpop.eup %4714  ;;  %v908_v24 = vadd.f32 1e-05, %v892_v21  ;;  %v955_v33 = vmul.f32 %v5224_v38, %v933_v46  ;;  %4383 = vmatprep.mubr.msk.f32.mxu1 %vm524_vm0, %v975_v25 }
 0x234   : > { %v909_v30 = vadd.f32 1e-05, %v893_v22  ;;  %v4717_v36 = vpop.eup %4716  ;;  %v878_v34 = vpop.xlane.xlu1 %877  ;;  %v976_v54 = vadd.f32 %v5230_v27, %v954_v59  ;;  %v934_v39 = vmul.f32 %v4715_v23, %v5146_v42 }
 0x235   : > { %4726 = vrsqrt.f32 %v908_v24  ;;  %v894_v3 = vmul.f32 0.03125, %v878_v34  ;;  %v977_v40 = vadd.f32 %v5230_v27, %v955_v33  ;;  %v935_v45 = vmul.f32 %v4717_v36, %v5150_v48 }
 0x236   : > { %4728 = vrsqrt.f32 %v909_v30  ;;  %4384 = vmatmul.mubr.msk.f32.gmra.mrb[4].mxu1 %vm524_vm0, %v976_v54  ;;  %v956_v26 = vmul.f32 %v5224_v38, %v934_v39 }
 0x237   : > { %v4719_v47 = vpop.eup %4718  ;;  %v910_v49 = vadd.f32 1e-05, %v894_v3  ;;  %4386 = vmatprep.mubr.msk.f32.mxu1 %vm524_vm0, %v977_v40  ;;  %v957_v62 = vmul.f32 %v5224_v38, %v935_v45 }
 0x238   : > { %v4721_v11 = vpop.eup %4720  ;;  %v978_v42 = vadd.f32 %v5230_v27, %v956_v26  ;;  %v936_v52 = vmul.f32 %v4719_v47, %v5160_v50 }
 0x239   : > { %4730 = vrsqrt.f32 %v910_v49  ;;  %v979_v53 = vadd.f32 %v5230_v27, %v957_v62  ;;  %v937_v48 = vmul.f32 %v4721_v11, %v5164_v56 }
 0x23a   : > { %4387 = vmatmul.mubr.msk.f32.gmra.mrb[6].mxu1 %vm524_vm0, %v978_v42  ;;  %v958_v31 = vmul.f32 %v5224_v38, %v936_v52 }
 0x23b   : > { %v4723_v35 = vpop.eup %4722  ;;  %4389 = vmatprep.mubr.msk.f32.mxu1 %vm524_vm0, %v979_v53  ;;  %v959_v28 = vmul.f32 %v5224_v38, %v937_v48 }
 0x23c   : > { %v4725_v6 = vpop.eup %4724  ;;  %v980_v16 = vadd.f32 %v5230_v27, %v958_v31  ;;  %v938_v19 = vmul.f32 %v4723_v35, %v5174_v58 }
 0x23d   : > { %v981_v50 = vadd.f32 %v5230_v27, %v959_v28  ;;  %v939_v55 = vmul.f32 %v4725_v6, %v5178_v0 }
 0x23e   : > { %4390 = vmatmul.mubr.msk.f32.gmra.mrb[8].mxu1 %vm524_vm0, %v980_v16  ;;  %v960_v56 = vmul.f32 %v5224_v38, %v938_v19 }
 0x23f   : > { %v4727_v57 = vpop.eup %4726  ;;  %4392 = vmatprep.mubr.msk.f32.mxu1 %vm524_vm0, %v981_v50  ;;  %v961_v60 = vmul.f32 %v5224_v38, %v939_v55 }
 0x240   : > { %v4729_v14 = vpop.eup %4728  ;;  %v982_v18 = vadd.f32 %v5230_v27, %v960_v56  ;;  %v940_v61 = vmul.f32 %v4727_v57, %v5188_v2 }
 0x241   : > { %v983_v58 = vadd.f32 %v5230_v27, %v961_v60  ;;  %v941_v63 = vmul.f32 %v4729_v14, %v5192_v8 }
 0x242   : > { %4393 = vmatmul.mubr.msk.f32.gmra.mrb[10].mxu1 %vm524_vm0, %v982_v18  ;;  %v962_v0 = vmul.f32 %v5224_v38, %v940_v61 }
 0x243   : > { %v4731_v29 = vpop.eup %4730  ;;  %4395 = vmatprep.mubr.msk.f32.mxu1 %vm524_vm0, %v983_v58  ;;  %v963_v44 = vmul.f32 %v5224_v38, %v941_v63 }
 0x244   : > { %v984_v43 = vadd.f32 %v5230_v27, %v962_v0  ;;  %v942_v1 = vmul.f32 %v4731_v29, %v5202_v10 }
 0x245   : > { %v985_v41 = vadd.f32 %v5230_v27, %v963_v44 }
 0x246   : > { %4396 = vmatmul.mubr.msk.f32.gmra.mrb[12].mxu1 %vm524_vm0, %v984_v43  ;;  %v964_v2 = vmul.f32 %v5224_v38, %v942_v1 }
 0x247   : > { %4398 = vmatprep.mubr.msk.f32.mxu1 %vm524_vm0, %v985_v41 }
 0x248   : > { %v986_v8 = vadd.f32 %v5230_v27, %v964_v2 }
 0x24a   : > { %4399 = vmatmul.mubr.msk.f32.gmra.mrb[14].mxu1 %vm524_vm0, %v986_v8 }
 0x301   : > { %v4379_v5 = vpop.f32.mrb[0].mxu1 }
 0x302   : > { %v5301_v10 = vadd.f32 %v4379_v5, %v5298_v4  ;;  %v1118_v7 = vpop.f32.mrb[1].mxu1  ;;  %v1465_v5 = vld [vmem:[%s7355_s5] sm:$0xff] }
 0x303   : > { %v5304_v9 = vadd.f32 %v5298_v4, %v1118_v7  ;;  %v1466_v7 = vld [vmem:[%s7355_s5 + $0x8] sm:$0xff] }
 0x304   : > { %v1198_v38 = vmax.f32 %v5301_v10, 0.0 }
 0x305   : > { %v1197_v12 = vmax.f32 %v5304_v9, 0.0  ;;  %v4382_v27 = vpop.f32.mrb[2].mxu1 }
 0x306   : > { %v5309_v37 = vadd.f32 %v4382_v27, %v5298_v4  ;;  %v1128_v51 = vpop.f32.mrb[3].mxu1  ;;  %v1216_v13 = vsel %vm524_vm0, %v1198_v38, 0.0  ;;  %v4604_v27 = vpack.c.bf16 %v1466_v7, %v1465_v5 }
 0x307   : > { %v5315_v32 = vadd.f32 %v5298_v4, %v1128_v51  ;;  %1217 = vadd.xlane.f32.xlu1 %v1216_v13  ;;  %v1213_v15 = vsel %vm524_vm0, %v1197_v12, 0.0 }
 0x308   : > { %v1200_v17 = vmax.f32 %v5309_v37, 0.0  ;;  %1214 = vadd.xlane.f32.xlu0 %v1213_v15  ;;  %4605 = vmatprep.subr.bf16.mxu0 %v4604_v27 }
 0x309   : > { %v1199_v20 = vmax.f32 %v5315_v32, 0.0  ;;  %v4385_v21 = vpop.f32.mrb[4].mxu1  ;;  %4607 = vmatpush3.bf16.msra.mxu0 %v4604_v27 }
 0x30a   : > { %v5323_v22 = vadd.f32 %v4385_v21, %v5298_v4  ;;  %v1138_v46 = vpop.f32.mrb[5].mxu1  ;;  %v1222_v25 = vsel %vm524_vm0, %v1200_v17, 0.0 }
 0x30b   : > { %v5329_v59 = vadd.f32 %v5298_v4, %v1138_v46  ;;  %1223 = vadd.xlane.f32.xlu1 %v1222_v25  ;;  %v1219_v23 = vsel %vm524_vm0, %v1199_v20, 0.0 }
 0x30c   : > { %v1202_v24 = vmax.f32 %v5323_v22, 0.0  ;;  %1220 = vadd.xlane.f32.xlu0 %v1219_v23 }
 0x30d   : > { %v1201_v30 = vmax.f32 %v5329_v59, 0.0  ;;  %v4388_v33 = vpop.f32.mrb[6].mxu1 }
 0x30e   : > { %v5337_v36 = vadd.f32 %v4388_v33, %v5298_v4  ;;  %v1148_v34 = vpop.f32.mrb[7].mxu1  ;;  %v1228_v54 = vsel %vm524_vm0, %v1202_v24, 0.0 }
 0x30f   : > { %v5343_v39 = vadd.f32 %v5298_v4, %v1148_v34  ;;  %1229 = vadd.xlane.f32.xlu1 %v1228_v54  ;;  %v1225_v3 = vsel %vm524_vm0, %v1201_v30, 0.0 }
 0x310   : > { %v1204_v40 = vmax.f32 %v5337_v36, 0.0  ;;  %1226 = vadd.xlane.f32.xlu0 %v1225_v3 }
 0x311   : > { %v1203_v45 = vmax.f32 %v5343_v39, 0.0  ;;  %v4391_v26 = vpop.f32.mrb[8].mxu1 }
 0x312   : > { %v5351_v47 = vadd.f32 %v4391_v26, %v5298_v4  ;;  %v1158_v49 = vpop.f32.mrb[9].mxu1  ;;  %v1234_v62 = vsel %vm524_vm0, %v1204_v40, 0.0 }
 0x313   : > { %v5357_v11 = vadd.f32 %v5298_v4, %v1158_v49  ;;  %1235 = vadd.xlane.f32.xlu1 %v1234_v62  ;;  %v1231_v42 = vsel %vm524_vm0, %v1203_v45, 0.0 }
 0x314   : > { %v1206_v52 = vmax.f32 %v5351_v47, 0.0  ;;  %1232 = vadd.xlane.f32.xlu0 %v1231_v42 }
 0x315   : > { %v1205_v53 = vmax.f32 %v5357_v11, 0.0  ;;  %v4394_v48 = vpop.f32.mrb[10].mxu1 }
 0x316   : > { %v5365_v31 = vadd.f32 %v4394_v48, %v5298_v4  ;;  %v1168_v35 = vpop.f32.mrb[11].mxu1  ;;  %v1240_v28 = vsel %vm524_vm0, %v1206_v52, 0.0 }
 0x317   : > { %v5371_v6 = vadd.f32 %v5298_v4, %v1168_v35  ;;  %1241 = vadd.xlane.f32.xlu1 %v1240_v28  ;;  %v1237_v16 = vsel %vm524_vm0, %v1205_v53, 0.0 }
 0x318   : > { %v1208_v19 = vmax.f32 %v5365_v31, 0.0  ;;  %1238 = vadd.xlane.f32.xlu0 %v1237_v16 }
 0x319   : > { %v1207_v50 = vmax.f32 %v5371_v6, 0.0  ;;  %v4397_v55 = vpop.f32.mrb[12].mxu1 }
 0x31a   : > { %v5379_v56 = vadd.f32 %v4397_v55, %v5298_v4  ;;  %v1178_v57 = vpop.f32.mrb[13].mxu1  ;;  %v1246_v60 = vsel %vm524_vm0, %v1208_v19, 0.0 }
 0x31b   : > { %v5385_v14 = vadd.f32 %v5298_v4, %v1178_v57  ;;  %1247 = vadd.xlane.f32.xlu1 %v1246_v60  ;;  %v1243_v18 = vsel %vm524_vm0, %v1207_v50, 0.0 }
 0x31c   : > { %v1210_v61 = vmax.f32 %v5379_v56, 0.0  ;;  %1244 = vadd.xlane.f32.xlu0 %v1243_v18 }
 0x31d   : > { %v1209_v58 = vmax.f32 %v5385_v14, 0.0  ;;  %v4400_v63 = vpop.f32.mrb[14].mxu1 }
 0x31e   : > { %v5393_v0 = vadd.f32 %v4400_v63, %v5298_v4  ;;  %v1188_v29 = vpop.f32.mrb[15].mxu1  ;;  %v1252_v44 = vsel %vm524_vm0, %v1210_v61, 0.0 }
 0x31f   : > { %v5399_v43 = vadd.f32 %v5298_v4, %v1188_v29  ;;  %1253 = vadd.xlane.f32.xlu1 %v1252_v44  ;;  %v1249_v1 = vsel %vm524_vm0, %v1209_v58, 0.0 }
 0x320   : > { %v1212_v41 = vmax.f32 %v5393_v0, 0.0  ;;  %1250 = vadd.xlane.f32.xlu0 %v1249_v1 }
 0x321   : > { %v1211_v2 = vmax.f32 %v5399_v43, 0.0  ;;  %v1467_v43 = vld [vmem:[%s7355_s5 + $0x10] sm:$0xff] }
 0x322   : > { %v1258_v8 = vsel %vm524_vm0, %v1212_v41, 0.0 }
 0x323   : > { %1259 = vadd.xlane.f32.xlu1 %v1258_v8  ;;  %v1255_v4 = vsel %vm524_vm0, %v1211_v2, 0.0 }
 0x324   : > { %1256 = vadd.xlane.f32.xlu0 %v1255_v4 }
 0x394   : > { %v1218_v51 = vpop.xlane.xlu1 %1217 }
 0x395   : > { %v1262_v13 = vmul.f32 0.03125, %v1218_v51  ;;  %v1215_v15 = vpop.xlane.xlu0 %1214 }
 0x396   : > { %v1261_v21 = vmul.f32 0.03125, %v1215_v15 }
 0x397   : > { %v5420_v46 = vsub.f32 %v1198_v38, %v1262_v13 }
 0x398   : > { %v5424_v25 = vsub.f32 %v1197_v12, %v1261_v21  ;;  %v1224_v23 = vpop.xlane.xlu1 %1223 }
 0x399   : > { %v1264_v33 = vmul.f32 0.03125, %v1224_v23  ;;  %v1221_v34 = vpop.xlane.xlu0 %1220  ;;  %v1294_v54 = vmul.f32 %v5420_v46, %v5420_v46 }
 0x39a   : > { %v1263_v3 = vmul.f32 0.03125, %v1221_v34  ;;  %v1293_v26 = vmul.f32 %v5424_v25, %v5424_v25 }
 0x39b   : > { %v5432_v49 = vsub.f32 %v1200_v17, %v1264_v33  ;;  %v1312_v10 = vsel %vm524_vm0, %v1294_v54, 0.0 }
 0x39c   : > { %v5437_v9 = vsub.f32 %v1199_v20, %v1263_v3  ;;  %v1230_v38 = vpop.xlane.xlu1 %1229  ;;  %1313 = vadd.xlane.f32.xlu1 %v1312_v10  ;;  %v1309_v12 = vsel %vm524_vm0, %v1293_v26, 0.0 }
 0x39d   : > { %v1266_v62 = vmul.f32 0.03125, %v1230_v38  ;;  %1310 = vadd.xlane.f32.xlu0 %v1309_v12  ;;  %v1227_v42 = vpop.xlane.xlu0 %1226  ;;  %v1296_v48 = vmul.f32 %v5432_v49, %v5432_v49 }
 0x39e   : > { %v1265_v35 = vmul.f32 0.03125, %v1227_v42  ;;  %v1295_v37 = vmul.f32 %v5437_v9, %v5437_v9 }
 0x39f   : > { %v5446_v17 = vsub.f32 %v1202_v24, %v1266_v62  ;;  %v1318_v32 = vsel %vm524_vm0, %v1296_v48, 0.0 }
 0x3a0   : > { %v5451_v20 = vsub.f32 %v1201_v30, %v1265_v35  ;;  %v1236_v28 = vpop.xlane.xlu1 %1235  ;;  %1319 = vadd.xlane.f32.xlu1 %v1318_v32  ;;  %v1315_v16 = vsel %vm524_vm0, %v1295_v37, 0.0 }
 0x3a1   : > { %v1268_v55 = vmul.f32 0.03125, %v1236_v28  ;;  %1316 = vadd.xlane.f32.xlu0 %v1315_v16  ;;  %v1233_v57 = vpop.xlane.xlu0 %1232  ;;  %v1298_v60 = vmul.f32 %v5446_v17, %v5446_v17 }
 0x3a2   : > { %v1267_v18 = vmul.f32 0.03125, %v1233_v57  ;;  %v1297_v22 = vmul.f32 %v5451_v20, %v5451_v20 }
 0x3a3   : > { %v5460_v24 = vsub.f32 %v1204_v40, %v1268_v55  ;;  %v1324_v59 = vsel %vm524_vm0, %v1298_v60, 0.0 }
 0x3a4   : > { %v5465_v30 = vsub.f32 %v1203_v45, %v1267_v18  ;;  %v1242_v63 = vpop.xlane.xlu1 %1241  ;;  %1325 = vadd.xlane.f32.xlu1 %v1324_v59  ;;  %v1321_v29 = vsel %vm524_vm0, %v1297_v22, 0.0 }
 0x3a5   : > { %v1270_v44 = vmul.f32 0.03125, %v1242_v63  ;;  %1322 = vadd.xlane.f32.xlu0 %v1321_v29  ;;  %v1239_v1 = vpop.xlane.xlu0 %1238  ;;  %v1300_v8 = vmul.f32 %v5460_v24, %v5460_v24 }
 0x3a6   : > { %v1269_v4 = vmul.f32 0.03125, %v1239_v1  ;;  %v1299_v36 = vmul.f32 %v5465_v30, %v5465_v30 }
 0x3a7   : > { %v5474_v40 = vsub.f32 %v1206_v52, %v1270_v44  ;;  %v1330_v39 = vsel %vm524_vm0, %v1300_v8, 0.0 }
 0x3a8   : > { %v5479_v45 = vsub.f32 %v1205_v53, %v1269_v4  ;;  %v1248_v5 = vpop.xlane.xlu1 %1247  ;;  %1331 = vadd.xlane.f32.xlu1 %v1330_v39  ;;  %v1327_v7 = vsel %vm524_vm0, %v1299_v36, 0.0 }
 0x3a9   : > { %v1272_v27 = vmul.f32 0.03125, %v1248_v5  ;;  %1328 = vadd.xlane.f32.xlu0 %v1327_v7  ;;  %v1245_v51 = vpop.xlane.xlu0 %1244  ;;  %v1302_v13 = vmul.f32 %v5474_v40, %v5474_v40 }
 0x3aa   : > { %v1271_v15 = vmul.f32 0.03125, %v1245_v51  ;;  %v1301_v47 = vmul.f32 %v5479_v45, %v5479_v45 }
 0x3ab   : > { %v5488_v52 = vsub.f32 %v1208_v19, %v1272_v27  ;;  %v1336_v11 = vsel %vm524_vm0, %v1302_v13, 0.0 }
 0x3ac   : > { %v5493_v53 = vsub.f32 %v1207_v50, %v1271_v15  ;;  %v1254_v21 = vpop.xlane.xlu1 %1253  ;;  %1337 = vadd.xlane.f32.xlu1 %v1336_v11  ;;  %v1333_v23 = vsel %vm524_vm0, %v1301_v47, 0.0  ;;  %v5539_v11 = vld [vmem:[%s7353_s3 + $0x1] ss:$0 sm:$0xff] }
 0x3ad   : > { %v1274_v33 = vmul.f32 0.03125, %v1254_v21  ;;  %1334 = vadd.xlane.f32.xlu0 %v1333_v23  ;;  %v1251_v34 = vpop.xlane.xlu0 %1250  ;;  %v1304_v54 = vmul.f32 %v5488_v52, %v5488_v52 }
 0x3ae   : > { %v1273_v3 = vmul.f32 0.03125, %v1251_v34  ;;  %v1303_v31 = vmul.f32 %v5493_v53, %v5493_v53 }
 0x3af   : > { %v5502_v19 = vsub.f32 %v1210_v61, %v1274_v33  ;;  %v1342_v6 = vsel %vm524_vm0, %v1304_v54, 0.0 }
 0x3b0   : > { %v5507_v50 = vsub.f32 %v1209_v58, %v1273_v3  ;;  %1343 = vadd.xlane.f32.xlu1 %v1342_v6  ;;  %v1260_v26 = vpop.xlane.xlu1 %1259  ;;  %v1339_v10 = vsel %vm524_vm0, %v1303_v31, 0.0 }
 0x3b1   : > { %v1276_v38 = vmul.f32 0.03125, %v1260_v26  ;;  %1340 = vadd.xlane.f32.xlu0 %v1339_v10  ;;  %v1257_v12 = vpop.xlane.xlu0 %1256  ;;  %v1306_v62 = vmul.f32 %v5502_v19, %v5502_v19 }
 0x3b2   : > { %v1275_v42 = vmul.f32 0.03125, %v1257_v12  ;;  %v1305_v56 = vmul.f32 %v5507_v50, %v5507_v50 }
 0x3b3   : > { %v5516_v61 = vsub.f32 %v1212_v41, %v1276_v38  ;;  %v1348_v14 = vsel %vm524_vm0, %v1306_v62, 0.0  ;;  %v5547_v38 = vld [vmem:[%s7354_s4 + $0x1] ss:$0 sm:$0xff] }
 0x3b4   : > { %v5521_v58 = vsub.f32 %v1211_v2, %v1275_v42  ;;  %1349 = vadd.xlane.f32.xlu1 %v1348_v14  ;;  %v1345_v48 = vsel %vm524_vm0, %v1305_v56, 0.0  ;;  %v1468_v2 = vld [vmem:[%s7355_s5 + $0x18] sm:$0xff] }
 0x3b5   : > { %1346 = vadd.xlane.f32.xlu0 %v1345_v48  ;;  %v1308_v35 = vmul.f32 %v5516_v61, %v5516_v61  ;;  %v4608_v32 = vpack.c.bf16 %v1468_v2, %v1467_v43 }
 0x3b6   : > { %v1307_v37 = vmul.f32 %v5521_v58, %v5521_v58 }
 0x3b7   : > { %v1354_v0 = vsel %vm524_vm0, %v1308_v35, 0.0  ;;  %4609 = vmatprep.subr.bf16.mxu0 %v4608_v32 }
 0x3b8   : > { %1355 = vadd.xlane.f32.xlu1 %v1354_v0  ;;  %v1351_v41 = vsel %vm524_vm0, %v1307_v37, 0.0  ;;  %4611 = vmatpush3.bf16.msra.mxu0 %v4608_v32 }
 0x3b9   : > { %1352 = vadd.xlane.f32.xlu0 %v1351_v41 }
 0x429   : > { %v1314_v28 = vpop.xlane.xlu1 %1313 }
 0x42a   : > { %v1358_v16 = vmul.f32 0.03125, %v1314_v28  ;;  %v1311_v55 = vpop.xlane.xlu0 %1310 }
 0x42b   : > { %v1357_v57 = vmul.f32 0.03125, %v1311_v55 }
 0x42c   : > { %v1374_v60 = vadd.f32 1e-05, %v1358_v16 }
 0x42d   : > { %v1373_v18 = vadd.f32 1e-05, %v1357_v57  ;;  %v1320_v22 = vpop.xlane.xlu1 %1319 }
 0x42e   : > { %4732 = vrsqrt.f32 %v1374_v60  ;;  %v1360_v59 = vmul.f32 0.03125, %v1320_v22  ;;  %v1317_v63 = vpop.xlane.xlu0 %1316 }
 0x42f   : > { %4734 = vrsqrt.f32 %v1373_v18  ;;  %v1359_v29 = vmul.f32 0.03125, %v1317_v63 }
 0x430   : > { %v1376_v44 = vadd.f32 1e-05, %v1360_v59 }
 0x431   : > { %v1375_v1 = vadd.f32 1e-05, %v1359_v29  ;;  %v1326_v8 = vpop.xlane.xlu1 %1325 }
 0x432   : > { %4736 = vrsqrt.f32 %v1376_v44  ;;  %v1362_v4 = vmul.f32 0.03125, %v1326_v8  ;;  %v1323_v36 = vpop.xlane.xlu0 %1322 }
 0x433   : > { %4738 = vrsqrt.f32 %v1375_v1  ;;  %v1361_v39 = vmul.f32 0.03125, %v1323_v36 }
 0x434   : > { %v1378_v5 = vadd.f32 1e-05, %v1362_v4 }
 0x435   : > { %v1377_v7 = vadd.f32 1e-05, %v1361_v39  ;;  %v1332_v27 = vpop.xlane.xlu1 %1331 }
 0x436   : > { %4740 = vrsqrt.f32 %v1378_v5  ;;  %v1364_v51 = vmul.f32 0.03125, %v1332_v27  ;;  %v1329_v13 = vpop.xlane.xlu0 %1328 }
 0x437   : > { %4742 = vrsqrt.f32 %v1377_v7  ;;  %v1363_v15 = vmul.f32 0.03125, %v1329_v13 }
 0x438   : > { %v4733_v47 = vpop.eup %4732  ;;  %v1380_v21 = vadd.f32 1e-05, %v1364_v51 }
 0x439   : > { %v4735_v23 = vpop.eup %4734  ;;  %v1406_v33 = vmul.f32 %v4733_v47, %v5420_v46  ;;  %v1379_v34 = vadd.f32 1e-05, %v1363_v15  ;;  %v1338_v54 = vpop.xlane.xlu1 %1337 }
 0x43a   : > { %4744 = vrsqrt.f32 %v1380_v21  ;;  %v1366_v3 = vmul.f32 0.03125, %v1338_v54  ;;  %v1335_v31 = vpop.xlane.xlu0 %1334  ;;  %v1405_v6 = vmul.f32 %v4735_v23, %v5424_v25 }
 0x43b   : > { %v1428_v26 = vmul.f32 %v5539_v11, %v1406_v33  ;;  %4746 = vrsqrt.f32 %v1379_v34  ;;  %v1365_v10 = vmul.f32 0.03125, %v1335_v31 }
 0x43c   : > { %v4737_v12 = vpop.eup %4736  ;;  %v1382_v62 = vadd.f32 1e-05, %v1366_v3  ;;  %v1427_v46 = vmul.f32 %v5539_v11, %v1405_v6 }
 0x43d   : > { %v4739_v42 = vpop.eup %4738  ;;  %v1381_v56 = vadd.f32 1e-05, %v1365_v10  ;;  %v1344_v14 = vpop.xlane.xlu1 %1343  ;;  %v1408_v48 = vmul.f32 %v4737_v12, %v5432_v49  ;;  %v5556_v43 = vadd.f32 %v5547_v38, %v1428_v26 }
 0x43e   : > { %4748 = vrsqrt.f32 %v1382_v62  ;;  %v1368_v25 = vmul.f32 0.03125, %v1344_v14  ;;  %v1341_v35 = vpop.xlane.xlu0 %1340  ;;  %v5552_v37 = vadd.f32 %v5547_v38, %v1427_v46  ;;  %v1407_v0 = vmul.f32 %v4739_v42, %v5437_v9 }
 0x43f   : > { %4750 = vrsqrt.f32 %v1381_v56  ;;  %v1367_v41 = vmul.f32 0.03125, %v1341_v35  ;;  %7397 = vst [vmem:[#allocation3_spill] sm:$0xff] %v5556_v43  ;;  %v1430_v2 = vmul.f32 %v5539_v11, %v1408_v48 }
 0x440   : > { %7396 = vst [vmem:[#allocation2_spill] sm:$0xff] %v5552_v37  ;;  %v4741_v32 = vpop.eup %4740  ;;  %v1384_v28 = vadd.f32 1e-05, %v1368_v25  ;;  %4409 = vmatprep.mubr.msk.f32.mxu0 %vm524_vm0, %v5552_v37  ;;  %v1429_v49 = vmul.f32 %v5539_v11, %v1407_v0 }
 0x441   : > { %v4743_v16 = vpop.eup %4742  ;;  %v1383_v55 = vadd.f32 1e-05, %v1367_v41  ;;  %v1350_v57 = vpop.xlane.xlu1 %1349  ;;  %4410 = vmatmul.mubr.msk.f32.vlgmr.msra.gmra.mrb[16].mxu0 %vm524_vm0, %v5556_v43  ;;  %v1410_v9 = vmul.f32 %v4741_v32, %v5446_v17  ;;  %v5570_v29 = vadd.f32 %v5547_v38, %v1430_v2 }
 0x442   : > { %4752 = vrsqrt.f32 %v1384_v28  ;;  %v1370_v60 = vmul.f32 0.03125, %v1350_v57  ;;  %v1347_v18 = vpop.xlane.xlu0 %1346  ;;  %v5566_v22 = vadd.f32 %v5547_v38, %v1429_v49  ;;  %v1409_v59 = vmul.f32 %v4743_v16, %v5451_v20 }
 0x443   : > { %4754 = vrsqrt.f32 %v1383_v55  ;;  %v1369_v63 = vmul.f32 0.03125, %v1347_v18  ;;  %7399 = vst [vmem:[#allocation5_spill] sm:$0xff] %v5570_v29  ;;  %v1432_v44 = vmul.f32 %v5539_v11, %v1410_v9 }
 0x444   : > { %7398 = vst [vmem:[#allocation4_spill] sm:$0xff] %v5566_v22  ;;  %v4745_v1 = vpop.eup %4744  ;;  %v1386_v8 = vadd.f32 1e-05, %v1370_v60  ;;  %4412 = vmatprep.mubr.msk.f32.mxu0 %vm524_vm0, %v5566_v22  ;;  %v1431_v17 = vmul.f32 %v5539_v11, %v1409_v59  ;;  %v5664_v60 = vld [vmem:[%s7357_s7] ss:$0 sm:$0xff] }
 0x445   : > { %v4747_v4 = vpop.eup %4746  ;;  %v1385_v36 = vadd.f32 1e-05, %v1369_v63  ;;  %v1356_v39 = vpop.xlane.xlu1 %1355  ;;  %4413 = vmatmul.mubr.msk.f32.gmra.mrb[18].mxu0 %vm524_vm0, %v5570_v29  ;;  %v1412_v20 = vmul.f32 %v4745_v1, %v5460_v24  ;;  %v5584_v15 = vadd.f32 %v5547_v38, %v1432_v44 }
 0x446   : > { %4756 = vrsqrt.f32 %v1386_v8  ;;  %v1372_v5 = vmul.f32 0.03125, %v1356_v39  ;;  %v1353_v7 = vpop.xlane.xlu0 %1352  ;;  %v5580_v27 = vadd.f32 %v5547_v38, %v1431_v17  ;;  %v1411_v51 = vmul.f32 %v4747_v4, %v5465_v30 }
 0x447   : > { %4758 = vrsqrt.f32 %v1385_v36  ;;  %v1371_v13 = vmul.f32 0.03125, %v1353_v7  ;;  %7401 = vst [vmem:[#allocation7_spill] sm:$0xff] %v5584_v15  ;;  %v1434_v47 = vmul.f32 %v5539_v11, %v1412_v20 }
 0x448   : > { %7400 = vst [vmem:[#allocation6_spill] sm:$0xff] %v5580_v27  ;;  %v4749_v21 = vpop.eup %4748  ;;  %v1388_v23 = vadd.f32 1e-05, %v1372_v5  ;;  %4415 = vmatprep.mubr.msk.f32.mxu0 %vm524_vm0, %v5580_v27  ;;  %v1433_v24 = vmul.f32 %v5539_v11, %v1411_v51 }
 0x449   : > { %v4751_v33 = vpop.eup %4750  ;;  %v1387_v34 = vadd.f32 1e-05, %v1371_v13  ;;  %4416 = vmatmul.mubr.msk.f32.gmra.mrb[20].mxu0 %vm524_vm0, %v5584_v15  ;;  %v1414_v30 = vmul.f32 %v4749_v21, %v5474_v40  ;;  %v5598_v31 = vadd.f32 %v5547_v38, %v1434_v47 }
 0x44a   : > { %4760 = vrsqrt.f32 %v1388_v23  ;;  %v5594_v54 = vadd.f32 %v5547_v38, %v1433_v24  ;;  %v1413_v3 = vmul.f32 %v4751_v33, %v5479_v45 }
 0x44b   : > { %4762 = vrsqrt.f32 %v1387_v34  ;;  %7403 = vst [vmem:[#allocation9_spill] sm:$0xff] %v5598_v31  ;;  %v1436_v6 = vmul.f32 %v5539_v11, %v1414_v30 }
 0x44c   : > { %7402 = vst [vmem:[#allocation8_spill] sm:$0xff] %v5594_v54  ;;  %v4753_v26 = vpop.eup %4752  ;;  %4418 = vmatprep.mubr.msk.f32.mxu0 %vm524_vm0, %v5594_v54  ;;  %v1435_v10 = vmul.f32 %v5539_v11, %v1413_v3 }
 0x44d   : > { %v4755_v12 = vpop.eup %4754  ;;  %4419 = vmatmul.mubr.msk.f32.gmra.mrb[22].mxu0 %vm524_vm0, %v5598_v31  ;;  %v1416_v40 = vmul.f32 %v4753_v26, %v5488_v52  ;;  %v5612_v46 = vadd.f32 %v5547_v38, %v1436_v6 }
 0x44e   : > { %v5608_v45 = vadd.f32 %v5547_v38, %v1435_v10  ;;  %v1415_v62 = vmul.f32 %v4755_v12, %v5493_v53 }
 0x44f   : > { %7405 = vst [vmem:[#allocation11_spill] sm:$0xff] %v5612_v46  ;;  %v1438_v42 = vmul.f32 %v5539_v11, %v1416_v40 }
 0x450   : > { %7404 = vst [vmem:[#allocation10_spill] sm:$0xff] %v5608_v45  ;;  %v4757_v56 = vpop.eup %4756  ;;  %4421 = vmatprep.mubr.msk.f32.mxu0 %vm524_vm0, %v5608_v45  ;;  %v1437_v14 = vmul.f32 %v5539_v11, %v1415_v62 }
 0x451   : > { %v4759_v48 = vpop.eup %4758  ;;  %4422 = vmatmul.mubr.msk.f32.gmra.mrb[24].mxu0 %vm524_vm0, %v5612_v46  ;;  %v1418_v52 = vmul.f32 %v4757_v56, %v5502_v19  ;;  %v5626_v35 = vadd.f32 %v5547_v38, %v1438_v42 }
 0x452   : > { %v5622_v25 = vadd.f32 %v5547_v38, %v1437_v14  ;;  %v1417_v53 = vmul.f32 %v4759_v48, %v5507_v50 }
 0x453   : > { %7407 = vst [vmem:[#allocation13_spill] sm:$0xff] %v5626_v35  ;;  %v1440_v0 = vmul.f32 %v5539_v11, %v1418_v52 }
 0x454   : > { %7406 = vst [vmem:[#allocation12_spill] sm:$0xff] %v5622_v25  ;;  %v4761_v41 = vpop.eup %4760  ;;  %4424 = vmatprep.mubr.msk.f32.mxu0 %vm524_vm0, %v5622_v25  ;;  %v1439_v2 = vmul.f32 %v5539_v11, %v1417_v53 }
 0x455   : > { %v4763_v32 = vpop.eup %4762  ;;  %4425 = vmatmul.mubr.msk.f32.gmra.mrb[26].mxu0 %vm524_vm0, %v5626_v35  ;;  %v1420_v19 = vmul.f32 %v4761_v41, %v5516_v61  ;;  %v5640_v49 = vadd.f32 %v5547_v38, %v1440_v0 }
 0x456   : > { %v5636_v28 = vadd.f32 %v5547_v38, %v1439_v2  ;;  %v1419_v50 = vmul.f32 %v4763_v32, %v5521_v58  ;;  %v7365_v58 = vlaneseq }
 0x457   : > { %7409 = vst [vmem:[#allocation15_spill] sm:$0xff] %v5640_v49  ;;  %v1442_v16 = vmul.f32 %v5539_v11, %v1420_v19 }
 0x458   : > { %7408 = vst [vmem:[#allocation14_spill] sm:$0xff] %v5636_v28  ;;  %4427 = vmatprep.mubr.msk.f32.mxu0 %vm524_vm0, %v5636_v28  ;;  %v1441_v55 = vmul.f32 %v5539_v11, %v1419_v50  ;;  %v5659_v9 = vand.u32 127, %v7365_v58 }
 0x459   : > { %4428 = vmatmul.mubr.msk.f32.gmra.mrb[28].mxu0 %vm524_vm0, %v5640_v49  ;;  %v5652_v57 = vadd.f32 %v5547_v38, %v1442_v16 }
 0x45a   : > { %v5649_v61 = vadd.f32 %v5547_v38, %v1441_v55  ;;  %7412 = vst [vmem:[#allocation18_spill] sm:$0xff] %v5659_v9  ;;  %vm1704_vm1 = vcmp.lt.s32.totalorder %v5659_v9, 64  ;;  %vm2026_vm2 = vcmp.ge.s32.totalorder %v5659_v9, 64 }
 0x45b   : > { %7411 = vst [vmem:[#allocation17_spill] sm:$0xff] %v5652_v57 }
 0x45c   : > { %7410 = vst [vmem:[#allocation16_spill] sm:$0xff] %v5649_v61  ;;  %4430 = vmatprep.mubr.msk.f32.mxu0 %vm524_vm0, %v5649_v61 }
 0x45d   : > { %4431 = vmatmul.mubr.msk.f32.gmra.mrb[30].mxu0 %vm524_vm0, %v5652_v57 }
 0x514   : > { %v4411_v11 = vpop.f32.mrb[16].mxu0 }
 0x515   : > { %v1664_v18 = vmul.f32 2.0, %v4411_v11  ;;  %v1583_v59 = vpop.f32.mrb[17].mxu0 }
 0x516   : > { %v1663_v38 = vmul.f32 2.0, %v1583_v59 }
 0x517   : > { %v1686_v63 = vsub.f32 %v5664_v60, %v1664_v18 }
 0x518   : > { %v4414_v44 = vpop.f32.mrb[18].mxu0  ;;  %v1685_v1 = vsub.f32 %v5664_v60, %v1663_v38 }
 0x519   : > { %v1666_v8 = vmul.f32 2.0, %v4414_v44  ;;  %v1593_v17 = vpop.f32.mrb[19].mxu0  ;;  %v5671_v4 = vsel %vm1704_vm1, %v1686_v63, inf  ;;  %v5682_v7 = vsel %vm2026_vm2, %v1686_v63, inf }
 0x51a   : > { %v1665_v36 = vmul.f32 2.0, %v1593_v17  ;;  %1724 = vmin.xlane.f32.xlu1 %v5671_v4  ;;  %v5676_v39 = vsel %vm1704_vm1, %v1685_v1, inf  ;;  %v5688_v13 = vsel %vm2026_vm2, %v1685_v1, inf }
 0x51b   : > { %1722 = vmin.xlane.f32.xlu0 %v5676_v39  ;;  %v1688_v51 = vsub.f32 %v5664_v60, %v1666_v8 }
 0x51c   : > { %v4417_v20 = vpop.f32.mrb[20].mxu0  ;;  %v1687_v47 = vsub.f32 %v5664_v60, %v1665_v36 }
 0x51d   : > { %v1603_v5 = vpop.f32.mrb[21].mxu0  ;;  %v1668_v23 = vmul.f32 2.0, %v4417_v20  ;;  %v5694_v33 = vsel %vm1704_vm1, %v1688_v51, inf  ;;  %v5704_v26 = vsel %vm2026_vm2, %v1688_v51, inf }
 0x51e   : > { %2047 = vmin.xlane.f32.xlu1 %v5682_v7  ;;  %v1667_v34 = vmul.f32 2.0, %v1603_v5  ;;  %v5699_v30 = vsel %vm1704_vm1, %v1687_v47, inf  ;;  %v5710_v12 = vsel %vm2026_vm2, %v1687_v47, inf }
 0x51f   : > { %2045 = vmin.xlane.f32.xlu0 %v5688_v13  ;;  %v1690_v10 = vsub.f32 %v5664_v60, %v1668_v23 }
 0x520   : > { %v4420_v21 = vpop.f32.mrb[22].mxu0  ;;  %v1689_v40 = vsub.f32 %v5664_v60, %v1667_v34 }
 0x521   : > { %v1613_v24 = vpop.f32.mrb[23].mxu0  ;;  %v1670_v42 = vmul.f32 2.0, %v4420_v21  ;;  %v5716_v14 = vsel %vm1704_vm1, %v1690_v10, inf  ;;  %v5726_v41 = vsel %vm2026_vm2, %v1690_v10, inf }
 0x522   : > { %1728 = vmin.xlane.f32.xlu1 %v5694_v33  ;;  %v1669_v48 = vmul.f32 2.0, %v1613_v24  ;;  %v5721_v52 = vsel %vm1704_vm1, %v1689_v40, inf  ;;  %v5732_v32 = vsel %vm2026_vm2, %v1689_v40, inf }
 0x523   : > { %1726 = vmin.xlane.f32.xlu0 %v5699_v30  ;;  %v1692_v2 = vsub.f32 %v5664_v60, %v1670_v42 }
 0x524   : > { %v4423_v3 = vpop.f32.mrb[24].mxu0  ;;  %v1691_v19 = vsub.f32 %v5664_v60, %v1669_v48 }
 0x525   : > { %v1623_v6 = vpop.f32.mrb[25].mxu0  ;;  %v1672_v16 = vmul.f32 2.0, %v4423_v3  ;;  %v5738_v11 = vsel %vm1704_vm1, %v1692_v2, inf  ;;  %v5748_v38 = vsel %vm2026_vm2, %v1692_v2, inf }
 0x526   : > { %2051 = vmin.xlane.f32.xlu1 %v5704_v26  ;;  %v1671_v18 = vmul.f32 2.0, %v1623_v6  ;;  %v5743_v59 = vsel %vm1704_vm1, %v1691_v19, inf  ;;  %v5754_v44 = vsel %vm2026_vm2, %v1691_v19, inf }
 0x527   : > { %2049 = vmin.xlane.f32.xlu0 %v5710_v12  ;;  %v1694_v63 = vsub.f32 %v5664_v60, %v1672_v16 }
 0x528   : > { %v4426_v62 = vpop.f32.mrb[26].mxu0  ;;  %v1693_v1 = vsub.f32 %v5664_v60, %v1671_v18 }
 0x529   : > { %v1633_v56 = vpop.f32.mrb[27].mxu0  ;;  %v1674_v8 = vmul.f32 2.0, %v4426_v62  ;;  %v5760_v17 = vsel %vm1704_vm1, %v1694_v63, inf  ;;  %v5770_v5 = vsel %vm2026_vm2, %v1694_v63, inf }
 0x52a   : > { %1732 = vmin.xlane.f32.xlu1 %v5716_v14  ;;  %v1673_v36 = vmul.f32 2.0, %v1633_v56  ;;  %v5765_v20 = vsel %vm1704_vm1, %v1693_v1, inf  ;;  %v5776_v47 = vsel %vm2026_vm2, %v1693_v1, inf }
 0x52b   : > { %1730 = vmin.xlane.f32.xlu0 %v5721_v52  ;;  %v1696_v51 = vsub.f32 %v5664_v60, %v1674_v8 }
 0x52c   : > { %v4429_v53 = vpop.f32.mrb[28].mxu0  ;;  %v1695_v21 = vsub.f32 %v5664_v60, %v1673_v36 }
 0x52d   : > { %v1643_v0 = vpop.f32.mrb[29].mxu0  ;;  %v1676_v23 = vmul.f32 2.0, %v4429_v53  ;;  %v5782_v24 = vsel %vm1704_vm1, %v1696_v51, inf  ;;  %v5792_v6 = vsel %vm2026_vm2, %v1696_v51, inf }
 0x52e   : > { %2055 = vmin.xlane.f32.xlu1 %v5726_v41  ;;  %v1675_v34 = vmul.f32 2.0, %v1643_v0  ;;  %v5787_v3 = vsel %vm1704_vm1, %v1695_v21, inf  ;;  %v5798_v40 = vsel %vm2026_vm2, %v1695_v21, inf }
 0x52f   : > { %2053 = vmin.xlane.f32.xlu0 %v5732_v32  ;;  %v1698_v10 = vsub.f32 %v5664_v60, %v1676_v23 }
 0x530   : > { %v4432_v50 = vpop.f32.mrb[30].mxu0  ;;  %v1697_v62 = vsub.f32 %v5664_v60, %v1675_v34 }
 0x531   : > { %v1653_v55 = vpop.f32.mrb[31].mxu0  ;;  %v1678_v42 = vmul.f32 2.0, %v4432_v50  ;;  %v5804_v56 = vsel %vm1704_vm1, %v1698_v10, inf  ;;  %v5814_v0 = vsel %vm2026_vm2, %v1698_v10, inf }
 0x532   : > { %1736 = vmin.xlane.f32.xlu1 %v5738_v11  ;;  %v1677_v48 = vmul.f32 2.0, %v1653_v55  ;;  %v5809_v53 = vsel %vm1704_vm1, %v1697_v62, inf  ;;  %v5820_v19 = vsel %vm2026_vm2, %v1697_v62, inf }
 0x533   : > { %1734 = vmin.xlane.f32.xlu0 %v5743_v59  ;;  %v1700_v2 = vsub.f32 %v5664_v60, %v1678_v42 }
 0x534   : > { %v1699_v50 = vsub.f32 %v5664_v60, %v1677_v48 }
 0x535   : > { %v5826_v16 = vsel %vm1704_vm1, %v1700_v2, inf  ;;  %v5836_v18 = vsel %vm2026_vm2, %v1700_v2, inf }
 0x536   : > { %2059 = vmin.xlane.f32.xlu1 %v5748_v38  ;;  %v5831_v55 = vsel %vm1704_vm1, %v1699_v50, inf  ;;  %v5841_v60 = vsel %vm2026_vm2, %v1699_v50, inf }
 0x537   : > { %2057 = vmin.xlane.f32.xlu0 %v5754_v44 }
 0x53a   : > { %1740 = vmin.xlane.f32.xlu1 %v5760_v17 }
 0x53b   : > { %1738 = vmin.xlane.f32.xlu0 %v5765_v20 }
 0x53e   : > { %2063 = vmin.xlane.f32.xlu1 %v5770_v5 }
 0x53f   : > { %2061 = vmin.xlane.f32.xlu0 %v5776_v47 }
 0x542   : > { %1744 = vmin.xlane.f32.xlu1 %v5782_v24 }
 0x543   : > { %1742 = vmin.xlane.f32.xlu0 %v5787_v3 }
 0x546   : > { %2067 = vmin.xlane.f32.xlu1 %v5792_v6 }
 0x547   : > { %2065 = vmin.xlane.f32.xlu0 %v5798_v40 }
 0x54a   : > { %1748 = vmin.xlane.f32.xlu1 %v5804_v56 }
 0x54b   : > { %1746 = vmin.xlane.f32.xlu0 %v5809_v53 }
 0x54e   : > { %2071 = vmin.xlane.f32.xlu1 %v5814_v0 }
 0x54f   : > { %2069 = vmin.xlane.f32.xlu0 %v5820_v19 }
 0x552   : > { %1752 = vmin.xlane.f32.xlu1 %v5826_v16 }
 0x553   : > { %1750 = vmin.xlane.f32.xlu0 %v5831_v55 }
 0x556   : > { %2075 = vmin.xlane.f32.xlu1 %v5836_v18 }
 0x557   : > { %2073 = vmin.xlane.f32.xlu0 %v5841_v60 }
 0x5a7   : > { %v1725_v63 = vpop.xlane.xlu1 %1724 }
 0x5a8   : > { %vm1755_vm3 = vcmp.eq.f32.partialorder %v5671_v4, %v1725_v63  ;;  %v1723_v1 = vpop.xlane.xlu0 %1722 }
 0x5a9   : > { %v5846_v8 = vsel %vm1755_vm3, %v5659_v9, 128  ;;  %vm1754_vm4 = vcmp.eq.f32.partialorder %v5676_v39, %v1723_v1 }
 0x5aa   : > { %v5850_v36 = vsel %vm1754_vm4, %v5659_v9, 128  ;;  %v1801_v51 = vshra.s32 %v5846_v8, 16 }
 0x5ab   : > { %v2048_v21 = vpop.xlane.xlu1 %2047  ;;  %v1787_v23 = vshra.s32 %v5850_v36, 16 }
 0x5ac   : > { %vm2078_vm5 = vcmp.eq.f32.partialorder %v5682_v7, %v2048_v21  ;;  %v2046_v34 = vpop.xlane.xlu0 %2045  ;;  %v5855_v10 = vcvt.s32.f32 %v1801_v51 }
 0x5ad   : > { %v5858_v4 = vsel %vm2078_vm5, %v5659_v9, 128  ;;  %vm2077_vm6 = vcmp.eq.f32.partialorder %v5688_v13, %v2046_v34  ;;  %v5861_v62 = vcvt.s32.f32 %v1787_v23 }
 0x5ae   : > { %v2124_v39 = vshra.s32 %v5858_v4, 16  ;;  %v5865_v42 = vsel %vm2077_vm6, %v5659_v9, 128  ;;  %1804 = vmin.xlane.f32.xlu1 %v5855_v10 }
 0x5af   : > { %v2110_v48 = vshra.s32 %v5865_v42, 16  ;;  %v1729_v7 = vpop.xlane.xlu1 %1728  ;;  %1790 = vmin.xlane.f32.xlu0 %v5861_v62 }
 0x5b0   : > { %vm1757_vm7 = vcmp.eq.f32.partialorder %v5694_v33, %v1729_v7  ;;  %v1727_v2 = vpop.xlane.xlu0 %1726  ;;  %v5871_v50 = vcvt.s32.f32 %v2124_v39 }
 0x5b1   : > { %v5874_v13 = vsel %vm1757_vm7, %v5659_v9, 128  ;;  %vm1756_vm8 = vcmp.eq.f32.partialorder %v5699_v30, %v1727_v2  ;;  %v5877_v63 = vcvt.s32.f32 %v2110_v48 }
 0x5b2   : > { %v1829_v1 = vshra.s32 %v5874_v13, 16  ;;  %v5881_v51 = vsel %vm1756_vm8, %v5659_v9, 128  ;;  %2127 = vmin.xlane.f32.xlu1 %v5871_v50 }
 0x5b3   : > { %v1815_v21 = vshra.s32 %v5881_v51, 16  ;;  %v2052_v33 = vpop.xlane.xlu1 %2051  ;;  %2113 = vmin.xlane.f32.xlu0 %v5877_v63 }
 0x5b4   : > { %vm2080_vm9 = vcmp.eq.f32.partialorder %v5704_v26, %v2052_v33  ;;  %v2050_v23 = vpop.xlane.xlu0 %2049  ;;  %v5887_v34 = vcvt.s32.f32 %v1829_v1 }
 0x5b5   : > { %v5890_v30 = vsel %vm2080_vm9, %v5659_v9, 128  ;;  %vm2079_vm10 = vcmp.eq.f32.partialorder %v5710_v12, %v2050_v23  ;;  %v5893_v39 = vcvt.s32.f32 %v1815_v21 }
 0x5b6   : > { %v2152_v48 = vshra.s32 %v5890_v30, 16  ;;  %v5897_v7 = vsel %vm2079_vm10, %v5659_v9, 128  ;;  %1832 = vmin.xlane.f32.xlu1 %v5887_v34 }
 0x5b7   : > { %v2138_v2 = vshra.s32 %v5897_v7, 16  ;;  %v1733_v26 = vpop.xlane.xlu1 %1732  ;;  %1818 = vmin.xlane.f32.xlu0 %v5893_v39 }
 0x5b8   : > { %vm1759_vm11 = vcmp.eq.f32.partialorder %v5716_v14, %v1733_v26  ;;  %v1731_v1 = vpop.xlane.xlu0 %1730  ;;  %v5903_v33 = vcvt.s32.f32 %v2152_v48 }
 0x5b9   : > { %v5906_v12 = vsel %vm1759_vm11, %v5659_v9, 128  ;;  %vm1758_vm12 = vcmp.eq.f32.partialorder %v5721_v52, %v1731_v1  ;;  %v5909_v21 = vcvt.s32.f32 %v2138_v2 }
 0x5ba   : > { %v1857_v23 = vshra.s32 %v5906_v12, 16  ;;  %v5913_v58 = vsel %vm1758_vm12, %v5659_v9, 128  ;;  %2155 = vmin.xlane.f32.xlu1 %v5903_v33 }
 0x5bb   : > { %v1843_v61 = vshra.s32 %v5913_v58, 16  ;;  %v2056_v14 = vpop.xlane.xlu1 %2055  ;;  %2141 = vmin.xlane.f32.xlu0 %v5909_v21 }
 0x5bc   : > { %vm2082_vm13 = vcmp.eq.f32.partialorder %v5726_v41, %v2056_v14  ;;  %v2054_v48 = vpop.xlane.xlu0 %2053  ;;  %v5919_v26 = vcvt.s32.f32 %v1857_v23 }
 0x5bd   : > { %v5922_v52 = vsel %vm2082_vm13, %v5659_v9, 128  ;;  %vm2081_vm14 = vcmp.eq.f32.partialorder %v5732_v32, %v2054_v48  ;;  %v5925_v2 = vcvt.s32.f32 %v1843_v61 }
 0x5be   : > { %v2180_v1 = vshra.s32 %v5922_v52, 16  ;;  %v5929_v57 = vsel %vm2081_vm14, %v5659_v9, 128  ;;  %1860 = vmin.xlane.f32.xlu1 %v5919_v26 }
 0x5bf   : > { %v2166_v28 = vshra.s32 %v5929_v57, 16  ;;  %v1737_v41 = vpop.xlane.xlu1 %1736  ;;  %1846 = vmin.xlane.f32.xlu0 %v5925_v2 }
 0x5c0   : > { %vm1761_vm15 = vcmp.eq.f32.partialorder %v5738_v11, %v1737_v41  ;;  %v1735_v23 = vpop.xlane.xlu0 %1734  ;;  %v5935_v14 = vcvt.s32.f32 %v2180_v1 }
 0x5c1   : > { %v5938_v61 = vsel %vm1761_vm15, %v5659_v9, 128  ;;  %vm1760_vm3 = vcmp.eq.f32.partialorder %v5743_v59, %v1735_v23  ;;  %v5941_v32 = vcvt.s32.f32 %v2166_v28 }
 0x5c2   : > { %v1885_v48 = vshra.s32 %v5938_v61, 16  ;;  %v5945_v49 = vsel %vm1760_vm3, %v5659_v9, 128  ;;  %2183 = vmin.xlane.f32.xlu1 %v5935_v14 }
 0x5c3   : > { %v1871_v25 = vshra.s32 %v5945_v49, 16  ;;  %v2060_v11 = vpop.xlane.xlu1 %2059  ;;  %2169 = vmin.xlane.f32.xlu0 %v5941_v32 }
 0x5c4   : > { %vm2084_vm4 = vcmp.eq.f32.partialorder %v5748_v38, %v2060_v11  ;;  %v2058_v1 = vpop.xlane.xlu0 %2057  ;;  %v5951_v41 = vcvt.s32.f32 %v1885_v48 }
 0x5c5   : > { %v5954_v28 = vsel %vm2084_vm4, %v5659_v9, 128  ;;  %vm2083_vm5 = vcmp.eq.f32.partialorder %v5754_v44, %v2058_v1  ;;  %v5957_v59 = vcvt.s32.f32 %v1871_v25 }
 0x5c6   : > { %v2208_v23 = vshra.s32 %v5954_v28, 16  ;;  %v5961_v35 = vsel %vm2083_vm5, %v5659_v9, 128  ;;  %1888 = vmin.xlane.f32.xlu1 %v5951_v41 }
 0x5c7   : > { %v2194_v45 = vshra.s32 %v5961_v35, 16  ;;  %v1741_v38 = vpop.xlane.xlu1 %1740  ;;  %1874 = vmin.xlane.f32.xlu0 %v5957_v59 }
 0x5c8   : > { %vm1763_vm6 = vcmp.eq.f32.partialorder %v5760_v17, %v1741_v38  ;;  %v1739_v48 = vpop.xlane.xlu0 %1738  ;;  %v5967_v11 = vcvt.s32.f32 %v2208_v23 }
 0x5c9   : > { %v5970_v25 = vsel %vm1763_vm6, %v5659_v9, 128  ;;  %vm1762_vm7 = vcmp.eq.f32.partialorder %v5765_v20, %v1739_v48  ;;  %v5973_v44 = vcvt.s32.f32 %v2194_v45 }
 0x5ca   : > { %v1913_v1 = vshra.s32 %v5970_v25, 16  ;;  %v5977_v46 = vsel %vm1762_vm7, %v5659_v9, 128  ;;  %2211 = vmin.xlane.f32.xlu1 %v5967_v11 }
 0x5cb   : > { %v1899_v54 = vshra.s32 %v5977_v46, 16  ;;  %v2064_v17 = vpop.xlane.xlu1 %2063  ;;  %2197 = vmin.xlane.f32.xlu0 %v5973_v44 }
 0x5cc   : > { %vm2086_vm8 = vcmp.eq.f32.partialorder %v5770_v5, %v2064_v17  ;;  %v2062_v23 = vpop.xlane.xlu0 %2061  ;;  %v5983_v38 = vcvt.s32.f32 %v1913_v1 }
 0x5cd   : > { %v5986_v45 = vsel %vm2086_vm8, %v5659_v9, 128  ;;  %vm2085_vm9 = vcmp.eq.f32.partialorder %v5776_v47, %v2062_v23  ;;  %v5989_v20 = vcvt.s32.f32 %v1899_v54 }
 0x5ce   : > { %v2236_v48 = vshra.s32 %v5986_v45, 16  ;;  %v5993_v31 = vsel %vm2085_vm9, %v5659_v9, 128  ;;  %1916 = vmin.xlane.f32.xlu1 %v5983_v38 }
 0x5cf   : > { %v2222_v27 = vshra.s32 %v5993_v31, 16  ;;  %v1745_v5 = vpop.xlane.xlu1 %1744  ;;  %1902 = vmin.xlane.f32.xlu0 %v5989_v20 }
 0x5d0   : > { %vm1765_vm10 = vcmp.eq.f32.partialorder %v5782_v24, %v1745_v5  ;;  %v1743_v1 = vpop.xlane.xlu0 %1742  ;;  %v5999_v17 = vcvt.s32.f32 %v2236_v48 }
 0x5d1   : > { %v6002_v54 = vsel %vm1765_vm10, %v5659_v9, 128  ;;  %vm1764_vm11 = vcmp.eq.f32.partialorder %v5787_v3, %v1743_v1  ;;  %v6005_v47 = vcvt.s32.f32 %v2222_v27 }
 0x5d2   : > { %v1941_v23 = vshra.s32 %v6002_v54, 16  ;;  %v6009_v15 = vsel %vm1764_vm11, %v5659_v9, 128  ;;  %2239 = vmin.xlane.f32.xlu1 %v5999_v17 }
 0x5d3   : > { %v1927_v22 = vshra.s32 %v6009_v15, 16  ;;  %v2068_v24 = vpop.xlane.xlu1 %2067  ;;  %2225 = vmin.xlane.f32.xlu0 %v6005_v47 }
 0x5d4   : > { %vm2088_vm12 = vcmp.eq.f32.partialorder %v5792_v6, %v2068_v24  ;;  %v2066_v48 = vpop.xlane.xlu0 %2065  ;;  %v6015_v5 = vcvt.s32.f32 %v1941_v23 }
 0x5d5   : > { %v6018_v27 = vsel %vm2088_vm12, %v5659_v9, 128  ;;  %vm2087_vm13 = vcmp.eq.f32.partialorder %v5798_v40, %v2066_v48  ;;  %v6021_v3 = vcvt.s32.f32 %v1927_v22 }
 0x5d6   : > { %v2264_v1 = vshra.s32 %v6018_v27, 16  ;;  %v6025_v29 = vsel %vm2087_vm13, %v5659_v9, 128  ;;  %1944 = vmin.xlane.f32.xlu1 %v6015_v5 }
 0x5d7   : > { %7413 = vst [vmem:[#allocation19_spill] sm:$0xff] %v6021_v3  ;;  %v2250_v37 = vshra.s32 %v6025_v29, 16  ;;  %v1749_v6 = vpop.xlane.xlu1 %1748  ;;  %1930 = vmin.xlane.f32.xlu0 %v6021_v3 }
 0x5d8   : > { %vm1767_vm14 = vcmp.eq.f32.partialorder %v5804_v56, %v1749_v6  ;;  %v1747_v23 = vpop.xlane.xlu0 %1746  ;;  %v6031_v24 = vcvt.s32.f32 %v2264_v1 }
 0x5d9   : > { %v6034_v22 = vsel %vm1767_vm14, %v5659_v9, 128  ;;  %vm1766_vm15 = vcmp.eq.f32.partialorder %v5809_v53, %v1747_v23  ;;  %v6037_v40 = vcvt.s32.f32 %v2250_v37 }
 0x5da   : > { %7414 = vst [vmem:[#allocation20_spill] sm:$0xff] %v6031_v24  ;;  %v1969_v48 = vshra.s32 %v6034_v22, 16  ;;  %v6041_v43 = vsel %vm1766_vm15, %v5659_v9, 128  ;;  %2267 = vmin.xlane.f32.xlu1 %v6031_v24 }
 0x5db   : > { %7415 = vst [vmem:[#allocation21_spill] sm:$0xff] %v6037_v40  ;;  %v1955_v3 = vshra.s32 %v6041_v43, 16  ;;  %v2072_v56 = vpop.xlane.xlu1 %2071  ;;  %2253 = vmin.xlane.f32.xlu0 %v6037_v40 }
 0x5dc   : > { %vm2090_vm3 = vcmp.eq.f32.partialorder %v5814_v0, %v2072_v56  ;;  %v2070_v1 = vpop.xlane.xlu0 %2069  ;;  %v6047_v6 = vcvt.s32.f32 %v1969_v48 }
 0x5dd   : > { %v6050_v37 = vsel %vm2090_vm3, %v5659_v9, 128  ;;  %vm2089_vm4 = vcmp.eq.f32.partialorder %v5820_v19, %v2070_v1  ;;  %v6053_v53 = vcvt.s32.f32 %v1955_v3 }
 0x5de   : > { %7416 = vst [vmem:[#allocation22_spill] sm:$0xff] %v6047_v6  ;;  %v2292_v23 = vshra.s32 %v6050_v37, 16  ;;  %v6057_v24 = vsel %vm2089_vm4, %v5659_v9, 128  ;;  %1972 = vmin.xlane.f32.xlu1 %v6047_v6 }
 0x5df   : > { %7417 = vst [vmem:[#allocation23_spill] sm:$0xff] %v6053_v53  ;;  %v2278_v40 = vshra.s32 %v6057_v24, 16  ;;  %v1753_v0 = vpop.xlane.xlu1 %1752  ;;  %1958 = vmin.xlane.f32.xlu0 %v6053_v53 }
 0x5e0   : > { %vm1769_vm5 = vcmp.eq.f32.partialorder %v5826_v16, %v1753_v0  ;;  %v1751_v48 = vpop.xlane.xlu0 %1750  ;;  %v6063_v56 = vcvt.s32.f32 %v2292_v23 }
 0x5e1   : > { %v6066_v19 = vsel %vm1769_vm5, %v5659_v9, 128  ;;  %vm1768_vm6 = vcmp.eq.f32.partialorder %v5831_v55, %v1751_v48  ;;  %v6069_v3 = vcvt.s32.f32 %v2278_v40 }
 0x5e2   : > { %7418 = vst [vmem:[#allocation24_spill] sm:$0xff] %v6063_v56  ;;  %v1997_v1 = vshra.s32 %v6066_v19, 16  ;;  %v6073_v6 = vsel %vm1768_vm6, %v5659_v9, 128  ;;  %2295 = vmin.xlane.f32.xlu1 %v6063_v56 }
 0x5e3   : > { %7419 = vst [vmem:[#allocation25_spill] sm:$0xff] %v6069_v3  ;;  %v1983_v53 = vshra.s32 %v6073_v6, 16  ;;  %v2076_v16 = vpop.xlane.xlu1 %2075  ;;  %2281 = vmin.xlane.f32.xlu0 %v6069_v3 }
 0x5e4   : > { %vm2092_vm7 = vcmp.eq.f32.partialorder %v5836_v18, %v2076_v16  ;;  %v2074_v23 = vpop.xlane.xlu0 %2073  ;;  %v6079_v0 = vcvt.s32.f32 %v1997_v1  ;;  %v2482_v16 = vld [vmem:[%s7356_s6 + $0x10] sm:$0xff] }
 0x5e5   : > { %v6082_v55 = vsel %vm2092_vm7, %v5659_v9, 128  ;;  %vm2091_vm8 = vcmp.eq.f32.partialorder %v5841_v60, %v2074_v23  ;;  %v6085_v40 = vcvt.s32.f32 %v1983_v53  ;;  %v2480_v60 = vld [vmem:[%s7356_s6] sm:$0xff]  ;;  %v2481_v53 = vld [vmem:[%s7356_s6 + $0x8] sm:$0xff] }
 0x5e6   : > { %7420 = vst [vmem:[#allocation26_spill] sm:$0xff] %v6079_v0  ;;  %v2320_v48 = vshra.s32 %v6082_v55, 16  ;;  %v6089_v56 = vsel %vm2091_vm8, %v5659_v9, 128  ;;  %2000 = vmin.xlane.f32.xlu1 %v6079_v0  ;;  %v4612_v23 = vpack.c.bf16 %v2481_v53, %v2480_v60  ;;  %v2484_v9 = vld [vmem:[%s7356_s6 + $0x20] sm:$0xff]  ;;  %v2486_v60 = vld [vmem:[%s7356_s6 + $0x30] sm:$0xff]  ;;  %v2487_v53 = vld [vmem:[%s7356_s6 + $0x38] sm:$0xff] }
 0x5e7   : > { %7421 = vst [vmem:[#allocation27_spill] sm:$0xff] %v6085_v40  ;;  %7422 = vst [vmem:[#allocation28_spill] sm:$0xff] %v6089_v56  ;;  %v2306_v3 = vshra.s32 %v6089_v56, 16  ;;  %1986 = vmin.xlane.f32.xlu0 %v6085_v40  ;;  %v2109_v0 = vand.u32 65535, %v5865_v42  ;;  %v1814_v42 = vand.u32 65535, %v5881_v51  ;;  %v2137_v51 = vand.u32 65535, %v5897_v7 }
 0x5e8   : > { %v6094_v18 = vcvt.s32.f32 %v2320_v48  ;;  %4613 = vmatprep.subr.bf16.mxu1 %v4612_v23  ;;  %v1842_v7 = vand.u32 65535, %v5913_v58  ;;  %v2165_v58 = vand.u32 65535, %v5929_v57  ;;  %v2491_v57 = vld [vmem:[%s7356_s6 + $0x58] sm:$0xff] }
 0x5e9   : > { %v6096_v1 = vcvt.s32.f32 %v2306_v3  ;;  %v2483_v3 = vld [vmem:[%s7356_s6 + $0x18] sm:$0xff]  ;;  %4615 = vmatpush3.bf16.msra.mxu1 %v4612_v23  ;;  %v2489_v23 = vld [vmem:[%s7356_s6 + $0x48] sm:$0xff] }
 0x5ea   : > { %7423 = vst [vmem:[#allocation29_spill] sm:$0xff] %v6094_v18  ;;  %2323 = vmin.xlane.f32.xlu1 %v6094_v18  ;;  %v4616_v48 = vpack.c.bf16 %v2483_v3, %v2482_v16  ;;  %v4624_v16 = vpack.c.bf16 %v2487_v53, %v2486_v60  ;;  %v2488_v3 = vld [vmem:[%s7356_s6 + $0x40] sm:$0xff]  ;;  %v2123_v60 = vand.u32 65535, %v5858_v4 }
 0x5eb   : > { %7424 = vst [vmem:[#allocation30_spill] sm:$0xff] %v6096_v1  ;;  %2309 = vmin.xlane.f32.xlu0 %v6096_v1  ;;  %v2485_v1 = vld [vmem:[%s7356_s6 + $0x28] sm:$0xff] }
 0x5ec   : > { %4617 = vmatprep.subr.bf16.mxu1 %v4616_v48  ;;  %v4620_v18 = vpack.c.bf16 %v2485_v1, %v2484_v9  ;;  %v4628_v9 = vpack.c.bf16 %v2489_v23, %v2488_v3  ;;  %v1800_v1 = vand.u32 65535, %v5846_v8  ;;  %v2125_v3 = vcvt.s32.f32 %v2123_v60 }
 0x5ed   : > { %4619 = vmatpush3.bf16.msra.mxu1 %v4616_v48  ;;  %v1786_v48 = vand.u32 65535, %v5850_v36  ;;  %v1828_v36 = vand.u32 65535, %v5874_v13  ;;  %v2151_v13 = vand.u32 65535, %v5890_v30  ;;  %v1856_v30 = vand.u32 65535, %v5906_v12 }
 0x5ee   : > { %4621 = vmatprep.subr.bf16.mxu1 %v4620_v18  ;;  %v1802_v40 = vcvt.s32.f32 %v1800_v1  ;;  %v2179_v12 = vand.u32 65535, %v5922_v52  ;;  %v2490_v52 = vld [vmem:[%s7356_s6 + $0x50] sm:$0xff] }
 0x5ef   : > { %v1830_v1 = vcvt.s32.f32 %v1828_v36 }
 0x5f1   : > { %4623 = vmatpush3.bf16.msra.mxu1 %v4620_v18  ;;  %v1788_v18 = vcvt.s32.f32 %v1786_v48 }
 0x5f2   : > { %4625 = vmatprep.subr.bf16.mxu1 %v4624_v16 }
 0x5f5   : > { %4627 = vmatpush3.bf16.msra.mxu1 %v4624_v16 }
 0x5f6   : > { %4629 = vmatprep.subr.bf16.mxu1 %v4628_v9 }
 0x5f9   : > { %4631 = vmatpush3.bf16.msra.mxu1 %v4628_v9 }
 0x63b   : > { %v6133_v53 = vpop.xlane.xlu1 %1804 }
 0x63c   : > { %v6136_v56 = vpop.xlane.xlu0 %1790  ;;  %vm1806_vm9 = vcmp.eq.f32.partialorder %v5855_v10, %v6133_v53  ;;  %v2111_v10 = vcvt.s32.f32 %v2109_v0 }
 0x63d   : > { %v1807_v16 = vsel %vm1806_vm9, %v1802_v40, inf  ;;  %vm1792_vm10 = vcmp.eq.f32.partialorder %v5861_v62, %v6136_v56 }
 0x63e   : > { %1808 = vmin.xlane.f32.xlu1 %v1807_v16  ;;  %v1793_v8 = vsel %vm1792_vm10, %v1788_v18, inf  ;;  %v2153_v18 = vcvt.s32.f32 %v2151_v13  ;;  %v4632_v13 = vpack.c.bf16 %v2491_v57, %v2490_v52  ;;  %v2235_v52 = vand.u32 65535, %v5986_v45 }
 0x63f   : > { %v6143_v4 = vpop.xlane.xlu1 %2127  ;;  %1794 = vmin.xlane.f32.xlu0 %v1793_v8 }
 0x640   : > { %v6146_v23 = vpop.xlane.xlu0 %2113  ;;  %vm2129_vm11 = vcmp.eq.f32.partialorder %v5871_v50, %v6143_v4  ;;  %v1816_v50 = vcvt.s32.f32 %v1814_v42  ;;  %4633 = vmatprep.subr.bf16.mxu1 %v4632_v13 }
 0x641   : > { %v2130_v40 = vsel %vm2129_vm11, %v2125_v3, inf  ;;  %vm2115_vm12 = vcmp.eq.f32.partialorder %v5877_v63, %v6146_v23  ;;  %v1858_v3 = vcvt.s32.f32 %v1856_v30  ;;  %4635 = vmatpush3.bf16.msra.mxu1 %v4632_v13 }
 0x642   : > { %2131 = vmin.xlane.f32.xlu1 %v2130_v40  ;;  %v2116_v62 = vsel %vm2115_vm12, %v2111_v10, inf  ;;  %v1884_v40 = vand.u32 65535, %v5938_v61 }
 0x643   : > { %v6153_v9 = vpop.xlane.xlu1 %1832  ;;  %2117 = vmin.xlane.f32.xlu0 %v2116_v62 }
 0x644   : > { %v6156_v48 = vpop.xlane.xlu0 %1818  ;;  %vm1834_vm13 = vcmp.eq.f32.partialorder %v5887_v34, %v6153_v9  ;;  %v2139_v34 = vcvt.s32.f32 %v2137_v51  ;;  %v2167_v51 = vcvt.s32.f32 %v2165_v58  ;;  %v1886_v30 = vcvt.s32.f32 %v1884_v40 }
 0x645   : > { %v1835_v0 = vsel %vm1834_vm13, %v1830_v1, inf  ;;  %vm1820_vm14 = vcmp.eq.f32.partialorder %v5893_v39, %v6156_v48  ;;  %v1870_v1 = vand.u32 65535, %v5945_v49  ;;  %v2493_v49 = vld [vmem:[%s7356_s6 + $0x68] sm:$0xff]  ;;  %v2221_v40 = vand.u32 65535, %v5993_v31 }
 0x646   : > { %1836 = vmin.xlane.f32.xlu1 %v1835_v0  ;;  %v1821_v63 = vsel %vm1820_vm14, %v1816_v50, inf  ;;  %v2492_v0 = vld [vmem:[%s7356_s6 + $0x60] sm:$0xff]  ;;  %v2237_v31 = vcvt.s32.f32 %v2235_v52 }
 0x647   : > { %v6163_v60 = vpop.xlane.xlu1 %2155  ;;  %1822 = vmin.xlane.f32.xlu0 %v1821_v63  ;;  %v2207_v63 = vand.u32 65535, %v5954_v28 }
 0x648   : > { %v6166_v16 = vpop.xlane.xlu0 %2141  ;;  %vm2157_vm15 = vcmp.eq.f32.partialorder %v5903_v33, %v6163_v60  ;;  %v1844_v33 = vcvt.s32.f32 %v1842_v7 }
 0x649   : > { %v2158_v8 = vsel %vm2157_vm15, %v2153_v18, inf  ;;  %vm2143_vm3 = vcmp.eq.f32.partialorder %v5909_v21, %v6166_v16  ;;  %v4636_v18 = vpack.c.bf16 %v2493_v49, %v2492_v0 }
 0x64a   : > { %2159 = vmin.xlane.f32.xlu1 %v2158_v8  ;;  %v2144_v39 = vsel %vm2143_vm3, %v2139_v34, inf  ;;  %v1872_v34 = vcvt.s32.f32 %v1870_v1  ;;  %v1940_v1 = vand.u32 65535, %v6002_v54  ;;  %v2263_v54 = vand.u32 65535, %v6018_v27 }
 0x64b   : > { %v6173_v36 = vpop.xlane.xlu1 %1860  ;;  %2145 = vmin.xlane.f32.xlu0 %v2144_v39  ;;  %4637 = vmatprep.subr.bf16.mxu1 %v4636_v18  ;;  %v2494_v39 = vld [vmem:[%s7356_s6 + $0x70] sm:$0xff]  ;;  %v1968_v27 = vand.u32 65535, %v6034_v22  ;;  %v2291_v22 = vand.u32 65535, %v6050_v37  ;;  %v1996_v37 = vand.u32 65535, %v6066_v19  ;;  %v2319_v19 = vand.u32 65535, %v6082_v55 }
 0x64c   : > { %v6176_v42 = vpop.xlane.xlu0 %1846  ;;  %vm1862_vm4 = vcmp.eq.f32.partialorder %v5919_v26, %v6173_v36  ;;  %v2181_v26 = vcvt.s32.f32 %v2179_v12  ;;  %4639 = vmatpush3.bf16.msra.mxu1 %v4636_v18  ;;  %v1912_v12 = vand.u32 65535, %v5970_v25 }
 0x64d   : > { %v1863_v10 = vsel %vm1862_vm4, %v1858_v3, inf  ;;  %vm1848_vm5 = vcmp.eq.f32.partialorder %v5925_v2, %v6176_v42  ;;  %v2209_v3 = vcvt.s32.f32 %v2207_v63  ;;  %v1942_v63 = vcvt.s32.f32 %v1940_v1  ;;  %v7430_v1 = vld [vmem:[#allocation24_spill] sm:$0xff] }
 0x64e   : > { %1864 = vmin.xlane.f32.xlu1 %v1863_v10  ;;  %v1849_v21 = vsel %vm1848_vm5, %v1844_v33, inf  ;;  %v2321_v55 = vcvt.s32.f32 %v2319_v19 }
 0x64f   : > { %v6189_v62 = vpop.xlane.xlu1 %2183  ;;  %1850 = vmin.xlane.f32.xlu0 %v1849_v21 }
 0x650   : > { %v6192_v2 = vpop.xlane.xlu0 %2169  ;;  %vm2185_vm6 = vcmp.eq.f32.partialorder %v5935_v14, %v6189_v62 }
 0x651   : > { %v2186_v50 = vsel %vm2185_vm6, %v2181_v26, inf  ;;  %vm2171_vm7 = vcmp.eq.f32.partialorder %v5941_v32, %v6192_v2  ;;  %v2193_v32 = vand.u32 65535, %v5961_v35  ;;  %v2495_v35 = vld [vmem:[%s7356_s6 + $0x78] sm:$0xff] }
 0x652   : > { %2187 = vmin.xlane.f32.xlu1 %v2186_v50  ;;  %v2172_v61 = vsel %vm2171_vm7, %v2167_v51, inf  ;;  %v4640_v58 = vpack.c.bf16 %v2495_v35, %v2494_v39  ;;  %v1926_v50 = vand.u32 65535, %v6009_v15  ;;  %v2249_v15 = vand.u32 65535, %v6025_v29  ;;  %v7426_v39 = vld [vmem:[#allocation20_spill] sm:$0xff] }
 0x653   : > { %v6205_v14 = vpop.xlane.xlu1 %1888  ;;  %2173 = vmin.xlane.f32.xlu0 %v2172_v61  ;;  %v2195_v10 = vcvt.s32.f32 %v2193_v32  ;;  %v7425_v32 = vld [vmem:[#allocation19_spill] sm:$0xff]  ;;  %v1954_v29 = vand.u32 65535, %v6041_v43  ;;  %v2277_v43 = vand.u32 65535, %v6057_v24  ;;  %v1982_v24 = vand.u32 65535, %v6073_v6 }
 0x654   : > { %v6208_v7 = vpop.xlane.xlu0 %1874  ;;  %vm1890_vm8 = vcmp.eq.f32.partialorder %v5951_v41, %v6205_v14  ;;  %4641 = vmatprep.subr.bf16.mxu1 %v4640_v58 }
 0x655   : > { %v1891_v8 = vsel %vm1890_vm8, %v1886_v30, inf  ;;  %vm1876_vm9 = vcmp.eq.f32.partialorder %v5957_v59, %v6208_v7  ;;  %v1898_v59 = vand.u32 65535, %v5977_v46  ;;  %4643 = vmatpush3.bf16.msra.mxu1 %v4640_v58  ;;  %v1914_v46 = vcvt.s32.f32 %v1912_v12  ;;  %v7427_v12 = vld [vmem:[#allocation21_spill] sm:$0xff] }
 0x656   : > { %1892 = vmin.xlane.f32.xlu1 %v1891_v8  ;;  %v1877_v28 = vsel %vm1876_vm9, %v1872_v34, inf  ;;  %v2265_v8 = vcvt.s32.f32 %v2263_v54  ;;  %v1998_v54 = vcvt.s32.f32 %v1996_v37  ;;  %v2120_v37 = vcvt.f32.s32 %v6146_v23 }
 0x657   : > { %v6221_v41 = vpop.xlane.xlu1 %2211  ;;  %1878 = vmin.xlane.f32.xlu0 %v1877_v28  ;;  %v2190_v23 = vcvt.f32.s32 %v6189_v62 }
 0x658   : > { %v6224_v33 = vpop.xlane.xlu0 %2197  ;;  %vm2213_vm10 = vcmp.eq.f32.partialorder %v5967_v11, %v6221_v41  ;;  %v1900_v11 = vcvt.s32.f32 %v1898_v59  ;;  %v1970_v59 = vcvt.s32.f32 %v1968_v27 }
 0x659   : > { %v2214_v21 = vsel %vm2213_vm10, %v2209_v3, inf  ;;  %vm2199_vm11 = vcmp.eq.f32.partialorder %v5973_v44, %v6224_v33  ;;  %v4836_v44 = vmov 0.0|0.0  }
 0x65a   : > { %2215 = vmin.xlane.f32.xlu1 %v2214_v21  ;;  %v2200_v25 = vsel %vm2199_vm11, %v2195_v10, inf  ;;  %4644 = vmatprep.subr.bf16.mxu0 %v4836_v44  ;;  %v7428_v21 = vld [vmem:[#allocation22_spill] sm:$0xff] }
 0x65b   : > { %v6231_v57 = vpop.xlane.xlu1 %1916  ;;  %2201 = vmin.xlane.f32.xlu0 %v2200_v25  ;;  %v1956_v25 = vcvt.s32.f32 %v1954_v29  ;;  %v7435_v29 = vld [vmem:[#allocation29_spill] sm:$0xff] }
 0x65c   : > { %v6234_v26 = vpop.xlane.xlu0 %1902  ;;  %vm1918_vm12 = vcmp.eq.f32.partialorder %v5983_v38, %v6231_v57  ;;  %v2223_v38 = vcvt.s32.f32 %v2221_v40 }
 0x65d   : > { %v1919_v13 = vsel %vm1918_vm12, %v1914_v46, inf  ;;  %vm1904_vm13 = vcmp.eq.f32.partialorder %v5989_v20, %v6234_v26  ;;  %v7429_v46 = vld [vmem:[#allocation23_spill] sm:$0xff] }
 0x65e   : > { %1920 = vmin.xlane.f32.xlu1 %v1919_v13  ;;  %v1905_v45 = vsel %vm1904_vm13, %v1900_v11, inf  ;;  %v2293_v13 = vcvt.s32.f32 %v2291_v22  ;;  %v2882_v22 = vld [vmem:[%s7358_s8] sm:$0xff] }
 0x65f   : > { %v6242_v51 = vpop.xlane.xlu1 %2239  ;;  %1906 = vmin.xlane.f32.xlu0 %v1905_v45 }
 0x660   : > { %v6245_v61 = vpop.xlane.xlu0 %2225  ;;  %vm2241_vm14 = vcmp.eq.f32.partialorder %v5999_v17, %v6242_v51  ;;  %v1928_v17 = vcvt.s32.f32 %v1926_v50 }
 0x661   : > { %v2242_v20 = vsel %vm2241_vm14, %v2237_v31, inf  ;;  %vm2227_vm15 = vcmp.eq.f32.partialorder %v6005_v47, %v6245_v61  ;;  %v2279_v31 = vcvt.s32.f32 %v2277_v43 }
 0x662   : > { %2243 = vmin.xlane.f32.xlu1 %v2242_v20  ;;  %v2228_v0 = vsel %vm2227_vm15, %v2223_v38, inf  ;;  %v7431_v38 = vld [vmem:[#allocation25_spill] sm:$0xff] }
 0x663   : > { %v6252_v49 = vpop.xlane.xlu1 %1944  ;;  %2229 = vmin.xlane.f32.xlu0 %v2228_v0 }
 0x664   : > { %v6255_v30 = vpop.xlane.xlu0 %1930  ;;  %vm1946_vm3 = vcmp.eq.f32.partialorder %v6015_v5, %v6252_v49  ;;  %v2251_v5 = vcvt.s32.f32 %v2249_v15 }
 0x665   : > { %v1947_v18 = vsel %vm1946_vm3, %v1942_v63, inf  ;;  %vm1932_vm4 = vcmp.eq.f32.partialorder %v7425_v32, %v6255_v30  ;;  %v7432_v63 = vld [vmem:[#allocation28_spill] sm:$0xff] }
 0x666   : > { %1948 = vmin.xlane.f32.xlu1 %v1947_v18  ;;  %v1933_v47 = vsel %vm1932_vm4, %v1928_v17, inf  ;;  %v2305_v6 = vand.u32 65535, %v7432_v63  ;;  %v7433_v17 = vld [vmem:[#allocation26_spill] sm:$0xff]  ;;  %v1984_v18 = vcvt.s32.f32 %v1982_v24 }
 0x667   : > { %v6262_v34 = vpop.xlane.xlu1 %2267  ;;  %1934 = vmin.xlane.f32.xlu0 %v1933_v47  ;;  %v7434_v47 = vld [vmem:[#allocation27_spill] sm:$0xff] }
 0x668   : > { %v6265_v28 = vpop.xlane.xlu0 %2253  ;;  %vm2269_vm5 = vcmp.eq.f32.partialorder %v7426_v39, %v6262_v34 }
 0x669   : > { %v2270_v35 = vsel %vm2269_vm5, %v2265_v8, inf  ;;  %vm2255_vm6 = vcmp.eq.f32.partialorder %v7427_v12, %v6265_v28  ;;  %v7436_v12 = vld [vmem:[#allocation30_spill] sm:$0xff] }
 0x66a   : > { %2271 = vmin.xlane.f32.xlu1 %v2270_v35  ;;  %v2256_v3 = vsel %vm2255_vm6, %v2251_v5, inf  ;;  %v2307_v5 = vcvt.s32.f32 %v2305_v6 }
 0x66b   : > { %v6272_v58 = vpop.xlane.xlu1 %1972  ;;  %2257 = vmin.xlane.f32.xlu0 %v2256_v3 }
 0x66c   : > { %v6275_v10 = vpop.xlane.xlu0 %1958  ;;  %vm1974_vm7 = vcmp.eq.f32.partialorder %v7428_v21, %v6272_v58  ;;  %v7437_v21 = vlaneseq }
 0x66d   : > { %v1975_v52 = vsel %vm1974_vm7, %v1970_v59, inf  ;;  %vm1960_vm8 = vcmp.eq.f32.partialorder %v7429_v46, %v6275_v10  ;;  %v2883_v59 = vld [vmem:[%s7358_s8 + $0x8] sm:$0xff]  ;;  %v1797_v46 = vcvt.f32.s32 %v6136_v56  ;;  %v1867_v56 = vcvt.f32.s32 %v6173_v36 }
 0x66e   : > { %1976 = vmin.xlane.f32.xlu1 %v1975_v52  ;;  %v1961_v40 = vsel %vm1960_vm8, %v1956_v25, inf  ;;  %v6315_v43 = vpack.c.bf16 %v2883_v59, %v2882_v22  ;;  %v6319_v25 = vshrl.u32 %v7437_v21, 7  ;;  %v1811_v52 = vcvt.f32.s32 %v6133_v53 }
 0x66f   : > { %v6282_v11 = vpop.xlane.xlu1 %2295  ;;  %1962 = vmin.xlane.f32.xlu0 %v1961_v40  ;;  %v2134_v40 = vcvt.f32.s32 %v6143_v4  ;;  %v2148_v53 = vcvt.f32.s32 %v6166_v16  ;;  %v1853_v4 = vcvt.f32.s32 %v6176_v42  ;;  %v1895_v36 = vcvt.f32.s32 %v6205_v14 }
 0x670   : > { %v6285_v45 = vpop.xlane.xlu0 %2281  ;;  %vm2297_vm9 = vcmp.eq.f32.partialorder %v7430_v1, %v6282_v11  ;;  %4669 = vmatprep.subr.bf16.mxu1 %v6315_v43  ;;  %v2351_v24 = vadd.s32 8, %v6319_v25  ;;  %v1825_v1 = vcvt.f32.s32 %v6156_v48  ;;  %v1881_v42 = vcvt.f32.s32 %v6208_v7 }
 0x671   : > { %v2298_v50 = vsel %vm2297_vm9, %v2293_v13, inf  ;;  %vm2283_vm10 = vcmp.eq.f32.partialorder %v7431_v38, %v6285_v45  ;;  %v1839_v13 = vcvt.f32.s32 %v6153_v9  ;;  %v1798_v38 = vshll.u32 %v1797_v46, 16 }
 0x672   : > { %2299 = vmin.xlane.f32.xlu1 %v2298_v50  ;;  %v2284_v20 = vsel %vm2283_vm10, %v2279_v31, inf  ;;  %v6329_v31 = vstv %s4045_s20  ;;  %v1812_v50 = vshll.u32 %v1811_v52, 16  ;;  %v2135_v19 = vshll.u32 %v2134_v40, 16 }
 0x673   : > { %v6292_v0 = vpop.xlane.xlu1 %2000  ;;  %2285 = vmin.xlane.f32.xlu0 %v2284_v20  ;;  %v2162_v20 = vcvt.f32.s32 %v6163_v60  ;;  %v2121_v9 = vshll.u32 %v2120_v37, 16  ;;  %v2369_v48 = vadd.s32 %v6329_v31, %v2351_v24  ;;  %v1826_v6 = vshll.u32 %v1825_v1, 16  ;;  %v7438_v1 = vld [vmem:[#allocation18_spill] sm:$0xff] }
 0x674   : > { %v6295_v15 = vpop.xlane.xlu0 %1986  ;;  %vm2002_vm11 = vcmp.eq.f32.partialorder %v7433_v17, %v6292_v0  ;;  %v2176_v17 = vcvt.f32.s32 %v6192_v2  ;;  %v2368_v60 = vadd.s32 %v6329_v31, %v6319_v25  ;;  %v2218_v2 = vcvt.f32.s32 %v6221_v41 }
 0x675   : > { %v2003_v32 = vsel %vm2002_vm11, %v1998_v54, inf  ;;  %vm1988_vm12 = vcmp.eq.f32.partialorder %v7434_v47, %v6295_v15  ;;  %v1840_v54 = vshll.u32 %v1839_v13, 16  ;;  %v2163_v16 = vshll.u32 %v2162_v20, 16 }
 0x676   : > { %2004 = vmin.xlane.f32.xlu1 %v2003_v32  ;;  %v1989_v27 = vsel %vm1988_vm12, %v1984_v18, inf  ;;  %v6342_v47 = vshll.u32 %v2148_v53, 16  ;;  %vm2385_vm15 = vcmp.lt.s32.totalorder %v2369_v48, 256  ;;  %vm2384_vm3 = vcmp.lt.s32.totalorder %v2368_v60, 256  ;;  %v2885_v60 = vld [vmem:[%s7358_s8 + $0x18] sm:$0xff] }
 0x677   : > { %v6301_v8 = vpop.xlane.xlu1 %2323  ;;  %1990 = vmin.xlane.f32.xlu0 %v1989_v27  ;;  %v6344_v27 = vshll.u32 %v1867_v56, 16  ;;  %v6353_v7 = vshll.u32 %v1895_v36, 16  ;;  %v6355_v59 = vshll.u32 %v1881_v42, 16  ;;  %v2353_v52 = vadd.s32 24, %v6319_v25 }
 0x678   : > { %vm2325_vm13 = vcmp.eq.f32.partialorder %v7435_v29, %v6301_v8  ;;  %v6305_v39 = vpop.xlane.xlu0 %2309  ;;  %v6348_v29 = vshll.u32 %v2190_v23, 16  ;;  %v2204_v46 = vcvt.f32.s32 %v6224_v33  ;;  %v4837_v41 = vmov 0.0  }
 0x679   : > { %v2326_v35 = vsel %vm2325_vm13, %v2321_v55, inf  ;;  %vm2311_vm14 = vcmp.eq.f32.partialorder %v7436_v12, %v6305_v39  ;;  %v6346_v55 = vshll.u32 %v1853_v4, 16  ;;  %v6351_v12 = vshll.u32 %v2176_v17, 16 }
 0x67a   : > { %2327 = vmin.xlane.f32.xlu1 %v2326_v35  ;;  %v2312_v3 = vsel %vm2311_vm14, %v2307_v5, inf  ;;  %v6360_v37 = vsel %vm2385_vm15, 1.0, %v4837_v41  ;;  %v2352_v13 = vadd.s32 16, %v6319_v25  ;;  %v6363_v24 = vshll.u32 %v2218_v2, 16 }
 0x67b   : > { %2313 = vmin.xlane.f32.xlu0 %v2312_v3  ;;  %v6368_v53 = vsel %vm2384_vm3, 1.0, %v4837_v41  ;;  %v1923_v33 = vcvt.f32.s32 %v6231_v57  ;;  %v2371_v48 = vadd.s32 %v6329_v31, %v2353_v52  ;;  %v1909_v52 = vcvt.f32.s32 %v6234_v26 }
 0x67c   : > { %v2370_v17 = vadd.s32 %v6329_v31, %v2352_v13 }
 0x67d   : > { %vm2387_vm6 = vcmp.lt.s32.totalorder %v2371_v48, 256 }
 0x67e   : > { %vm2386_vm7 = vcmp.lt.s32.totalorder %v2370_v17, 256 }
 0x6cb   : > { %v1809_v63 = vpop.xlane.xlu1 %1808 }
 0x6cc   : > { %v1810_v18 = vcvt.f32.s32 %v1809_v63  ;;  %v1795_v32 = vpop.xlane.xlu0 %1794 }
 0x6cd   : > { %v1796_v62 = vcvt.f32.s32 %v1795_v32  ;;  %v2884_v32 = vld [vmem:[%s7358_s8 + $0x10] sm:$0xff] }
 0x6ce   : > { %v1813_v5 = vadd.s32 %v1812_v50, %v1810_v18  ;;  %v2355_v18 = vadd.s32 40, %v6319_v25 }
 0x6cf   : > { %v2132_v35 = vpop.xlane.xlu1 %2131  ;;  %v1799_v3 = vadd.s32 %v1798_v38, %v1796_v62 }
 0x6d0   : > { %v2133_v14 = vcvt.f32.s32 %v2132_v35  ;;  %v2118_v22 = vpop.xlane.xlu0 %2117  ;;  %v2011_v50 = vsel %vm1704_vm1, %v1813_v5, 0  ;;  %v2354_v5 = vadd.s32 32, %v6319_v25  ;;  %v6393_v35 = vshll.u32 %v2204_v46, 16 }
 0x6d1   : > { %v2119_v21 = vcvt.f32.s32 %v2118_v22  ;;  %v2010_v56 = vsel %vm1704_vm1, %v1799_v3, 0 }
 0x6d2   : > { %v2136_v40 = vadd.s32 %v2135_v19, %v2133_v14 }
 0x6d3   : > { %v2122_v38 = vadd.s32 %v2121_v9, %v2119_v21  ;;  %v1837_v20 = vpop.xlane.xlu1 %1836 }
 0x6d4   : > { %v2334_v4 = vsel %vm2026_vm2, %v2136_v40, %v2011_v50  ;;  %v1838_v23 = vcvt.f32.s32 %v1837_v20  ;;  %v1823_v19 = vpop.xlane.xlu0 %1822  ;;  %v6403_v50 = vshll.u32 %v1923_v33, 16 }
 0x6d5   : > { %vm2433_vm4 = vcmp.eq.s32.totalorder %v7438_v1, %v2334_v4  ;;  %v1824_v63 = vcvt.f32.s32 %v1823_v19  ;;  %v2333_v9 = vsel %vm2026_vm2, %v2122_v38, %v2010_v56  ;;  %v2372_v56 = vadd.s32 %v6329_v31, %v2354_v5 }
 0x6d6   : > { %vm2432_vm5 = vcmp.eq.s32.totalorder %v7438_v1, %v2333_v9  ;;  %v2449_v57 = vsel %vm2433_vm4, 1.0, %v4837_v41  ;;  %v1841_v36 = vadd.s32 %v1840_v54, %v1838_v23  ;;  %v4672_v54 = vpack.c.bf16 %v2885_v60, %v2884_v32 }
 0x6d7   : > { %v2160_v42 = vpop.xlane.xlu1 %2159  ;;  %v2448_v62 = vsel %vm2432_vm5, 1.0, %v4837_v41  ;;  %v2465_v2 = vmul.f32 %v6360_v37, %v2449_v57  ;;  %v1827_v3 = vadd.s32 %v1826_v6, %v1824_v63  ;;  %v2373_v6 = vadd.s32 %v6329_v31, %v2355_v18 }
 0x6d8   : > { %v2161_v14 = vcvt.f32.s32 %v2160_v42  ;;  %v2146_v22 = vpop.xlane.xlu0 %2145  ;;  %v2464_v21 = vmul.f32 %v6368_v53, %v2448_v62  ;;  %v2013_v26 = vsel %vm1704_vm1, %v1841_v36, 0  ;;  %v6416_v19 = vsel %vm2387_vm6, 1.0, %v4837_v41 }
 0x6d9   : > { %v2147_v40 = vcvt.f32.s32 %v2146_v22  ;;  %v2012_v4 = vsel %vm1704_vm1, %v1827_v3, 0  ;;  %v6423_v9 = vsel %vm2386_vm7, 1.0, %v4837_v41  ;;  %v6427_v57 = vshll.u32 %v1909_v52, 16 }
 0x6da   : > { %v2164_v13 = vadd.s32 %v2163_v16, %v2161_v14  ;;  %4465 = vmatprep.mubr.f32.mxu1 %v2464_v21  ;;  %v4645_v46 = vpack.c.bf16 %v2465_v2, %v2464_v21  ;;  %vm2389_vm10 = vcmp.lt.s32.totalorder %v2373_v6, 256  ;;  %vm2388_vm11 = vcmp.lt.s32.totalorder %v2372_v56, 256 }
 0x6db   : > { %v2150_v38 = vadd.s32 %v6342_v47, %v2147_v40  ;;  %v1865_v20 = vpop.xlane.xlu1 %1864  ;;  %4466 = vmatmul.mubr.f32.vlgmr.msra.gmra.mrb[16].mxu1 %v2465_v2  ;;  %v2357_v2 = vadd.s32 56, %v6319_v25  ;;  %v2246_v5 = vcvt.f32.s32 %v6242_v51  ;;  %v2232_v3 = vcvt.f32.s32 %v6245_v61 }
 0x6dc   : > { %4145 = vst [vmem:[%s6400_s16] sm:$0xff] %v4645_v46   ;;  %v1866_v16 = vcvt.f32.s32 %v1865_v20  ;;  %4646 = vmatpush3.bf16.msra.mxu0 %v4645_v46  ;;  %v1851_v23 = vpop.xlane.xlu0 %1850  ;;  %v2336_v33 = vsel %vm2026_vm2, %v2164_v13, %v2013_v26  ;;  %4671 = vmatpush3.bf16.msra.mxu1 %v6315_v43  ;;  %v2356_v14 = vadd.s32 48, %v6319_v25  ;;  %v1951_v22 = vcvt.f32.s32 %v6252_v49 }
 0x6dd   : > { %v1852_v47 = vcvt.f32.s32 %v1851_v23  ;;  %v2335_v63 = vsel %vm2026_vm2, %v2150_v38, %v2012_v4  ;;  %vm2435_vm8 = vcmp.eq.s32.totalorder %v7438_v1, %v2336_v33  ;;  %4647 = vmatprep.subr.bf16.mxu0 %v4836_v44  ;;  %4673 = vmatprep.subr.bf16.mxu1 %v4672_v54  ;;  %v1937_v21 = vcvt.f32.s32 %v6255_v30 }
 0x6de   : > { %vm2434_vm9 = vcmp.eq.s32.totalorder %v7438_v1, %v2335_v63  ;;  %v2451_v48 = vsel %vm2435_vm8, 1.0, %v4837_v41  ;;  %v1869_v43 = vadd.s32 %v6344_v27, %v1866_v16  ;;  %v6448_v61 = vsel %vm2388_vm11, 1.0, %v4837_v41 }
 0x6df   : > { %v2188_v18 = vpop.xlane.xlu1 %2187  ;;  %v2450_v32 = vsel %vm2434_vm9, 1.0, %v4837_v41  ;;  %v2467_v17 = vmul.f32 %v6416_v19, %v2451_v48  ;;  %v1855_v60 = vadd.s32 %v6346_v55, %v1852_v47  ;;  %v6452_v49 = vsel %vm2389_vm10, 1.0, %v4837_v41 }
 0x6e0   : > { %v2189_v36 = vcvt.f32.s32 %v2188_v18  ;;  %v2174_v42 = vpop.xlane.xlu0 %2173  ;;  %v2466_v62 = vmul.f32 %v6423_v9, %v2450_v32  ;;  %4675 = vmatpush3.bf16.msra.mxu1 %v4672_v54  ;;  %v2015_v40 = vsel %vm1704_vm1, %v1869_v43, 0  ;;  %v2375_v46 = vadd.s32 %v6329_v31, %v2357_v2 }
 0x6e1   : > { %v2175_v27 = vcvt.f32.s32 %v2174_v42  ;;  %v2014_v30 = vsel %vm1704_vm1, %v1855_v60, 0  ;;  %v2374_v6 = vadd.s32 %v6329_v31, %v2356_v14  ;;  %v2247_v20 = vshll.u32 %v2246_v5, 16 }
 0x6e2   : > { %v2192_v55 = vadd.s32 %v6348_v29, %v2189_v36  ;;  %4468 = vmatprep.mubr.f32.mxu1 %v2466_v62  ;;  %v4648_v52 = vpack.c.bf16 %v2467_v17, %v2466_v62  ;;  %v6465_v56 = vshll.u32 %v2232_v3, 16  ;;  %v6469_v16 = vshll.u32 %v1951_v22, 16 }
 0x6e3   : > { %v2178_v54 = vadd.s32 %v6351_v12, %v2175_v27  ;;  %v1893_v51 = vpop.xlane.xlu1 %1892  ;;  %4469 = vmatmul.mubr.f32.gmra.mrb[18].mxu1 %v2467_v17  ;;  %vm2391_vm14 = vcmp.lt.s32.totalorder %v2375_v46, 256  ;;  %v6476_v17 = vshll.u32 %v1937_v21, 16  ;;  %vm2390_vm15 = vcmp.lt.s32.totalorder %v2374_v6, 256 }
 0x6e4   : > { %v1894_v29 = vcvt.f32.s32 %v1893_v51  ;;  %4181 = vst [vmem:[%s6400_s16 + $0x8] sm:$0xff] %v4648_v52   ;;  %4649 = vmatpush3.bf16.msra.mxu0 %v4648_v52  ;;  %v1879_v13 = vpop.xlane.xlu0 %1878  ;;  %v2338_v12 = vsel %vm2026_vm2, %v2192_v55, %v2015_v40  ;;  %v2359_v36 = vadd.s32 72, %v6319_v25  ;;  %v2260_v2 = vcvt.f32.s32 %v6265_v28 }
 0x6e5   : > { %v1880_v26 = vcvt.f32.s32 %v1879_v13  ;;  %v2337_v38 = vsel %vm2026_vm2, %v2178_v54, %v2014_v30  ;;  %vm2437_vm12 = vcmp.eq.s32.totalorder %v7438_v1, %v2338_v12  ;;  %4650 = vmatprep.subr.bf16.mxu0 %v4836_v44  ;;  %v6487_v14 = vsel %vm2391_vm14, 1.0, %v4837_v41 }
 0x6e6   : > { %vm2436_vm13 = vcmp.eq.s32.totalorder %v7438_v1, %v2337_v38  ;;  %v2453_v4 = vsel %vm2437_vm12, 1.0, %v4837_v41  ;;  %v1897_v23 = vadd.s32 %v6353_v7, %v1894_v29  ;;  %v2274_v7 = vcvt.f32.s32 %v6262_v34 }
 0x6e7   : > { %v2216_v33 = vpop.xlane.xlu1 %2215  ;;  %v2452_v47 = vsel %vm2436_vm13, 1.0, %v4837_v41  ;;  %v2469_v63 = vmul.f32 %v6452_v49, %v2453_v4  ;;  %v1883_v48 = vadd.s32 %v6355_v59, %v1880_v26  ;;  %v2358_v59 = vadd.s32 64, %v6319_v25 }
 0x6e8   : > { %v2217_v43 = vcvt.f32.s32 %v2216_v33  ;;  %v2202_v18 = vpop.xlane.xlu0 %2201  ;;  %v2468_v32 = vmul.f32 %v6448_v61, %v2452_v47  ;;  %v2017_v5 = vsel %vm1704_vm1, %v1897_v23, 0  ;;  %v6494_v28 = vsel %vm2390_vm15, 1.0, %v4837_v41 }
 0x6e9   : > { %v2203_v60 = vcvt.f32.s32 %v2202_v18  ;;  %v2016_v34 = vsel %vm1704_vm1, %v1883_v48, 0  ;;  %v2377_v52 = vadd.s32 %v6329_v31, %v2359_v36  ;;  %v2376_v54 = vadd.s32 %v6329_v31, %v2358_v59 }
 0x6ea   : > { %v2220_v42 = vadd.s32 %v6363_v24, %v2217_v43  ;;  %4471 = vmatprep.mubr.f32.mxu1 %v2468_v32  ;;  %v4651_v62 = vpack.c.bf16 %v2469_v63, %v2468_v32  ;;  %v2361_v51 = vadd.s32 88, %v6319_v25  ;;  %v2360_v46 = vadd.s32 80, %v6319_v25 }
 0x6eb   : > { %v2206_v3 = vadd.s32 %v6393_v35, %v2203_v60  ;;  %v1921_v27 = vpop.xlane.xlu1 %1920  ;;  %4472 = vmatmul.mubr.f32.gmra.mrb[20].mxu1 %v2469_v63  ;;  %v2275_v26 = vshll.u32 %v2274_v7, 16  ;;  %v2261_v33 = vshll.u32 %v2260_v2, 16  ;;  %v1979_v47 = vcvt.f32.s32 %v6272_v58 }
 0x6ec   : > { %v1922_v24 = vcvt.f32.s32 %v1921_v27  ;;  %4182 = vst [vmem:[%s6400_s16 + $0x10] sm:$0xff] %v4651_v62   ;;  %4652 = vmatpush3.bf16.msra.mxu0 %v4651_v62  ;;  %v1907_v22 = vpop.xlane.xlu0 %1906  ;;  %v2340_v21 = vsel %vm2026_vm2, %v2220_v42, %v2017_v5  ;;  %vm2393_vm5 = vcmp.lt.s32.totalorder %v2377_v52, 256  ;;  %vm2392_vm6 = vcmp.lt.s32.totalorder %v2376_v54, 256 }
 0x6ed   : > { %v1908_v35 = vcvt.f32.s32 %v1907_v22  ;;  %v2339_v55 = vsel %vm2026_vm2, %v2206_v3, %v2016_v34  ;;  %vm2439_vm3 = vcmp.eq.s32.totalorder %v7438_v1, %v2340_v21  ;;  %4653 = vmatprep.subr.bf16.mxu0 %v4836_v44  ;;  %v2379_v43 = vadd.s32 %v6329_v31, %v2361_v51 }
 0x6ee   : > { %vm2438_vm4 = vcmp.eq.s32.totalorder %v7438_v1, %v2339_v55  ;;  %v2455_v40 = vsel %vm2439_vm3, 1.0, %v4837_v41  ;;  %v1925_v30 = vadd.s32 %v6403_v50, %v1922_v24  ;;  %v1965_v18 = vcvt.f32.s32 %v6275_v10 }
 0x6ef   : > { %v2244_v29 = vpop.xlane.xlu1 %2243  ;;  %v2454_v13 = vsel %vm2438_vm4, 1.0, %v4837_v41  ;;  %v2471_v12 = vmul.f32 %v6487_v14, %v2455_v40  ;;  %v1911_v38 = vadd.s32 %v6427_v57, %v1908_v35  ;;  %v2378_v58 = vadd.s32 %v6329_v31, %v2360_v46 }
 0x6f0   : > { %v2245_v6 = vcvt.f32.s32 %v2244_v29  ;;  %v2230_v4 = vpop.xlane.xlu0 %2229  ;;  %v2470_v23 = vmul.f32 %v6494_v28, %v2454_v13  ;;  %v2019_v57 = vsel %vm1704_vm1, %v1925_v30, 0  ;;  %v6527_v10 = vsel %vm2393_vm5, 1.0, %v4837_v41 }
 0x6f1   : > { %v2231_v63 = vcvt.f32.s32 %v2230_v4  ;;  %v2018_v36 = vsel %vm1704_vm1, %v1911_v38, 0  ;;  %v6533_v59 = vsel %vm2392_vm6, 1.0, %v4837_v41  ;;  %v1980_v2 = vshll.u32 %v1979_v47, 16 }
 0x6f2   : > { %v2248_v50 = vadd.s32 %v2247_v20, %v2245_v6  ;;  %4474 = vmatprep.mubr.f32.mxu1 %v2470_v23  ;;  %v4654_v48 = vpack.c.bf16 %v2471_v12, %v2470_v23  ;;  %vm2395_vm9 = vcmp.lt.s32.totalorder %v2379_v43, 256  ;;  %vm2394_vm10 = vcmp.lt.s32.totalorder %v2378_v58, 256 }
 0x6f3   : > { %v2234_v32 = vadd.s32 %v6465_v56, %v2231_v63  ;;  %v1949_v60 = vpop.xlane.xlu1 %1948  ;;  %4475 = vmatmul.mubr.f32.gmra.mrb[22].mxu1 %v2471_v12  ;;  %v2363_v52 = vadd.s32 104, %v6319_v25  ;;  %v1966_v40 = vshll.u32 %v1965_v18, 16  ;;  %v2302_v54 = vcvt.f32.s32 %v6282_v11 }
 0x6f4   : > { %v1950_v20 = vcvt.f32.s32 %v1949_v60  ;;  %4183 = vst [vmem:[%s6400_s16 + $0x18] sm:$0xff] %v4654_v48   ;;  %4655 = vmatpush3.bf16.msra.mxu0 %v4654_v48  ;;  %v1935_v7 = vpop.xlane.xlu0 %1934  ;;  %v2342_v42 = vsel %vm2026_vm2, %v2248_v50, %v2019_v57  ;;  %v2288_v30 = vcvt.f32.s32 %v6285_v45  ;;  %v2007_v29 = vcvt.f32.s32 %v6292_v0 }
 0x6f5   : > { %v1936_v62 = vcvt.f32.s32 %v1935_v7  ;;  %v2341_v56 = vsel %vm2026_vm2, %v2234_v32, %v2018_v36  ;;  %vm2441_vm7 = vcmp.eq.s32.totalorder %v7438_v1, %v2342_v42  ;;  %4656 = vmatprep.subr.bf16.mxu0 %v4836_v44  ;;  %v6553_v11 = vsel %vm2394_vm10, 1.0, %v4837_v41 }
 0x6f6   : > { %vm2440_vm8 = vcmp.eq.s32.totalorder %v7438_v1, %v2341_v56  ;;  %v2457_v5 = vsel %vm2441_vm7, 1.0, %v4837_v41  ;;  %v1953_v3 = vadd.s32 %v6469_v16, %v1950_v20  ;;  %v2362_v16 = vadd.s32 96, %v6319_v25 }
 0x6f7   : > { %v2272_v27 = vpop.xlane.xlu1 %2271  ;;  %v2456_v34 = vsel %vm2440_vm8, 1.0, %v4837_v41  ;;  %v2473_v24 = vmul.f32 %v6527_v10, %v2457_v5  ;;  %v1939_v22 = vadd.s32 %v6476_v17, %v1936_v62  ;;  %v6557_v6 = vsel %vm2395_vm9, 1.0, %v4837_v41 }
 0x6f8   : > { %v2273_v21 = vcvt.f32.s32 %v2272_v27  ;;  %v2258_v35 = vpop.xlane.xlu0 %2257  ;;  %v2472_v55 = vmul.f32 %v6533_v59, %v2456_v34  ;;  %v2021_v12 = vsel %vm1704_vm1, %v1953_v3, 0  ;;  %v2381_v23 = vadd.s32 %v6329_v31, %v2363_v52 }
 0x6f9   : > { %v2259_v51 = vcvt.f32.s32 %v2258_v35  ;;  %v2020_v45 = vsel %vm1704_vm1, %v1939_v22, 0  ;;  %v2380_v63 = vadd.s32 %v6329_v31, %v2362_v16  ;;  %v2303_v50 = vshll.u32 %v2302_v54, 16 }
 0x6fa   : > { %v2276_v13 = vadd.s32 %v2275_v26, %v2273_v21  ;;  %4477 = vmatprep.mubr.f32.mxu1 %v2472_v55  ;;  %v4657_v17 = vpack.c.bf16 %v2473_v24, %v2472_v55  ;;  %v2289_v48 = vshll.u32 %v2288_v30, 16  ;;  %v1993_v18 = vcvt.f32.s32 %v6295_v15 }
 0x6fb   : > { %v2262_v46 = vadd.s32 %v2261_v33, %v2259_v51  ;;  %v1977_v38 = vpop.xlane.xlu1 %1976  ;;  %4478 = vmatmul.mubr.f32.gmra.mrb[24].mxu1 %v2473_v24  ;;  %vm2397_vm13 = vcmp.lt.s32.totalorder %v2381_v23, 256  ;;  %v2008_v62 = vshll.u32 %v2007_v29, 16  ;;  %vm2396_vm14 = vcmp.lt.s32.totalorder %v2380_v63, 256 }
 0x6fc   : > { %v1978_v0 = vcvt.f32.s32 %v1977_v38  ;;  %4184 = vst [vmem:[%s6400_s16 + $0x20] sm:$0xff] %v4657_v17   ;;  %4658 = vmatpush3.bf16.msra.mxu0 %v4657_v17  ;;  %v1963_v26 = vpop.xlane.xlu0 %1962  ;;  %v2344_v4 = vsel %vm2026_vm2, %v2276_v13, %v2021_v12  ;;  %v2365_v5 = vadd.s32 120, %v6319_v25  ;;  %v2330_v15 = vcvt.f32.s32 %v6301_v8 }
 0x6fd   : > { %v1964_v33 = vcvt.f32.s32 %v1963_v26  ;;  %v2343_v47 = vsel %vm2026_vm2, %v2262_v46, %v2020_v45  ;;  %vm2443_vm11 = vcmp.eq.s32.totalorder %v7438_v1, %v2344_v4  ;;  %4659 = vmatprep.subr.bf16.mxu0 %v4836_v44  ;;  %v2364_v27 = vadd.s32 112, %v6319_v25 }
 0x6fe   : > { %vm2442_vm12 = vcmp.eq.s32.totalorder %v7438_v1, %v2343_v47  ;;  %v2459_v43 = vsel %vm2443_vm11, 1.0, %v4837_v41  ;;  %v1981_v57 = vadd.s32 %v1980_v2, %v1978_v0  ;;  %v2316_v34 = vcvt.f32.s32 %v6305_v39 }
 0x6ff   : > { %v2300_v32 = vpop.xlane.xlu1 %2299  ;;  %v2458_v60 = vsel %vm2442_vm12, 1.0, %v4837_v41  ;;  %v2475_v58 = vmul.f32 %v6557_v6, %v2459_v43  ;;  %v1967_v36 = vadd.s32 %v1966_v40, %v1964_v33  ;;  %v6583_v35 = vsel %vm2397_vm13, 1.0, %v4837_v41 }
 0x700   : > { %v2301_v20 = vcvt.f32.s32 %v2300_v32  ;;  %v2286_v7 = vpop.xlane.xlu0 %2285  ;;  %v2474_v42 = vmul.f32 %v6553_v11, %v2458_v60  ;;  %v2023_v24 = vsel %vm1704_vm1, %v1981_v57, 0  ;;  %v6590_v25 = vsel %vm2396_vm14, 1.0, %v4837_v41 }
 0x701   : > { %v2287_v56 = vcvt.f32.s32 %v2286_v7  ;;  %v2022_v55 = vsel %vm1704_vm1, %v1967_v36, 0  ;;  %v2383_v51 = vadd.s32 %v6329_v31, %v2365_v5  ;;  %v1994_v16 = vshll.u32 %v1993_v18, 16 }
 0x702   : > { %v2304_v2 = vadd.s32 %v2303_v50, %v2301_v20  ;;  %4480 = vmatprep.mubr.f32.mxu1 %v2474_v42  ;;  %v4660_v3 = vpack.c.bf16 %v2475_v58, %v2474_v42  ;;  %v2382_v29 = vadd.s32 %v6329_v31, %v2364_v27  ;;  %v2331_v38 = vshll.u32 %v2330_v15, 16 }
 0x703   : > { %v2290_v22 = vadd.s32 %v2289_v48, %v2287_v56  ;;  %v2005_v21 = vpop.xlane.xlu1 %2004  ;;  %4481 = vmatmul.mubr.f32.gmra.mrb[26].mxu1 %v2475_v58  ;;  %v2317_v23 = vshll.u32 %v2316_v34, 16  ;;  %vm2399_vm4 = vcmp.lt.s32.totalorder %v2383_v51, 256  ;;  %vm2799_vm7 = vcmask 1040384  }
 0x704   : > { %v2006_v8 = vcvt.f32.s32 %v2005_v21  ;;  %4185 = vst [vmem:[%s6400_s16 + $0x28] sm:$0xff] %v4660_v3   ;;  %4661 = vmatpush3.bf16.msra.mxu0 %v4660_v3  ;;  %v1991_v52 = vpop.xlane.xlu0 %1990  ;;  %v2346_v39 = vsel %vm2026_vm2, %v2304_v2, %v2023_v24  ;;  %vm2398_vm5 = vcmp.lt.s32.totalorder %v2382_v29, 256  ;;  %v6613_v18 = vsel %vm2399_vm4, 1.0, %v4837_v41 }
 0x705   : > { %v1992_v40 = vcvt.f32.s32 %v1991_v52  ;;  %v2345_v54 = vsel %vm2026_vm2, %v2290_v22, %v2022_v55  ;;  %vm2445_vm15 = vcmp.eq.s32.totalorder %v7438_v1, %v2346_v39  ;;  %4662 = vmatprep.subr.bf16.mxu0 %v4836_v44  ;;  %v6618_v32 = vsel %vm2398_vm5, 1.0, %v4837_v41  ;;  %v7441_v55 = vld [vmem:[#allocation5_spill] sm:$0xff]  ;;  %v7442_v39 = vld [vmem:[#allocation4_spill] sm:$0xff] }
 0x706   : > { %vm2444_vm3 = vcmp.eq.s32.totalorder %v7438_v1, %v2345_v54  ;;  %v2461_v30 = vsel %vm2445_vm15, 1.0, %v4837_v41  ;;  %v2009_v13 = vadd.s32 %v2008_v62, %v2006_v8  ;;  %v7439_v62 = vld [vmem:[#allocation3_spill] sm:$0xff] }
 0x707   : > { %v2328_v17 = vpop.xlane.xlu1 %2327  ;;  %v2460_v12 = vsel %vm2444_vm3, 1.0, %v4837_v41  ;;  %v2477_v46 = vmul.f32 %v6583_v35, %v2461_v30  ;;  %v1995_v45 = vadd.s32 %v1994_v16, %v1992_v40 }
 0x708   : > { %v2329_v0 = vcvt.f32.s32 %v2328_v17  ;;  %v2314_v26 = vpop.xlane.xlu0 %2313  ;;  %v2476_v4 = vmul.f32 %v6590_v25, %v2460_v12  ;;  %v2025_v31 = vsel %vm1704_vm1, %v2009_v13, 0  ;;  %v7443_v13 = vld [vmem:[#allocation7_spill] sm:$0xff] }
 0x709   : > { %v2315_v33 = vcvt.f32.s32 %v2314_v26  ;;  %v2024_v48 = vsel %vm1704_vm1, %v1995_v45, 0 }
 0x70a   : > { %v2332_v47 = vadd.s32 %v2331_v38, %v2329_v0  ;;  %4483 = vmatprep.mubr.f32.mxu1 %v2476_v4  ;;  %v4663_v63 = vpack.c.bf16 %v2477_v46, %v2476_v4  ;;  %v7444_v38 = vld [vmem:[#allocation6_spill] sm:$0xff] }
 0x70b   : > { %v2318_v50 = vadd.s32 %v2317_v23, %v2315_v33  ;;  %4484 = vmatmul.mubr.f32.gmra.mrb[28].mxu1 %v2477_v46 }
 0x70c   : > { %4186 = vst [vmem:[%s6400_s16 + $0x30] sm:$0xff] %v4663_v63   ;;  %4664 = vmatpush3.bf16.msra.mxu0 %v4663_v63  ;;  %v2348_v43 = vsel %vm2026_vm2, %v2332_v47, %v2025_v31  ;;  %v7445_v63 = vld [vmem:[#allocation9_spill] sm:$0xff] }
 0x70d   : > { %v2347_v57 = vsel %vm2026_vm2, %v2318_v50, %v2024_v48  ;;  %vm2447_vm6 = vcmp.eq.s32.totalorder %v7438_v1, %v2348_v43  ;;  %4665 = vmatprep.subr.bf16.mxu0 %v4836_v44  ;;  %v7440_v44 = vld [vmem:[#allocation2_spill] sm:$0xff]  ;;  %v7446_v43 = vld [vmem:[#allocation8_spill] sm:$0xff]  ;;  %vm4838_vm2 = vmmov 0  }
 0x70e   : > { %vm2446_vm1 = vcmp.eq.s32.totalorder %v7438_v1, %v2347_v57  ;;  %v2463_v60 = vsel %vm2447_vm6, 1.0, %v4837_v41  ;;  %4521 = vmatprep.mubr.msk.f32.mxu0 %vm4838_vm2, %v4837_v41 }
 0x70f   : > { %v2462_v58 = vsel %vm2446_vm1, 1.0, %v4837_v41  ;;  %v2479_v36 = vmul.f32 %v6613_v18, %v2463_v60 }
 0x710   : > { %v2478_v20 = vmul.f32 %v6618_v32, %v2462_v58 }
 0x712   : > { %4486 = vmatprep.mubr.f32.mxu1 %v2478_v20  ;;  %v4666_v7 = vpack.c.bf16 %v2479_v36, %v2478_v20 }
 0x713   : > { %4487 = vmatmul.mubr.f32.gmra.mrb[30].mxu1 %v2479_v36 }
 0x714   : > { %4187 = vst [vmem:[%s6400_s16 + $0x38] sm:$0xff] %v4666_v7   ;;  %4667 = vmatpush3.bf16.msra.mxu0 %v4666_v7 }
 0x7ae   : > { %v4467_v42 = vpop.f32.mrb[16].mxu1 }
 0x7af   : > { %v2712_v56 = vsub.f32 %v4467_v42, %v7439_v62  ;;  %v2562_v5 = vpop.f32.mrb[17].mxu1  ;;  %v7447_v62 = vld [vmem:[#allocation11_spill] sm:$0xff] }
 0x7b0   : > { %v2711_v15 = vsub.f32 %v2562_v5, %v7440_v44  ;;  %4532 = vmatprep.mubr.msk.f32.mxu1 %vm524_vm0, %v2562_v5 }
 0x7b1   : > { %v2728_v1 = vmul.f32 %v6360_v37, %v2712_v56  ;;  %4533 = vmatmul.mubr.msk.f32.vlgmr.msra.gmra.mrb[32].mxu1 %vm524_vm0, %v4467_v42 }
 0x7b2   : > { %v2727_v2 = vmul.f32 %v6368_v53, %v2711_v15  ;;  %v7448_v15 = vld [vmem:[#allocation10_spill] sm:$0xff] }
 0x7b3   : > { %v2744_v3 = vmul.f32 %v2728_v1, %v2728_v1 }
 0x7b4   : > { %v2743_v27 = vmul.f32 %v2727_v2, %v2727_v2 }
 0x7b5   : > { %v2760_v34 = vsel %vm524_vm0, %v2744_v3, 0.0 }
 0x7b6   : > { %v2759_v24 = vsel %vm524_vm0, %v2743_v27, 0.0  ;;  %v4470_v22 = vpop.f32.mrb[18].mxu1 }
 0x7b7   : > { %v2761_v21 = vadd.f32 %v2760_v34, %v2759_v24  ;;  %v2714_v8 = vsub.f32 %v4470_v22, %v7441_v55  ;;  %v2572_v52 = vpop.f32.mrb[19].mxu1 }
 0x7b8   : > { %v2713_v40 = vsub.f32 %v2572_v52, %v7442_v39  ;;  %4535 = vmatprep.mubr.msk.f32.mxu1 %vm524_vm0, %v2572_v52  ;;  %v7450_v39 = vld [vmem:[#allocation12_spill] sm:$0xff] }
 0x7b9   : > { %v2730_v37 = vmul.f32 %v6416_v19, %v2714_v8  ;;  %4536 = vmatmul.mubr.msk.f32.gmra.mrb[34].mxu1 %vm524_vm0, %v4470_v22 }
 0x7ba   : > { %v2729_v53 = vmul.f32 %v6423_v9, %v2713_v40 }
 0x7bb   : > { %v2746_v54 = vmul.f32 %v2730_v37, %v2730_v37 }
 0x7bc   : > { %v2745_v51 = vmul.f32 %v2729_v53, %v2729_v53 }
 0x7bd   : > { %v2764_v46 = vsel %vm524_vm0, %v2746_v54, 0.0 }
 0x7be   : > { %v2762_v16 = vsel %vm524_vm0, %v2745_v51, 0.0  ;;  %v4473_v30 = vpop.f32.mrb[20].mxu1 }
 0x7bf   : > { %v2763_v29 = vadd.f32 %v2762_v16, %v2761_v21  ;;  %v2716_v17 = vsub.f32 %v4473_v30, %v7443_v13  ;;  %v2582_v12 = vpop.f32.mrb[21].mxu1  ;;  %v7449_v21 = vld [vmem:[#allocation13_spill] sm:$0xff] }
 0x7c0   : > { %v2715_v45 = vsub.f32 %v2582_v12, %v7444_v38  ;;  %4538 = vmatprep.mubr.msk.f32.mxu1 %vm524_vm0, %v2582_v12 }
 0x7c1   : > { %v2732_v19 = vmul.f32 %v6452_v49, %v2716_v17  ;;  %v2765_v0 = vadd.f32 %v2764_v46, %v2763_v29  ;;  %4539 = vmatmul.mubr.msk.f32.gmra.mrb[36].mxu1 %vm524_vm0, %v4473_v30  ;;  %v7451_v29 = vld [vmem:[#allocation15_spill] sm:$0xff]  ;;  %v7452_v46 = vld [vmem:[#allocation14_spill] sm:$0xff] }
 0x7c2   : > { %v2731_v9 = vmul.f32 %v6448_v61, %v2715_v45 }
 0x7c3   : > { %v2748_v26 = vmul.f32 %v2732_v19, %v2732_v19 }
 0x7c4   : > { %v2747_v4 = vmul.f32 %v2731_v9, %v2731_v9 }
 0x7c5   : > { %v2768_v48 = vsel %vm524_vm0, %v2748_v26, 0.0 }
 0x7c6   : > { %v2766_v23 = vsel %vm524_vm0, %v2747_v4, 0.0  ;;  %v4476_v33 = vpop.f32.mrb[22].mxu1 }
 0x7c7   : > { %v2767_v47 = vadd.f32 %v2766_v23, %v2765_v0  ;;  %v2718_v31 = vsub.f32 %v4476_v33, %v7445_v63  ;;  %v2592_v50 = vpop.f32.mrb[23].mxu1  ;;  %v7453_v23 = vld [vmem:[#allocation17_spill] sm:$0xff] }
 0x7c8   : > { %v2717_v57 = vsub.f32 %v2592_v50, %v7446_v43  ;;  %4541 = vmatprep.mubr.msk.f32.mxu1 %vm524_vm0, %v2592_v50 }
 0x7c9   : > { %v2734_v49 = vmul.f32 %v6487_v14, %v2718_v31  ;;  %v2769_v60 = vadd.f32 %v2768_v48, %v2767_v47  ;;  %4542 = vmatmul.mubr.msk.f32.gmra.mrb[38].mxu1 %vm524_vm0, %v4476_v33  ;;  %v7454_v31 = vld [vmem:[#allocation16_spill] sm:$0xff] }
 0x7ca   : > { %v2733_v61 = vmul.f32 %v6494_v28, %v2717_v57 }
 0x7cb   : > { %v2750_v58 = vmul.f32 %v2734_v49, %v2734_v49 }
 0x7cc   : > { %v2749_v36 = vmul.f32 %v2733_v61, %v2733_v61 }
 0x7cd   : > { %v2772_v44 = vsel %vm524_vm0, %v2750_v58, 0.0 }
 0x7ce   : > { %v2770_v20 = vsel %vm524_vm0, %v2749_v36, 0.0  ;;  %v4479_v7 = vpop.f32.mrb[24].mxu1  ;;  %v6697_v36 = vld [vmem:[%s7359_s9] ss:$0 sm:$0xff] }
 0x7cf   : > { %v2771_v42 = vadd.f32 %v2770_v20, %v2769_v60  ;;  %v2720_v56 = vsub.f32 %v4479_v7, %v7447_v62  ;;  %v2602_v5 = vpop.f32.mrb[25].mxu1 }
 0x7d0   : > { %v2719_v1 = vsub.f32 %v2602_v5, %v7448_v15  ;;  %4544 = vmatprep.mubr.msk.f32.mxu1 %vm524_vm0, %v2602_v5 }
 0x7d1   : > { %v2736_v14 = vmul.f32 %v6527_v10, %v2720_v56  ;;  %v2773_v2 = vadd.f32 %v2772_v44, %v2771_v42  ;;  %4545 = vmatmul.mubr.msk.f32.gmra.mrb[40].mxu1 %vm524_vm0, %v4479_v7 }
 0x7d2   : > { %v2735_v28 = vmul.f32 %v6533_v59, %v2719_v1 }
 0x7d3   : > { %v2752_v3 = vmul.f32 %v2736_v14, %v2736_v14 }
 0x7d4   : > { %v2751_v27 = vmul.f32 %v2735_v28, %v2735_v28 }
 0x7d5   : > { %v2776_v52 = vsel %vm524_vm0, %v2752_v3, 0.0 }
 0x7d6   : > { %v2774_v34 = vsel %vm524_vm0, %v2751_v27, 0.0  ;;  %v4482_v24 = vpop.f32.mrb[26].mxu1 }
 0x7d7   : > { %v2775_v22 = vadd.f32 %v2774_v34, %v2773_v2  ;;  %v2722_v55 = vsub.f32 %v4482_v24, %v7449_v21  ;;  %v2612_v8 = vpop.f32.mrb[27].mxu1 }
 0x7d8   : > { %v2721_v40 = vsub.f32 %v2612_v8, %v7450_v39  ;;  %4547 = vmatprep.mubr.msk.f32.mxu1 %vm524_vm0, %v2612_v8 }
 0x7d9   : > { %v2738_v10 = vmul.f32 %v6557_v6, %v2722_v55  ;;  %v2777_v37 = vadd.f32 %v2776_v52, %v2775_v22  ;;  %4548 = vmatmul.mubr.msk.f32.gmra.mrb[42].mxu1 %vm524_vm0, %v4482_v24 }
 0x7da   : > { %v2737_v59 = vmul.f32 %v6553_v11, %v2721_v40 }
 0x7db   : > { %v2754_v53 = vmul.f32 %v2738_v10, %v2738_v10 }
 0x7dc   : > { %v2753_v54 = vmul.f32 %v2737_v59, %v2737_v59 }
 0x7dd   : > { %v2780_v12 = vsel %vm524_vm0, %v2754_v53, 0.0 }
 0x7de   : > { %v2778_v51 = vsel %vm524_vm0, %v2753_v54, 0.0  ;;  %v4485_v16 = vpop.f32.mrb[28].mxu1 }
 0x7df   : > { %v2779_v30 = vadd.f32 %v2778_v51, %v2777_v37  ;;  %v2724_v13 = vsub.f32 %v4485_v16, %v7451_v29  ;;  %v2622_v17 = vpop.f32.mrb[29].mxu1 }
 0x7e0   : > { %v2723_v38 = vsub.f32 %v2622_v17, %v7452_v46  ;;  %4550 = vmatprep.mubr.msk.f32.mxu1 %vm524_vm0, %v2622_v17 }
 0x7e1   : > { %v2740_v6 = vmul.f32 %v6583_v35, %v2724_v13  ;;  %v2781_v45 = vadd.f32 %v2780_v12, %v2779_v30  ;;  %4551 = vmatmul.mubr.msk.f32.gmra.mrb[44].mxu1 %vm524_vm0, %v4485_v16 }
 0x7e2   : > { %v2739_v11 = vmul.f32 %v6590_v25, %v2723_v38 }
 0x7e3   : > { %v2756_v19 = vmul.f32 %v2740_v6, %v2740_v6 }
 0x7e4   : > { %v2755_v0 = vmul.f32 %v2739_v11, %v2739_v11 }
 0x7e5   : > { %v2784_v63 = vsel %vm524_vm0, %v2756_v19, 0.0 }
 0x7e6   : > { %v2782_v9 = vsel %vm524_vm0, %v2755_v0, 0.0  ;;  %v4488_v26 = vpop.f32.mrb[30].mxu1 }
 0x7e7   : > { %v2783_v4 = vadd.f32 %v2782_v9, %v2781_v45  ;;  %v2726_v33 = vsub.f32 %v4488_v26, %v7453_v23  ;;  %v2632_v47 = vpop.f32.mrb[31].mxu1 }
 0x7e8   : > { %v2725_v50 = vsub.f32 %v2632_v47, %v7454_v31  ;;  %4553 = vmatprep.mubr.msk.f32.mxu1 %vm524_vm0, %v2632_v47 }
 0x7e9   : > { %v2742_v35 = vmul.f32 %v6613_v18, %v2726_v33  ;;  %v2785_v48 = vadd.f32 %v2784_v63, %v2783_v4  ;;  %4554 = vmatmul.mubr.msk.f32.gmra.mrb[46].mxu1 %vm524_vm0, %v4488_v26 }
 0x7ea   : > { %v2741_v25 = vmul.f32 %v6618_v32, %v2725_v50 }
 0x7eb   : > { %v2758_v43 = vmul.f32 %v2742_v35, %v2742_v35 }
 0x7ec   : > { %v2757_v57 = vmul.f32 %v2741_v25, %v2741_v25 }
 0x7ed   : > { %v2788_v61 = vsel %vm524_vm0, %v2758_v43, 0.0 }
 0x7ee   : > { %v2786_v49 = vsel %vm524_vm0, %v2757_v57, 0.0 }
 0x7ef   : > { %v2787_v60 = vadd.f32 %v2786_v49, %v2785_v48 }
 0x7f1   : > { %v6692_v58 = vadd.f32 %v2788_v61, %v2787_v60 }
 0x884   : > { %v4534_v18 = vpop.f32.mrb[32].mxu1 }
 0x885   : > { %v6700_v20 = vadd.f32 %v4534_v18, %v6697_v36  ;;  %v3009_v7 = vpop.f32.mrb[33].mxu1 }
 0x886   : > { %v6703_v32 = vadd.f32 %v6697_v36, %v3009_v7 }
 0x887   : > { %v3089_v42 = vmax.f32 %v6700_v20, 0.0 }
 0x888   : > { %v3088_v62 = vmax.f32 %v6703_v32, 0.0 }
 0x889   : > { %v3107_v56 = vsel %vm524_vm0, %v3089_v42, 0.0 }
 0x88a   : > { %3108 = vadd.xlane.f32.xlu1 %v3107_v56  ;;  %v3104_v5 = vsel %vm524_vm0, %v3088_v62, 0.0 }
 0x88b   : > { %3105 = vadd.xlane.f32.xlu0 %v3104_v5 }
 0x88c   : > { %v4537_v44 = vpop.f32.mrb[34].mxu1 }
 0x88d   : > { %v6714_v15 = vadd.f32 %v4537_v44, %v6697_v36  ;;  %v3019_v1 = vpop.f32.mrb[35].mxu1 }
 0x88e   : > { %v6717_v14 = vadd.f32 %v6697_v36, %v3019_v1 }
 0x88f   : > { %v3091_v2 = vmax.f32 %v6714_v15, 0.0 }
 0x890   : > { %v3090_v28 = vmax.f32 %v6717_v14, 0.0 }
 0x891   : > { %v3113_v3 = vsel %vm524_vm0, %v3091_v2, 0.0 }
 0x892   : > { %3114 = vadd.xlane.f32.xlu1 %v3113_v3  ;;  %v3110_v27 = vsel %vm524_vm0, %v3090_v28, 0.0 }
 0x893   : > { %3111 = vadd.xlane.f32.xlu0 %v3110_v27 }
 0x894   : > { %v4540_v34 = vpop.f32.mrb[36].mxu1 }
 0x895   : > { %v6728_v24 = vadd.f32 %v4540_v34, %v6697_v36  ;;  %v3029_v22 = vpop.f32.mrb[37].mxu1 }
 0x896   : > { %v6731_v21 = vadd.f32 %v6697_v36, %v3029_v22 }
 0x897   : > { %v3093_v55 = vmax.f32 %v6728_v24, 0.0 }
 0x898   : > { %v3092_v8 = vmax.f32 %v6731_v21, 0.0 }
 0x899   : > { %v3119_v52 = vsel %vm524_vm0, %v3093_v55, 0.0 }
 0x89a   : > { %3120 = vadd.xlane.f32.xlu1 %v3119_v52  ;;  %v3116_v39 = vsel %vm524_vm0, %v3092_v8, 0.0 }
 0x89b   : > { %3117 = vadd.xlane.f32.xlu0 %v3116_v39 }
 0x89c   : > { %v4543_v40 = vpop.f32.mrb[38].mxu1 }
 0x89d   : > { %v6742_v10 = vadd.f32 %v4543_v40, %v6697_v36  ;;  %v3039_v37 = vpop.f32.mrb[39].mxu1 }
 0x89e   : > { %v6745_v59 = vadd.f32 %v6697_v36, %v3039_v37 }
 0x89f   : > { %v3095_v53 = vmax.f32 %v6742_v10, 0.0 }
 0x8a0   : > { %v3094_v54 = vmax.f32 %v6745_v59, 0.0 }
 0x8a1   : > { %v3125_v51 = vsel %vm524_vm0, %v3095_v53, 0.0 }
 0x8a2   : > { %3126 = vadd.xlane.f32.xlu1 %v3125_v51  ;;  %v3122_v16 = vsel %vm524_vm0, %v3094_v54, 0.0 }
 0x8a3   : > { %3123 = vadd.xlane.f32.xlu0 %v3122_v16 }
 0x8a4   : > { %v4546_v30 = vpop.f32.mrb[40].mxu1 }
 0x8a5   : > { %v6756_v29 = vadd.f32 %v4546_v30, %v6697_v36  ;;  %v3049_v13 = vpop.f32.mrb[41].mxu1 }
 0x8a6   : > { %v6759_v17 = vadd.f32 %v6697_v36, %v3049_v13 }
 0x8a7   : > { %v3097_v12 = vmax.f32 %v6756_v29, 0.0 }
 0x8a8   : > { %v3096_v46 = vmax.f32 %v6759_v17, 0.0 }
 0x8a9   : > { %v3131_v38 = vsel %vm524_vm0, %v3097_v12, 0.0 }
 0x8aa   : > { %3132 = vadd.xlane.f32.xlu1 %v3131_v38  ;;  %v3128_v6 = vsel %vm524_vm0, %v3096_v46, 0.0 }
 0x8ab   : > { %3129 = vadd.xlane.f32.xlu0 %v3128_v6 }
 0x8ac   : > { %v4549_v45 = vpop.f32.mrb[42].mxu1 }
 0x8ad   : > { %v6770_v11 = vadd.f32 %v4549_v45, %v6697_v36  ;;  %v3059_v19 = vpop.f32.mrb[43].mxu1 }
 0x8ae   : > { %v6773_v0 = vadd.f32 %v6697_v36, %v3059_v19 }
 0x8af   : > { %v3099_v9 = vmax.f32 %v6770_v11, 0.0 }
 0x8b0   : > { %v3098_v26 = vmax.f32 %v6773_v0, 0.0 }
 0x8b1   : > { %v3137_v4 = vsel %vm524_vm0, %v3099_v9, 0.0 }
 0x8b2   : > { %3138 = vadd.xlane.f32.xlu1 %v3137_v4  ;;  %v3134_v23 = vsel %vm524_vm0, %v3098_v26, 0.0 }
 0x8b3   : > { %3135 = vadd.xlane.f32.xlu0 %v3134_v23 }
 0x8b4   : > { %v4552_v33 = vpop.f32.mrb[44].mxu1 }
 0x8b5   : > { %v3069_v47 = vpop.f32.mrb[45].mxu1  ;;  %v6784_v63 = vadd.f32 %v4552_v33, %v6697_v36 }
 0x8b6   : > { %v6787_v31 = vadd.f32 %v6697_v36, %v3069_v47 }
 0x8b7   : > { %v3101_v35 = vmax.f32 %v6784_v63, 0.0 }
 0x8b8   : > { %v3100_v50 = vmax.f32 %v6787_v31, 0.0 }
 0x8b9   : > { %v3143_v60 = vsel %vm524_vm0, %v3101_v35, 0.0 }
 0x8ba   : > { %v3140_v48 = vsel %vm524_vm0, %v3100_v50, 0.0 }
 0x8bb   : > { %3141 = vadd.xlane.f32.xlu0 %v3140_v48 }
 0x8bc   : > { %v4555_v25 = vpop.f32.mrb[46].mxu1 }
 0x8bd   : > { %v3079_v43 = vpop.f32.mrb[47].mxu1  ;;  %v6795_v57 = vadd.f32 %v4555_v25, %v6697_v36 }
 0x8be   : > { %v6798_v49 = vadd.f32 %v6697_v36, %v3079_v43 }
 0x8bf   : > { %3144 = vadd.xlane.f32.xlu0 %v3143_v60  ;;  %v3103_v18 = vmax.f32 %v6795_v57, 0.0 }
 0x8c0   : > { %v3102_v61 = vmax.f32 %v6798_v49, 0.0 }
 0x8c1   : > { %v3149_v56 = vsel %vm524_vm0, %v3103_v18, 0.0 }
 0x8c2   : > { %v3146_v7 = vsel %vm524_vm0, %v3102_v61, 0.0 }
 0x8c3   : > { %3147 = vadd.xlane.f32.xlu1 %v3146_v7 }
 0x8c7   : > { %3150 = vadd.xlane.f32.xlu1 %v3149_v56 }
 0x917   : > { %v3109_v36 = vpop.xlane.xlu1 %3108 }
 0x918   : > { %v3153_v5 = vmul.f32 0.03125, %v3109_v36  ;;  %v3106_v44 = vpop.xlane.xlu0 %3105  ;;  %v4097_v36 = vld [vmem:[%s7358_s8 + $0x20] sm:$0xff] }
 0x919   : > { %v3152_v1 = vmul.f32 0.03125, %v3106_v44 }
 0x91a   : > { %v6813_v3 = vsub.f32 %v3089_v42, %v3153_v5  ;;  %v4098_v5 = vld [vmem:[%s7358_s8 + $0x28] sm:$0xff] }
 0x91b   : > { %v6817_v27 = vsub.f32 %v3088_v62, %v3152_v1  ;;  %v4676_v1 = vpack.c.bf16 %v4098_v5, %v4097_v36  ;;  %v6939_v5 = vld [vmem:[%s7360_s10] ss:$0 sm:$0xff] }
 0x91c   : > { %v3185_v34 = vmul.f32 %v6813_v3, %v6813_v3 }
 0x91d   : > { %v3184_v22 = vmul.f32 %v6817_v27, %v6817_v27  ;;  %4677 = vmatprep.subr.bf16.mxu0 %v4676_v1  ;;  %4684 = vmatprep.subr.bf16.mxu1 %v4676_v1 }
 0x91e   : > { %v3203_v52 = vsel %vm524_vm0, %v3185_v34, 0.0  ;;  %v4839_v34 = vmov 1.0   ;;  %4686 = vmatpush3.bf16.msra.mxu1 %v4676_v1 }
 0x91f   : > { %v3115_v39 = vpop.xlane.xlu1 %3114  ;;  %3204 = vadd.xlane.f32.xlu1 %v3203_v52  ;;  %v3200_v40 = vsel %vm524_vm0, %v3184_v22, 0.0  ;;  %4522 = vmatmul.mubr.f32.vlgmr.msra.gmra.mrb[32].mxu0 %v4839_v34  ;;  %v4099_v22 = vld [vmem:[%s7358_s8 + $0x30] sm:$0xff]  ;;  %v4100_v52 = vld [vmem:[%s7358_s8 + $0x38] sm:$0xff] }
 0x920   : > { %v3155_v37 = vmul.f32 0.03125, %v3115_v39  ;;  %3201 = vadd.xlane.f32.xlu0 %v3200_v40  ;;  %v3112_v20 = vpop.xlane.xlu0 %3111  ;;  %4679 = vmatpush3.bf16.msra.mxu0 %v4676_v1  ;;  %v4680_v40 = vpack.c.bf16 %v4100_v52, %v4099_v22  ;;  %v6946_v22 = vld [vmem:[%s7361_s11] ss:$0 sm:$0xff] }
 0x921   : > { %v3154_v42 = vmul.f32 0.03125, %v3112_v20 }
 0x922   : > { %v6827_v32 = vsub.f32 %v3091_v2, %v3155_v37  ;;  %4681 = vmatprep.subr.bf16.mxu0 %v4680_v40  ;;  %4685 = vmatprep.subr.bf16.mxu1 %v4680_v40 }
 0x923   : > { %v6831_v62 = vsub.f32 %v3090_v28, %v3154_v42  ;;  %4687 = vmatpush3.bf16.msra.mxu1 %v4680_v40 }
 0x924   : > { %v3187_v51 = vmul.f32 %v6827_v32, %v6827_v32  ;;  %4683 = vmatpush3.bf16.msra.mxu0 %v4680_v40 }
 0x925   : > { %v3186_v16 = vmul.f32 %v6831_v62, %v6831_v62 }
 0x926   : > { %v3209_v30 = vsel %vm524_vm0, %v3187_v51, 0.0 }
 0x927   : > { %v3121_v13 = vpop.xlane.xlu1 %3120  ;;  %3210 = vadd.xlane.f32.xlu1 %v3209_v30  ;;  %v3206_v38 = vsel %vm524_vm0, %v3186_v16, 0.0 }
 0x928   : > { %v3157_v6 = vmul.f32 0.03125, %v3121_v13  ;;  %3207 = vadd.xlane.f32.xlu0 %v3206_v38  ;;  %v3118_v15 = vpop.xlane.xlu0 %3117 }
 0x929   : > { %v3156_v2 = vmul.f32 0.03125, %v3118_v15 }
 0x92a   : > { %v6841_v14 = vsub.f32 %v3093_v55, %v3157_v6 }
 0x92b   : > { %v6845_v28 = vsub.f32 %v3092_v8, %v3156_v2 }
 0x92c   : > { %v3189_v45 = vmul.f32 %v6841_v14, %v6841_v14 }
 0x92d   : > { %v3188_v19 = vmul.f32 %v6845_v28, %v6845_v28 }
 0x92e   : > { %v3215_v4 = vsel %vm524_vm0, %v3189_v45, 0.0 }
 0x92f   : > { %v3127_v23 = vpop.xlane.xlu1 %3126  ;;  %3216 = vadd.xlane.f32.xlu1 %v3215_v4  ;;  %v3212_v33 = vsel %vm524_vm0, %v3188_v19, 0.0 }
 0x930   : > { %v3159_v47 = vmul.f32 0.03125, %v3127_v23  ;;  %3213 = vadd.xlane.f32.xlu0 %v3212_v33  ;;  %v3124_v24 = vpop.xlane.xlu0 %3123 }
 0x931   : > { %v3158_v55 = vmul.f32 0.03125, %v3124_v24 }
 0x932   : > { %v6855_v21 = vsub.f32 %v3095_v53, %v3159_v47 }
 0x933   : > { %v6859_v8 = vsub.f32 %v3094_v54, %v3158_v55 }
 0x934   : > { %v3191_v48 = vmul.f32 %v6855_v21, %v6855_v21 }
 0x935   : > { %v3190_v25 = vmul.f32 %v6859_v8, %v6859_v8 }
 0x936   : > { %v3221_v43 = vsel %vm524_vm0, %v3191_v48, 0.0 }
 0x937   : > { %v3133_v60 = vpop.xlane.xlu1 %3132  ;;  %3222 = vadd.xlane.f32.xlu1 %v3221_v43  ;;  %v3218_v7 = vsel %vm524_vm0, %v3190_v25, 0.0 }
 0x938   : > { %v3161_v56 = vmul.f32 0.03125, %v3133_v60  ;;  %3219 = vadd.xlane.f32.xlu0 %v3218_v7  ;;  %v3130_v10 = vpop.xlane.xlu0 %3129 }
 0x939   : > { %v3160_v53 = vmul.f32 0.03125, %v3130_v10 }
 0x93a   : > { %v6869_v59 = vsub.f32 %v3097_v12, %v3161_v56 }
 0x93b   : > { %v6873_v54 = vsub.f32 %v3096_v46, %v3160_v53 }
 0x93c   : > { %v3193_v44 = vmul.f32 %v6869_v59, %v6869_v59 }
 0x93d   : > { %v3192_v29 = vmul.f32 %v6873_v54, %v6873_v54 }
 0x93e   : > { %v3227_v17 = vsel %vm524_vm0, %v3193_v44, 0.0 }
 0x93f   : > { %v3139_v12 = vpop.xlane.xlu1 %3138  ;;  %3228 = vadd.xlane.f32.xlu1 %v3227_v17  ;;  %v3224_v46 = vsel %vm524_vm0, %v3192_v29, 0.0 }
 0x940   : > { %v3163_v39 = vmul.f32 0.03125, %v3139_v12  ;;  %3225 = vadd.xlane.f32.xlu0 %v3224_v46  ;;  %v3136_v41 = vpop.xlane.xlu0 %3135 }
 0x941   : > { %v3162_v37 = vmul.f32 0.03125, %v3136_v41 }
 0x942   : > { %v6896_v20 = vsub.f32 %v3099_v9, %v3163_v39 }
 0x943   : > { %v6900_v42 = vsub.f32 %v3098_v26, %v3162_v37 }
 0x944   : > { %v3195_v51 = vmul.f32 %v6896_v20, %v6896_v20 }
 0x945   : > { %v3194_v16 = vmul.f32 %v6900_v42, %v6900_v42 }
 0x946   : > { %v3233_v30 = vsel %vm524_vm0, %v3195_v51, 0.0 }
 0x947   : > { %3234 = vadd.xlane.f32.xlu1 %v3233_v30  ;;  %v3230_v11 = vsel %vm524_vm0, %v3194_v16, 0.0 }
 0x948   : > { %3231 = vadd.xlane.f32.xlu0 %v3230_v11  ;;  %v3142_v9 = vpop.xlane.xlu0 %3141 }
 0x949   : > { %v3164_v13 = vmul.f32 0.03125, %v3142_v9 }
 0x94b   : > { %v6910_v0 = vsub.f32 %v3100_v50, %v3164_v13 }
 0x94c   : > { %v3145_v26 = vpop.xlane.xlu0 %3144 }
 0x94d   : > { %v3165_v38 = vmul.f32 0.03125, %v3145_v26  ;;  %v3196_v6 = vmul.f32 %v6910_v0, %v6910_v0 }
 0x94f   : > { %v6916_v15 = vsub.f32 %v3101_v35, %v3165_v38  ;;  %v3236_v2 = vsel %vm524_vm0, %v3196_v6, 0.0 }
 0x950   : > { %v3148_v45 = vpop.xlane.xlu1 %3147  ;;  %3237 = vadd.xlane.f32.xlu0 %v3236_v2 }
 0x951   : > { %v3166_v19 = vmul.f32 0.03125, %v3148_v45  ;;  %v3197_v4 = vmul.f32 %v6916_v15, %v6916_v15 }
 0x953   : > { %v6923_v31 = vsub.f32 %v3102_v61, %v3166_v19  ;;  %v3239_v50 = vsel %vm524_vm0, %v3197_v4, 0.0 }
 0x954   : > { %v3151_v23 = vpop.xlane.xlu1 %3150  ;;  %3240 = vadd.xlane.f32.xlu0 %v3239_v50 }
 0x955   : > { %v3167_v33 = vmul.f32 0.03125, %v3151_v23  ;;  %v3198_v63 = vmul.f32 %v6923_v31, %v6923_v31 }
 0x957   : > { %v6930_v35 = vsub.f32 %v3103_v18, %v3167_v33  ;;  %v3242_v47 = vsel %vm524_vm0, %v3198_v63, 0.0 }
 0x958   : > { %3243 = vadd.xlane.f32.xlu1 %v3242_v47 }
 0x959   : > { %v3199_v49 = vmul.f32 %v6930_v35, %v6930_v35 }
 0x95b   : > { %v3245_v61 = vsel %vm524_vm0, %v3199_v49, 0.0 }
 0x95c   : > { %3246 = vadd.xlane.f32.xlu1 %v3245_v61 }
 0x9ac   : > { %v3205_v24 = vpop.xlane.xlu1 %3204 }
 0x9ad   : > { %v3249_v55 = vmul.f32 0.03125, %v3205_v24  ;;  %v3202_v48 = vpop.xlane.xlu0 %3201 }
 0x9ae   : > { %v3248_v25 = vmul.f32 0.03125, %v3202_v48 }
 0x9af   : > { %v3265_v43 = vadd.f32 1e-05, %v3249_v55 }
 0x9b0   : > { %v3264_v60 = vadd.f32 1e-05, %v3248_v25 }
 0x9b1   : > { %4764 = vrsqrt.f32 %v3265_v43 }
 0x9b2   : > { %4766 = vrsqrt.f32 %v3264_v60 }
 0x9b4   : > { %v3211_v57 = vpop.xlane.xlu1 %3210 }
 0x9b5   : > { %v3251_v18 = vmul.f32 0.03125, %v3211_v57  ;;  %v3208_v7 = vpop.xlane.xlu0 %3207 }
 0x9b6   : > { %v3250_v56 = vmul.f32 0.03125, %v3208_v7 }
 0x9b7   : > { %v3267_v10 = vadd.f32 1e-05, %v3251_v18 }
 0x9b8   : > { %v3266_v53 = vadd.f32 1e-05, %v3250_v56 }
 0x9b9   : > { %4768 = vrsqrt.f32 %v3267_v10 }
 0x9ba   : > { %4770 = vrsqrt.f32 %v3266_v53 }
 0x9bb   : > { %v4765_v36 = vpop.eup %4764 }
 0x9bc   : > { %v4767_v44 = vpop.eup %4766  ;;  %v3297_v1 = vmul.f32 %v4765_v36, %v6813_v3  ;;  %v3217_v29 = vpop.xlane.xlu1 %3216 }
 0x9bd   : > { %v3253_v17 = vmul.f32 0.03125, %v3217_v29  ;;  %v3214_v12 = vpop.xlane.xlu0 %3213  ;;  %v3296_v46 = vmul.f32 %v4767_v44, %v6817_v27 }
 0x9be   : > { %v3252_v34 = vmul.f32 0.03125, %v3214_v12  ;;  %v3319_v52 = vmul.f32 %v6939_v5, %v3297_v1 }
 0x9bf   : > { %v3269_v39 = vadd.f32 1e-05, %v3253_v17  ;;  %v3318_v41 = vmul.f32 %v6939_v5, %v3296_v46 }
 0x9c0   : > { %v3268_v40 = vadd.f32 1e-05, %v3252_v34  ;;  %v3341_v37 = vadd.f32 %v6946_v22, %v3319_v52 }
 0x9c1   : > { %4772 = vrsqrt.f32 %v3269_v39  ;;  %v3340_v3 = vadd.f32 %v6946_v22, %v3318_v41 }
 0x9c2   : > { %4774 = vrsqrt.f32 %v3268_v40 }
 0x9c3   : > { %v4769_v51 = vpop.eup %4768  ;;  %4564 = vmatprep.mubr.msk.f32.mxu0 %vm524_vm0, %v3340_v3 }
 0x9c4   : > { %v4771_v27 = vpop.eup %4770  ;;  %v3223_v16 = vpop.xlane.xlu1 %3222  ;;  %4565 = vmatmul.mubr.msk.f32.vlgmr.msra.gmra.mrb[34].mxu0 %vm524_vm0, %v3341_v37  ;;  %v3299_v30 = vmul.f32 %v4769_v51, %v6827_v32 }
 0x9c5   : > { %v3255_v11 = vmul.f32 0.03125, %v3223_v16  ;;  %v3220_v9 = vpop.xlane.xlu0 %3219  ;;  %v3298_v13 = vmul.f32 %v4771_v27, %v6831_v62 }
 0x9c6   : > { %v3254_v26 = vmul.f32 0.03125, %v3220_v9  ;;  %v3321_v38 = vmul.f32 %v6939_v5, %v3299_v30 }
 0x9c7   : > { %v3271_v6 = vadd.f32 1e-05, %v3255_v11  ;;  %v3320_v2 = vmul.f32 %v6939_v5, %v3298_v13 }
 0x9c8   : > { %v3270_v45 = vadd.f32 1e-05, %v3254_v26  ;;  %v3343_v4 = vadd.f32 %v6946_v22, %v3321_v38 }
 0x9c9   : > { %4776 = vrsqrt.f32 %v3271_v6  ;;  %v3342_v19 = vadd.f32 %v6946_v22, %v3320_v2 }
 0x9ca   : > { %4778 = vrsqrt.f32 %v3270_v45 }
 0x9cb   : > { %v4773_v50 = vpop.eup %4772  ;;  %4567 = vmatprep.mubr.msk.f32.mxu0 %vm524_vm0, %v3342_v19 }
 0x9cc   : > { %v4775_v32 = vpop.eup %4774  ;;  %v3229_v23 = vpop.xlane.xlu1 %3228  ;;  %4568 = vmatmul.mubr.msk.f32.gmra.mrb[36].mxu0 %vm524_vm0, %v3343_v4  ;;  %v3301_v62 = vmul.f32 %v4773_v50, %v6841_v14 }
 0x9cd   : > { %v3257_v33 = vmul.f32 0.03125, %v3229_v23  ;;  %v3226_v63 = vpop.xlane.xlu0 %3225  ;;  %v3300_v47 = vmul.f32 %v4775_v32, %v6845_v28 }
 0x9ce   : > { %v3256_v49 = vmul.f32 0.03125, %v3226_v63  ;;  %v3323_v61 = vmul.f32 %v6939_v5, %v3301_v62 }
 0x9cf   : > { %v3273_v24 = vadd.f32 1e-05, %v3257_v33  ;;  %v3322_v55 = vmul.f32 %v6939_v5, %v3300_v47 }
 0x9d0   : > { %v3272_v48 = vadd.f32 1e-05, %v3256_v49  ;;  %v3345_v43 = vadd.f32 %v6946_v22, %v3323_v61 }
 0x9d1   : > { %4780 = vrsqrt.f32 %v3273_v24  ;;  %v3344_v25 = vadd.f32 %v6946_v22, %v3322_v55 }
 0x9d2   : > { %4782 = vrsqrt.f32 %v3272_v48 }
 0x9d3   : > { %v4777_v60 = vpop.eup %4776  ;;  %4570 = vmatprep.mubr.msk.f32.mxu0 %vm524_vm0, %v3344_v25 }
 0x9d4   : > { %v4779_v14 = vpop.eup %4778  ;;  %v3235_v57 = vpop.xlane.xlu1 %3234  ;;  %4571 = vmatmul.mubr.msk.f32.gmra.mrb[38].mxu0 %vm524_vm0, %v3345_v43  ;;  %v3303_v28 = vmul.f32 %v4777_v60, %v6855_v21  ;;  %v7015_v60 = vld [vmem:[%s7359_s9 + $0x1] ss:$0 sm:$0xff] }
 0x9d5   : > { %v3259_v18 = vmul.f32 0.03125, %v3235_v57  ;;  %v3232_v7 = vpop.xlane.xlu0 %3231  ;;  %v3302_v56 = vmul.f32 %v4779_v14, %v6859_v8 }
 0x9d6   : > { %v3258_v10 = vmul.f32 0.03125, %v3232_v7  ;;  %v3325_v53 = vmul.f32 %v6939_v5, %v3303_v28 }
 0x9d7   : > { %v3275_v36 = vadd.f32 1e-05, %v3259_v18  ;;  %v3324_v44 = vmul.f32 %v6939_v5, %v3302_v56 }
 0x9d8   : > { %v3274_v1 = vadd.f32 1e-05, %v3258_v10  ;;  %v3347_v17 = vadd.f32 %v6946_v22, %v3325_v53 }
 0x9d9   : > { %4784 = vrsqrt.f32 %v3275_v36  ;;  %v3346_v29 = vadd.f32 %v6946_v22, %v3324_v44 }
 0x9da   : > { %4786 = vrsqrt.f32 %v3274_v1 }
 0x9db   : > { %v4781_v12 = vpop.eup %4780  ;;  %4573 = vmatprep.mubr.msk.f32.mxu0 %vm524_vm0, %v3346_v29 }
 0x9dc   : > { %v4783_v21 = vpop.eup %4782  ;;  %4574 = vmatmul.mubr.msk.f32.gmra.mrb[40].mxu0 %vm524_vm0, %v3347_v17  ;;  %v3305_v8 = vmul.f32 %v4781_v12, %v6869_v59 }
 0x9dd   : > { %v3238_v46 = vpop.xlane.xlu0 %3237  ;;  %v3304_v34 = vmul.f32 %v4783_v21, %v6873_v54 }
 0x9de   : > { %v3260_v52 = vmul.f32 0.03125, %v3238_v46  ;;  %v3327_v39 = vmul.f32 %v6939_v5, %v3305_v8 }
 0x9df   : > { %v3326_v41 = vmul.f32 %v6939_v5, %v3304_v34 }
 0x9e0   : > { %v3276_v40 = vadd.f32 1e-05, %v3260_v52  ;;  %v3349_v27 = vadd.f32 %v6946_v22, %v3327_v39 }
 0x9e1   : > { %v3241_v3 = vpop.xlane.xlu0 %3240  ;;  %v3348_v37 = vadd.f32 %v6946_v22, %v3326_v41 }
 0x9e2   : > { %4788 = vrsqrt.f32 %v3276_v40  ;;  %v3261_v51 = vmul.f32 0.03125, %v3241_v3 }
 0x9e3   : > { %v4785_v16 = vpop.eup %4784  ;;  %4576 = vmatprep.mubr.msk.f32.mxu0 %vm524_vm0, %v3348_v37 }
 0x9e4   : > { %v4787_v59 = vpop.eup %4786  ;;  %v3277_v30 = vadd.f32 1e-05, %v3261_v51  ;;  %4577 = vmatmul.mubr.msk.f32.gmra.mrb[42].mxu0 %vm524_vm0, %v3349_v27  ;;  %v3307_v54 = vmul.f32 %v4785_v16, %v6896_v20 }
 0x9e5   : > { %v3244_v11 = vpop.xlane.xlu1 %3243  ;;  %v3306_v9 = vmul.f32 %v4787_v59, %v6900_v42 }
 0x9e6   : > { %4790 = vrsqrt.f32 %v3277_v30  ;;  %v3262_v13 = vmul.f32 0.03125, %v3244_v11  ;;  %v3329_v26 = vmul.f32 %v6939_v5, %v3307_v54 }
 0x9e7   : > { %v3328_v38 = vmul.f32 %v6939_v5, %v3306_v9 }
 0x9e8   : > { %v3278_v6 = vadd.f32 1e-05, %v3262_v13  ;;  %v3351_v4 = vadd.f32 %v6946_v22, %v3329_v26 }
 0x9e9   : > { %v3247_v2 = vpop.xlane.xlu1 %3246  ;;  %v3350_v45 = vadd.f32 %v6946_v22, %v3328_v38 }
 0x9ea   : > { %4792 = vrsqrt.f32 %v3278_v6  ;;  %v3263_v19 = vmul.f32 0.03125, %v3247_v2 }
 0x9eb   : > { %4579 = vmatprep.mubr.msk.f32.mxu0 %vm524_vm0, %v3350_v45 }
 0x9ec   : > { %v4789_v20 = vpop.eup %4788  ;;  %v3279_v50 = vadd.f32 1e-05, %v3263_v19  ;;  %4580 = vmatmul.mubr.msk.f32.gmra.mrb[44].mxu0 %vm524_vm0, %v3351_v4 }
 0x9ed   : > { %v3308_v42 = vmul.f32 %v4789_v20, %v6910_v0 }
 0x9ee   : > { %4794 = vrsqrt.f32 %v3279_v50 }
 0x9ef   : > { %v3330_v32 = vmul.f32 %v6939_v5, %v3308_v42 }
 0x9f0   : > { %v4791_v23 = vpop.eup %4790 }
 0x9f1   : > { %v3352_v62 = vadd.f32 %v6946_v22, %v3330_v32  ;;  %v3309_v33 = vmul.f32 %v4791_v23, %v6916_v15 }
 0x9f2   : > { %v7010_v43 = vpop.f32.mrb[32].mxu0 }
 0x9f3   : > { %4582 = vmatprep.mubr.msk.f32.mxu0 %vm524_vm0, %v3352_v62  ;;  %v3331_v63 = vmul.f32 %v6939_v5, %v3309_v33 }
 0x9f4   : > { %v4793_v47 = vpop.eup %4792 }
 0x9f5   : > { %v3353_v49 = vadd.f32 %v6946_v22, %v3331_v63  ;;  %v3310_v61 = vmul.f32 %v4793_v47, %v6923_v31  ;;  %v4523_v31 = vpop.f32.mrb[33].mxu0 }
 0x9f7   : > { %4583 = vmatmul.mubr.msk.f32.gmra.mrb[46].mxu0 %vm524_vm0, %v3353_v49  ;;  %v3332_v0 = vmul.f32 %v6939_v5, %v3310_v61 }
 0x9f8   : > { %v4795_v24 = vpop.eup %4794 }
 0x9f9   : > { %v3311_v55 = vmul.f32 %v4795_v24, %v6930_v35  ;;  %v3354_v48 = vadd.f32 %v6946_v22, %v3332_v0 }
 0x9fb   : > { %v3333_v15 = vmul.f32 %v6939_v5, %v3311_v55  ;;  %4585 = vmatprep.mubr.msk.f32.mxu1 %vm524_vm0, %v3354_v48 }
 0x9fd   : > { %v3355_v25 = vadd.f32 %v6946_v22, %v3333_v15 }
 0x9ff   : > { %4586 = vmatmul.mubr.msk.f32.vlgmr.msra.gmra.mrb[48].mxu1 %vm524_vm0, %v3355_v25 }
 0xa97   : > { %v4566_v14 = vpop.f32.mrb[34].mxu0 }
 0xa98   : > { %v7018_v35 = vadd.f32 %v4566_v14, %v7015_v60  ;;  %v3487_v57 = vpop.f32.mrb[35].mxu0 }
 0xa99   : > { %v7021_v5 = vadd.f32 %v7015_v60, %v3487_v57 }
 0xa9a   : > { %v3567_v22 = vmax.f32 %v7018_v35, 0.0 }
 0xa9b   : > { %v3566_v28 = vmax.f32 %v7021_v5, 0.0 }
 0xa9c   : > { %v3585_v18 = vsel %vm524_vm0, %v3567_v22, 0.0 }
 0xa9d   : > { %3586 = vadd.xlane.f32.xlu1 %v3585_v18  ;;  %v3582_v7 = vsel %vm524_vm0, %v3566_v28, 0.0 }
 0xa9e   : > { %3583 = vadd.xlane.f32.xlu0 %v3582_v7 }
 0xa9f   : > { %v4569_v56 = vpop.f32.mrb[36].mxu0 }
 0xaa0   : > { %v7032_v10 = vadd.f32 %v4569_v56, %v7015_v60  ;;  %v3497_v53 = vpop.f32.mrb[37].mxu0 }
 0xaa1   : > { %v7035_v36 = vadd.f32 %v7015_v60, %v3497_v53 }
 0xaa2   : > { %v3569_v44 = vmax.f32 %v7032_v10, 0.0 }
 0xaa3   : > { %v3568_v1 = vmax.f32 %v7035_v36, 0.0 }
 0xaa4   : > { %v3591_v29 = vsel %vm524_vm0, %v3569_v44, 0.0 }
 0xaa5   : > { %3592 = vadd.xlane.f32.xlu1 %v3591_v29  ;;  %v3588_v17 = vsel %vm524_vm0, %v3568_v1, 0.0 }
 0xaa6   : > { %3589 = vadd.xlane.f32.xlu0 %v3588_v17 }
 0xaa7   : > { %v4572_v12 = vpop.f32.mrb[38].mxu0 }
 0xaa8   : > { %v7046_v21 = vadd.f32 %v4572_v12, %v7015_v60  ;;  %v3507_v8 = vpop.f32.mrb[39].mxu0 }
 0xaa9   : > { %v7049_v46 = vadd.f32 %v7015_v60, %v3507_v8 }
 0xaaa   : > { %v3571_v34 = vmax.f32 %v7046_v21, 0.0 }
 0xaab   : > { %v3570_v52 = vmax.f32 %v7049_v46, 0.0 }
 0xaac   : > { %v3597_v39 = vsel %vm524_vm0, %v3571_v34, 0.0 }
 0xaad   : > { %3598 = vadd.xlane.f32.xlu1 %v3597_v39  ;;  %v3594_v41 = vsel %vm524_vm0, %v3570_v52, 0.0 }
 0xaae   : > { %3595 = vadd.xlane.f32.xlu0 %v3594_v41 }
 0xaaf   : > { %v4575_v40 = vpop.f32.mrb[40].mxu0 }
 0xab0   : > { %v7060_v3 = vadd.f32 %v4575_v40, %v7015_v60  ;;  %v3517_v37 = vpop.f32.mrb[41].mxu0 }
 0xab1   : > { %v7063_v51 = vadd.f32 %v7015_v60, %v3517_v37 }
 0xab2   : > { %v3573_v27 = vmax.f32 %v7060_v3, 0.0 }
 0xab3   : > { %v3572_v16 = vmax.f32 %v7063_v51, 0.0 }
 0xab4   : > { %v3603_v59 = vsel %vm524_vm0, %v3573_v27, 0.0 }
 0xab5   : > { %3604 = vadd.xlane.f32.xlu1 %v3603_v59  ;;  %v3600_v30 = vsel %vm524_vm0, %v3572_v16, 0.0 }
 0xab6   : > { %3601 = vadd.xlane.f32.xlu0 %v3600_v30 }
 0xab7   : > { %v4578_v54 = vpop.f32.mrb[42].mxu0 }
 0xab8   : > { %v7074_v11 = vadd.f32 %v4578_v54, %v7015_v60  ;;  %v3527_v9 = vpop.f32.mrb[43].mxu0 }
 0xab9   : > { %v7077_v13 = vadd.f32 %v7015_v60, %v3527_v9 }
 0xaba   : > { %v3575_v26 = vmax.f32 %v7074_v11, 0.0 }
 0xabb   : > { %v3574_v38 = vmax.f32 %v7077_v13, 0.0 }
 0xabc   : > { %v3609_v6 = vsel %vm524_vm0, %v3575_v26, 0.0 }
 0xabd   : > { %3610 = vadd.xlane.f32.xlu1 %v3609_v6  ;;  %v3606_v2 = vsel %vm524_vm0, %v3574_v38, 0.0 }
 0xabe   : > { %3607 = vadd.xlane.f32.xlu0 %v3606_v2 }
 0xabf   : > { %v4581_v45 = vpop.f32.mrb[44].mxu0 }
 0xac0   : > { %v7088_v19 = vadd.f32 %v4581_v45, %v7015_v60  ;;  %v3537_v4 = vpop.f32.mrb[45].mxu0 }
 0xac1   : > { %v7091_v20 = vadd.f32 %v7015_v60, %v3537_v4 }
 0xac2   : > { %v3577_v50 = vmax.f32 %v7088_v19, 0.0 }
 0xac3   : > { %v3576_v42 = vmax.f32 %v7091_v20, 0.0 }
 0xac4   : > { %v3615_v32 = vsel %vm524_vm0, %v3577_v50, 0.0 }
 0xac5   : > { %3616 = vadd.xlane.f32.xlu1 %v3615_v32  ;;  %v3612_v23 = vsel %vm524_vm0, %v3576_v42, 0.0 }
 0xac6   : > { %3613 = vadd.xlane.f32.xlu0 %v3612_v23 }
 0xaca   : > { %v4584_v62 = vpop.f32.mrb[46].mxu0 }
 0xacb   : > { %v7102_v33 = vadd.f32 %v4584_v62, %v7015_v60  ;;  %v3547_v63 = vpop.f32.mrb[47].mxu0 }
 0xacc   : > { %v7105_v47 = vadd.f32 %v7015_v60, %v3547_v63 }
 0xacd   : > { %v3579_v49 = vmax.f32 %v7102_v33, 0.0 }
 0xace   : > { %v3578_v61 = vmax.f32 %v7105_v47, 0.0 }
 0xacf   : > { %v3621_v0 = vsel %vm524_vm0, %v3579_v49, 0.0 }
 0xad0   : > { %3622 = vadd.xlane.f32.xlu1 %v3621_v0  ;;  %v3618_v24 = vsel %vm524_vm0, %v3578_v61, 0.0 }
 0xad1   : > { %3619 = vadd.xlane.f32.xlu0 %v3618_v24 }
 0xad2   : > { %v4587_v55 = vpop.f32.mrb[48].mxu1 }
 0xad3   : > { %v7116_v48 = vadd.f32 %v4587_v55, %v7015_v60  ;;  %v3557_v15 = vpop.f32.mrb[49].mxu1 }
 0xad4   : > { %v7119_v25 = vadd.f32 %v7015_v60, %v3557_v15 }
 0xad5   : > { %v3581_v31 = vmax.f32 %v7116_v48, 0.0 }
 0xad6   : > { %v3580_v14 = vmax.f32 %v7119_v25, 0.0 }
 0xad7   : > { %v3627_v57 = vsel %vm524_vm0, %v3581_v31, 0.0 }
 0xad8   : > { %3628 = vadd.xlane.f32.xlu1 %v3627_v57  ;;  %v3624_v18 = vsel %vm524_vm0, %v3580_v14, 0.0 }
 0xad9   : > { %3625 = vadd.xlane.f32.xlu0 %v3624_v18 }
 0xb2a   : > { %v3587_v7 = vpop.xlane.xlu1 %3586 }
 0xb2b   : > { %v3631_v56 = vmul.f32 0.03125, %v3587_v7  ;;  %v3584_v53 = vpop.xlane.xlu0 %3583 }
 0xb2c   : > { %v3630_v29 = vmul.f32 0.03125, %v3584_v53 }
 0xb2d   : > { %v7131_v60 = vsub.f32 %v3567_v22, %v3631_v56 }
 0xb2e   : > { %v7135_v17 = vsub.f32 %v3566_v28, %v3630_v29 }
 0xb2f   : > { %v3663_v12 = vmul.f32 %v7131_v60, %v7131_v60 }
 0xb30   : > { %v3662_v8 = vmul.f32 %v7135_v17, %v7135_v17 }
 0xb31   : > { %v3681_v39 = vsel %vm524_vm0, %v3663_v12, 0.0 }
 0xb32   : > { %v3593_v41 = vpop.xlane.xlu1 %3592  ;;  %3682 = vadd.xlane.f32.xlu1 %v3681_v39  ;;  %v3678_v40 = vsel %vm524_vm0, %v3662_v8, 0.0 }
 0xb33   : > { %v3633_v37 = vmul.f32 0.03125, %v3593_v41  ;;  %3679 = vadd.xlane.f32.xlu0 %v3678_v40  ;;  %v3590_v35 = vpop.xlane.xlu0 %3589 }
 0xb34   : > { %v3632_v22 = vmul.f32 0.03125, %v3590_v35 }
 0xb35   : > { %v7145_v5 = vsub.f32 %v3569_v44, %v3633_v37  ;;  %v2790_v37 = vrot.slane %v6692_v58, 4 }
 0xb36   : > { %v7149_v28 = vsub.f32 %v3568_v1, %v3632_v22 }
 0xb37   : > { %v3665_v59 = vmul.f32 %v7145_v5, %v7145_v5 }
 0xb38   : > { %v3664_v30 = vmul.f32 %v7149_v28, %v7149_v28 }
 0xb39   : > { %v3687_v54 = vsel %vm524_vm0, %v3665_v59, 0.0 }
 0xb3a   : > { %v3599_v9 = vpop.xlane.xlu1 %3598  ;;  %3688 = vadd.xlane.f32.xlu1 %v3687_v54  ;;  %v3684_v6 = vsel %vm524_vm0, %v3664_v30, 0.0 }
 0xb3b   : > { %v3635_v2 = vmul.f32 0.03125, %v3599_v9  ;;  %3685 = vadd.xlane.f32.xlu0 %v3684_v6  ;;  %v3596_v10 = vpop.xlane.xlu0 %3595 }
 0xb3c   : > { %v3634_v44 = vmul.f32 0.03125, %v3596_v10 }
 0xb3d   : > { %v7159_v36 = vsub.f32 %v3571_v34, %v3635_v2 }
 0xb3e   : > { %v7163_v1 = vsub.f32 %v3570_v52, %v3634_v44 }
 0xb3f   : > { %v3667_v45 = vmul.f32 %v7159_v36, %v7159_v36 }
 0xb40   : > { %v3666_v4 = vmul.f32 %v7163_v1, %v7163_v1 }
 0xb41   : > { %v3693_v32 = vsel %vm524_vm0, %v3667_v45, 0.0 }
 0xb42   : > { %v3605_v23 = vpop.xlane.xlu1 %3604  ;;  %3694 = vadd.xlane.f32.xlu1 %v3693_v32  ;;  %v3690_v62 = vsel %vm524_vm0, %v3666_v4, 0.0 }
 0xb43   : > { %v3637_v63 = vmul.f32 0.03125, %v3605_v23  ;;  %3691 = vadd.xlane.f32.xlu0 %v3690_v62  ;;  %v3602_v21 = vpop.xlane.xlu0 %3601 }
 0xb44   : > { %v3636_v34 = vmul.f32 0.03125, %v3602_v21 }
 0xb45   : > { %v7173_v46 = vsub.f32 %v3573_v27, %v3637_v63 }
 0xb46   : > { %v7177_v52 = vsub.f32 %v3572_v16, %v3636_v34 }
 0xb47   : > { %v3669_v0 = vmul.f32 %v7173_v46, %v7173_v46 }
 0xb48   : > { %v3668_v24 = vmul.f32 %v7177_v52, %v7177_v52 }
 0xb49   : > { %v3699_v55 = vsel %vm524_vm0, %v3669_v0, 0.0 }
 0xb4a   : > { %v3611_v15 = vpop.xlane.xlu1 %3610  ;;  %3700 = vadd.xlane.f32.xlu1 %v3699_v55  ;;  %v3696_v57 = vsel %vm524_vm0, %v3668_v24, 0.0 }
 0xb4b   : > { %v3639_v18 = vmul.f32 0.03125, %v3611_v15  ;;  %3697 = vadd.xlane.f32.xlu0 %v3696_v57  ;;  %v3608_v3 = vpop.xlane.xlu0 %3607 }
 0xb4c   : > { %v3638_v27 = vmul.f32 0.03125, %v3608_v3 }
 0xb4d   : > { %v7187_v51 = vsub.f32 %v3575_v26, %v3639_v18 }
 0xb4e   : > { %v7191_v16 = vsub.f32 %v3574_v38, %v3638_v27 }
 0xb4f   : > { %v3671_v7 = vmul.f32 %v7187_v51, %v7187_v51 }
 0xb50   : > { %v3670_v56 = vmul.f32 %v7191_v16, %v7191_v16 }
 0xb51   : > { %v3705_v53 = vsel %vm524_vm0, %v3671_v7, 0.0 }
 0xb52   : > { %v3617_v29 = vpop.xlane.xlu1 %3616  ;;  %3706 = vadd.xlane.f32.xlu1 %v3705_v53  ;;  %v3702_v12 = vsel %vm524_vm0, %v3670_v56, 0.0  ;;  %v7247_v56 = vld [vmem:[%s7360_s10 + $0x1] ss:$0 sm:$0xff] }
 0xb53   : > { %v3641_v8 = vmul.f32 0.03125, %v3617_v29  ;;  %3703 = vadd.xlane.f32.xlu0 %v3702_v12  ;;  %v3614_v11 = vpop.xlane.xlu0 %3613 }
 0xb54   : > { %v3640_v26 = vmul.f32 0.03125, %v3614_v11 }
 0xb55   : > { %v7201_v13 = vsub.f32 %v3577_v50, %v3641_v8  ;;  %v2791_v50 = vadd.f32 %v2790_v37, %v6692_v58  ;;  %v7253_v8 = vld [vmem:[%s7361_s11 + $0x1] ss:$0 sm:$0xff] }
 0xb56   : > { %v7205_v38 = vsub.f32 %v3576_v42, %v3640_v26 }
 0xb57   : > { %v3673_v39 = vmul.f32 %v7201_v13, %v7201_v13  ;;  %v2792_v54 = vrot.slane %v2791_v50, 2 }
 0xb58   : > { %v3672_v41 = vmul.f32 %v7205_v38, %v7205_v38 }
 0xb59   : > { %v3711_v40 = vsel %vm524_vm0, %v3673_v39, 0.0  ;;  %v2793_v33 = vadd.f32 %v2792_v54, %v2791_v50 }
 0xb5a   : > { %3712 = vadd.xlane.f32.xlu1 %v3711_v40  ;;  %v3708_v35 = vsel %vm524_vm0, %v3672_v41, 0.0 }
 0xb5b   : > { %3709 = vadd.xlane.f32.xlu0 %v3708_v35  ;;  %v2794_v4 = vrot.slane %v2793_v33, 1 }
 0xb5d   : > { %v3623_v19 = vpop.xlane.xlu1 %3622  ;;  %v2795_v21 = vadd.f32 %v2794_v4, %v2793_v33 }
 0xb5e   : > { %v3643_v20 = vmul.f32 0.03125, %v3623_v19  ;;  %v3620_v42 = vpop.xlane.xlu0 %3619 }
 0xb5f   : > { %v3642_v22 = vmul.f32 0.03125, %v3620_v42  ;;  %v2796_v48 = vsel %vm524_vm0, %v2795_v21, 0.0 }
 0xb60   : > { %v7217_v59 = vsub.f32 %v3579_v49, %v3643_v20 }
 0xb61   : > { %v7221_v30 = vsub.f32 %v3578_v61, %v3642_v22 }
 0xb62   : > { %v3675_v9 = vmul.f32 %v7217_v59, %v7217_v59 }
 0xb63   : > { %v3674_v6 = vmul.f32 %v7221_v30, %v7221_v30 }
 0xb64   : > { %v3717_v58 = vsel %vm524_vm0, %v3675_v9, 0.0 }
 0xb65   : > { %3718 = vadd.xlane.f32.xlu1 %v3717_v58  ;;  %v3629_v2 = vpop.xlane.xlu1 %3628  ;;  %v3714_v10 = vsel %vm524_vm0, %v3674_v6, 0.0 }
 0xb66   : > { %v3645_v49 = vmul.f32 0.03125, %v3629_v2  ;;  %3715 = vadd.xlane.f32.xlu0 %v3714_v10  ;;  %v3626_v44 = vpop.xlane.xlu0 %3625 }
 0xb67   : > { %v3644_v47 = vmul.f32 0.03125, %v3626_v44 }
 0xb68   : > { %v7231_v61 = vsub.f32 %v3581_v31, %v3645_v49 }
 0xb69   : > { %v7235_v45 = vsub.f32 %v3580_v14, %v3644_v47 }
 0xb6a   : > { %v3677_v32 = vmul.f32 %v7231_v61, %v7231_v61 }
 0xb6b   : > { %v3676_v23 = vmul.f32 %v7235_v45, %v7235_v45 }
 0xb6c   : > { %v3723_v62 = vsel %vm524_vm0, %v3677_v32, 0.0 }
 0xb6d   : > { %3724 = vadd.xlane.f32.xlu1 %v3723_v62  ;;  %v3720_v63 = vsel %vm524_vm0, %v3676_v23, 0.0 }
 0xb6e   : > { %3721 = vadd.xlane.f32.xlu0 %v3720_v63 }
 0xb72   : > { %2797 = vadd.xlane.f32.xlu0 %v2796_v48 }
 0xbbf   : > { %v3683_v25 = vpop.xlane.xlu1 %3682 }
 0xbc0   : > { %v3727_v31 = vmul.f32 0.03125, %v3683_v25  ;;  %v3680_v14 = vpop.xlane.xlu0 %3679 }
 0xbc1   : > { %v3726_v34 = vmul.f32 0.03125, %v3680_v14 }
 0xbc2   : > { %v3743_v0 = vadd.f32 1e-05, %v3727_v31 }
 0xbc3   : > { %v3742_v24 = vadd.f32 1e-05, %v3726_v34 }
 0xbc4   : > { %4796 = vrsqrt.f32 %v3743_v0 }
 0xbc5   : > { %4798 = vrsqrt.f32 %v3742_v24 }
 0xbc7   : > { %v3689_v55 = vpop.xlane.xlu1 %3688 }
 0xbc8   : > { %v3729_v15 = vmul.f32 0.03125, %v3689_v55  ;;  %v3686_v57 = vpop.xlane.xlu0 %3685 }
 0xbc9   : > { %v3728_v18 = vmul.f32 0.03125, %v3686_v57 }
 0xbca   : > { %v3745_v3 = vadd.f32 1e-05, %v3729_v15 }
 0xbcb   : > { %v3744_v27 = vadd.f32 1e-05, %v3728_v18 }
 0xbcc   : > { %4800 = vrsqrt.f32 %v3745_v3 }
 0xbcd   : > { %4802 = vrsqrt.f32 %v3744_v27 }
 0xbce   : > { %v4797_v7 = vpop.eup %4796 }
 0xbcf   : > { %v4799_v53 = vpop.eup %4798  ;;  %v3775_v29 = vmul.f32 %v4797_v7, %v7131_v60  ;;  %v3695_v12 = vpop.xlane.xlu1 %3694 }
 0xbd0   : > { %v3774_v11 = vmul.f32 %v4799_v53, %v7135_v17  ;;  %v3731_v26 = vmul.f32 0.03125, %v3695_v12  ;;  %v3692_v39 = vpop.xlane.xlu0 %3691 }
 0xbd1   : > { %v3797_v41 = vmul.f32 %v7247_v56, %v3775_v29  ;;  %v3730_v40 = vmul.f32 0.03125, %v3692_v39 }
 0xbd2   : > { %v3796_v60 = vmul.f32 %v7247_v56, %v3774_v11  ;;  %v3747_v37 = vadd.f32 1e-05, %v3731_v26 }
 0xbd3   : > { %v3819_v35 = vadd.f32 %v7253_v8, %v3797_v41  ;;  %v3746_v19 = vadd.f32 1e-05, %v3730_v40 }
 0xbd4   : > { %v3818_v17 = vadd.f32 %v7253_v8, %v3796_v60  ;;  %4804 = vrsqrt.f32 %v3747_v37 }
 0xbd5   : > { %3835 = vst.msk [vmem:[%s7262_s15 + $0x8] sm:$0xff] %vm524_vm0, %v3819_v35  ;;  %4806 = vrsqrt.f32 %v3746_v19 }
 0xbd6   : > { %v4801_v50 = vpop.eup %4800  ;;  %3834 = vst.msk [vmem:[%s7262_s15] sm:$0xff] %vm524_vm0, %v3818_v17 }
 0xbd7   : > { %v4803_v20 = vpop.eup %4802  ;;  %v3777_v42 = vmul.f32 %v4801_v50, %v7145_v5  ;;  %v3701_v22 = vpop.xlane.xlu1 %3700 }
 0xbd8   : > { %v3776_v54 = vmul.f32 %v4803_v20, %v7149_v28  ;;  %v3733_v9 = vmul.f32 0.03125, %v3701_v22  ;;  %v3698_v6 = vpop.xlane.xlu0 %3697 }
 0xbd9   : > { %v3799_v58 = vmul.f32 %v7247_v56, %v3777_v42  ;;  %v3732_v2 = vmul.f32 0.03125, %v3698_v6 }
 0xbda   : > { %v3798_v10 = vmul.f32 %v7247_v56, %v3776_v54  ;;  %v3749_v33 = vadd.f32 1e-05, %v3733_v9 }
 0xbdb   : > { %v3821_v49 = vadd.f32 %v7253_v8, %v3799_v58  ;;  %v3748_v44 = vadd.f32 1e-05, %v3732_v2 }
 0xbdc   : > { %v3820_v47 = vadd.f32 %v7253_v8, %v3798_v10  ;;  %4808 = vrsqrt.f32 %v3749_v33 }
 0xbdd   : > { %3837 = vst.msk [vmem:[%s7262_s15 + $0x18] sm:$0xff] %vm524_vm0, %v3821_v49  ;;  %4810 = vrsqrt.f32 %v3748_v44 }
 0xbde   : > { %v4805_v5 = vpop.eup %4804  ;;  %3836 = vst.msk [vmem:[%s7262_s15 + $0x10] sm:$0xff] %vm524_vm0, %v3820_v47 }
 0xbdf   : > { %v4807_v28 = vpop.eup %4806  ;;  %v3779_v4 = vmul.f32 %v4805_v5, %v7159_v36  ;;  %v3707_v32 = vpop.xlane.xlu1 %3706 }
 0xbe0   : > { %v3778_v23 = vmul.f32 %v4807_v28, %v7163_v1  ;;  %v3735_v62 = vmul.f32 0.03125, %v3707_v32  ;;  %v3704_v63 = vpop.xlane.xlu0 %3703 }
 0xbe1   : > { %v3801_v21 = vmul.f32 %v7247_v56, %v3779_v4  ;;  %v3734_v48 = vmul.f32 0.03125, %v3704_v63 }
 0xbe2   : > { %v3800_v25 = vmul.f32 %v7247_v56, %v3778_v23  ;;  %v3751_v31 = vadd.f32 1e-05, %v3735_v62 }
 0xbe3   : > { %v3823_v14 = vadd.f32 %v7253_v8, %v3801_v21  ;;  %v3750_v34 = vadd.f32 1e-05, %v3734_v48 }
 0xbe4   : > { %v3822_v0 = vadd.f32 %v7253_v8, %v3800_v25  ;;  %4812 = vrsqrt.f32 %v3751_v31 }
 0xbe5   : > { %3839 = vst.msk [vmem:[%s7262_s15 + $0x28] sm:$0xff] %vm524_vm0, %v3823_v14  ;;  %4814 = vrsqrt.f32 %v3750_v34 }
 0xbe6   : > { %v4809_v36 = vpop.eup %4808  ;;  %3838 = vst.msk [vmem:[%s7262_s15 + $0x20] sm:$0xff] %vm524_vm0, %v3822_v0 }
 0xbe7   : > { %v4811_v1 = vpop.eup %4810  ;;  %v3781_v24 = vmul.f32 %v4809_v36, %v7173_v46  ;;  %v3713_v55 = vpop.xlane.xlu1 %3712 }
 0xbe8   : > { %v3780_v15 = vmul.f32 %v4811_v1, %v7177_v52  ;;  %v3737_v57 = vmul.f32 0.03125, %v3713_v55  ;;  %v3710_v18 = vpop.xlane.xlu0 %3709 }
 0xbe9   : > { %v3803_v3 = vmul.f32 %v7247_v56, %v3781_v24  ;;  %v3736_v27 = vmul.f32 0.03125, %v3710_v18 }
 0xbea   : > { %v3802_v7 = vmul.f32 %v7247_v56, %v3780_v15  ;;  %v3753_v53 = vadd.f32 1e-05, %v3737_v57 }
 0xbeb   : > { %v3825_v29 = vadd.f32 %v7253_v8, %v3803_v3  ;;  %v3752_v12 = vadd.f32 1e-05, %v3736_v27 }
 0xbec   : > { %v3824_v11 = vadd.f32 %v7253_v8, %v3802_v7  ;;  %4816 = vrsqrt.f32 %v3753_v53 }
 0xbed   : > { %3841 = vst.msk [vmem:[%s7262_s15 + $0x38] sm:$0xff] %vm524_vm0, %v3825_v29  ;;  %4818 = vrsqrt.f32 %v3752_v12 }
 0xbee   : > { %v4813_v46 = vpop.eup %4812  ;;  %3840 = vst.msk [vmem:[%s7262_s15 + $0x30] sm:$0xff] %vm524_vm0, %v3824_v11 }
 0xbef   : > { %v4815_v52 = vpop.eup %4814  ;;  %v3783_v26 = vmul.f32 %v4813_v46, %v7187_v51 }
 0xbf0   : > { %v3782_v39 = vmul.f32 %v4815_v52, %v7191_v16 }
 0xbf1   : > { %v3805_v41 = vmul.f32 %v7247_v56, %v3783_v26 }
 0xbf2   : > { %v3804_v40 = vmul.f32 %v7247_v56, %v3782_v39  ;;  %v3719_v60 = vpop.xlane.xlu1 %3718 }
 0xbf3   : > { %v3827_v37 = vadd.f32 %v7253_v8, %v3805_v41  ;;  %v3739_v35 = vmul.f32 0.03125, %v3719_v60  ;;  %v3716_v19 = vpop.xlane.xlu0 %3715 }
 0xbf4   : > { %v3826_v17 = vadd.f32 %v7253_v8, %v3804_v40  ;;  %v3738_v50 = vmul.f32 0.03125, %v3716_v19 }
 0xbf5   : > { %3843 = vst.msk [vmem:[%s7262_s15 + $0x48] sm:$0xff] %vm524_vm0, %v3827_v37  ;;  %v3755_v20 = vadd.f32 1e-05, %v3739_v35 }
 0xbf6   : > { %v4817_v51 = vpop.eup %4816  ;;  %3842 = vst.msk [vmem:[%s7262_s15 + $0x40] sm:$0xff] %vm524_vm0, %v3826_v17  ;;  %v3754_v16 = vadd.f32 1e-05, %v3738_v50 }
 0xbf7   : > { %v4819_v42 = vpop.eup %4818  ;;  %v3785_v22 = vmul.f32 %v4817_v51, %v7201_v13  ;;  %4820 = vrsqrt.f32 %v3755_v20 }
 0xbf8   : > { %v3784_v54 = vmul.f32 %v4819_v42, %v7205_v38  ;;  %4822 = vrsqrt.f32 %v3754_v16 }
 0xbf9   : > { %v3807_v9 = vmul.f32 %v7247_v56, %v3785_v22 }
 0xbfa   : > { %v3806_v6 = vmul.f32 %v7247_v56, %v3784_v54  ;;  %v3725_v58 = vpop.xlane.xlu1 %3724 }
 0xbfb   : > { %v3829_v2 = vadd.f32 %v7253_v8, %v3807_v9  ;;  %v3741_v10 = vmul.f32 0.03125, %v3725_v58  ;;  %v3722_v33 = vpop.xlane.xlu0 %3721 }
 0xbfc   : > { %v3828_v49 = vadd.f32 %v7253_v8, %v3806_v6  ;;  %v3740_v44 = vmul.f32 0.03125, %v3722_v33 }
 0xbfd   : > { %3845 = vst.msk [vmem:[%s7262_s15 + $0x58] sm:$0xff] %vm524_vm0, %v3829_v2  ;;  %v3757_v13 = vadd.f32 1e-05, %v3741_v10 }
 0xbfe   : > { %3844 = vst.msk [vmem:[%s7262_s15 + $0x50] sm:$0xff] %vm524_vm0, %v3828_v49  ;;  %v3756_v38 = vadd.f32 1e-05, %v3740_v44 }
 0xbff   : > { %4824 = vrsqrt.f32 %v3757_v13  ;;  %v2798_v47 = vpop.xlane.xlu0 %2797 }
 0xc00   : > { %4826 = vrsqrt.f32 %v3756_v38  ;;  %v2800_v5 = vsel %vm2799_vm7, %v7010_v43, %v2798_v47 }
 0xc01   : > { %v4821_v28 = vpop.eup %4820  ;;  %2801 = vst [vmem:[%s494_s17] sm:$0x3] %v2800_v5 }
 0xc02   : > { %v4823_v4 = vpop.eup %4822  ;;  %v3787_v32 = vmul.f32 %v4821_v28, %v7217_v59 }
 0xc03   : > { %v3786_v23 = vmul.f32 %v4823_v4, %v7221_v30 }
 0xc04   : > { %v3809_v62 = vmul.f32 %v7247_v56, %v3787_v32 }
 0xc05   : > { %v3808_v63 = vmul.f32 %v7247_v56, %v3786_v23 }
 0xc06   : > { %v3831_v21 = vadd.f32 %v7253_v8, %v3809_v62 }
 0xc07   : > { %v3830_v48 = vadd.f32 %v7253_v8, %v3808_v63 }
 0xc08   : > { %3847 = vst.msk [vmem:[%s7262_s15 + $0x68] sm:$0xff] %vm524_vm0, %v3831_v21 }
 0xc09   : > { %v4825_v43 = vpop.eup %4824  ;;  %3846 = vst.msk [vmem:[%s7262_s15 + $0x60] sm:$0xff] %vm524_vm0, %v3830_v48 }
 0xc0a   : > { %v4827_v25 = vpop.eup %4826  ;;  %v3789_v59 = vmul.f32 %v4825_v43, %v7231_v61 }
 0xc0b   : > { %v3788_v31 = vmul.f32 %v4827_v25, %v7235_v45 }
 0xc0c   : > { %v3811_v30 = vmul.f32 %v7247_v56, %v3789_v59 }
 0xc0d   : > { %v3810_v14 = vmul.f32 %v7247_v56, %v3788_v31 }
 0xc0e   : > { %v3833_v34 = vadd.f32 %v7253_v8, %v3811_v30 }
 0xc0f   : > { %v3832_v0 = vadd.f32 %v7253_v8, %v3810_v14 }
 0xc10   : > { %3849 = vst.msk [vmem:[%s7262_s15 + $0x78] sm:$0xff] %vm524_vm0, %v3833_v34 }
 0xc11   : > { %3848 = vst.msk [vmem:[%s7262_s15 + $0x70] sm:$0xff] %vm524_vm0, %v3832_v0 }
 0xc12 PF: > { %s25_s29 = sadd.s32 1, %s4834_s29  }
 0xc13   : > { %p22_p5 = scmp.ge.s32.totalorder %s25_s29, 4  }
 0xc15   :  { %24 = sbr.rel (!%p22_p5) target bundleno = 1 (0x1), region = 130 }

</bundles_post_ra>
